<compile_context>
chip_gen: v7x
topology: tpu7x:2x2x1
jax: 0.10.0
libtpu: 0.0.40
codegen_flags: <defaults>
</compile_context>

<pallas_src>
import jax
import jax.numpy as jnp
from jax import lax
from jax.experimental import pallas as pl
from jax.experimental.pallas import tpu as pltpu


def _dot(a, b):
    return jnp.dot(a, b, preferred_element_type=jnp.float32)


# ----------------------------- fused Pallas kernel -------------------------- #

def fused_cnn_kernel(img_e_ref, img_o_ref, a_ref, bc_ref, w1_ref, b1_ref,
                     w2_ref, b2_ref, out_ref):
    """img_e_ref: (14, bt, 28) bf16  even image rows (h = 0,2,...,26), row index q -> h=2q
       img_o_ref: (14, bt, 28) bf16  odd  image rows (h = 1,3,...,27), row index q -> h=2q+1
       a_ref:     (3, 28, 512) bf16  packed conv weight per kh; lane = dj*256 + j*16 + c
       bc_ref:    (1, 512) f32       conv bias tiled over (dj, j)
       w1_ref:    (13, 256, 64) bf16 FC1 weight split per pooled row i, rows >=208 are zero
       b1_ref:    (1, 64) f32, w2_ref: (64, 10) bf16, b2_ref: (1, 10) f32
       out_ref:   (bt, 10) f32"""
    bt = img_e_ref.shape[1]
    r = 13 * bt

    e = img_e_ref[...]                       # (14, bt, 28)
    o = img_o_ref[...]                       # (14, bt, 28)
    # rows ordered (i, b): slices give input rows h = 2i + s for s = 0,1,2,3
    e0 = e[0:13].reshape(r, 28)              # h = 2i
    o0 = o[0:13].reshape(r, 28)              # h = 2i + 1
    e1 = e[1:14].reshape(r, 28)              # h = 2i + 2
    o1 = o[1:14].reshape(r, 28)              # h = 2i + 3

    a0 = a_ref[0]                            # (28, 512), tap kh = 0
    a1 = a_ref[1]                            # kh = 1
    a2 = a_ref[2]                            # kh = 2

    # conv output row h_out = 2i + di needs input rows h_out + kh:
    #   di=0 -> (e0, o0, e1) ; di=1 -> (o0, e1, o1)
    c0 = _dot(e0, a0) + _dot(o0, a1) + _dot(e1, a2)      # (13*bt, 512) f32
    c1 = _dot(o0, a0) + _dot(e1, a1) + _dot(o1, a2)      # (13*bt, 512) f32

    m = jnp.maximum(c0, c1) + bc_ref[...]                # max over di, then shared bias
    m = jnp.maximum(m, 0.0)                              # ReLU (commutes with max)
    pooled = jnp.maximum(m[:, 0:256], m[:, 256:512])     # max over dj (256-aligned slices)
    pooled = pooled.astype(jnp.bfloat16)                 # (13*bt, 256), lane = j*16 + c

    # FC1: h[b, o] = sum_i pooled[(i, b), :] @ W1[i]
    w1 = w1_ref[...]                                     # (13, 256, 64)
    h = jnp.zeros((bt, 64), jnp.float32)
    for i in range(13):
        h = h + _dot(pooled[i * bt:(i + 1) * bt, :], w1[i])
    h = jnp.maximum(h + b1_ref[...], 0.0)                # bias + ReLU

    out_ref[...] = _dot(h.astype(jnp.bfloat16), w2_ref[...]) + b2_ref[...]


# --------------------------------- wrapper ---------------------------------- #

def cnn_forward(x, params, batch_tile=128):
    """x: (N, 1, 28, 28) float32 (NCHW, like PyTorch). Returns (N, 10) float32."""
    conv_w, conv_b, fc1_w, fc1_b, fc2_w, fc2_b = params
    n = x.shape[0]

    # batch tile: multiple of 16 (bf16 sublane packing); pad batch up to a multiple of it
    bt = max(16, min(batch_tile, ((n + 15) // 16) * 16))
    bt = (bt // 16) * 16
    n_pad = ((n + bt - 1) // bt) * bt

    # --- raw images, bf16, split into even / odd rows, batch in the middle dim ---
    x2 = x[:, 0].astype(jnp.bfloat16)                    # (N, 28, 28)
    if n_pad != n:
        x2 = jnp.pad(x2, ((0, n_pad - n), (0, 0), (0, 0)))
    img_e = x2[:, 0::2, :].transpose(1, 0, 2)            # (14, n_pad, 28)
    img_o = x2[:, 1::2, :].transpose(1, 0, 2)            # (14, n_pad, 28)

    # --- packed conv weight: A[kh, w_in, dj*256 + j*16 + c] = conv_w[c,0,kh, w_in-(2j+dj)] ---
    wmat = conv_w[:, 0].astype(jnp.float32)              # (16, 3, 3) [c, kh, kw]
    w_in = jnp.arange(28)[None, :, None]                 # (1, 28, 1)
    lane = jnp.arange(512)[None, None, :]                # (1, 1, 512)
    dj = lane // 256
    lr = lane % 256
    jj = lr // 16
    cc = lr % 16
    kw = w_in - (2 * jj + dj)
    valid = (lr < 208) & (kw >= 0) & (kw < 3)
    kh = jnp.arange(3)[:, None, None]                    # (3, 1, 1)
    taps = wmat[cc, kh, jnp.clip(kw, 0, 2)]              # (3, 28, 512)
    a_all = jnp.where(valid, taps, 0.0).astype(jnp.bfloat16)

    b_grp = jnp.concatenate([jnp.tile(conv_b.astype(jnp.float32), 13),
                             jnp.zeros((48,), jnp.float32)])        # (256,)
    bc = jnp.tile(b_grp, 2)[None, :]                                 # (1, 512)

    # --- FC1 weight permuted to [i, j*16+c, out], lane-padded to 256 rows per i ---
    w1 = fc1_w.reshape(64, 16, 13, 13).transpose(2, 3, 1, 0).reshape(13, 208, 64)
    w1 = jnp.concatenate([w1, jnp.zeros((13, 48, 64), w1.dtype)], axis=1)
    w1 = w1.astype(jnp.bfloat16)                                     # (13, 256, 64)
    b1 = fc1_b.reshape(1, 64).astype(jnp.float32)
    w2 = fc2_w.T.astype(jnp.bfloat16)                                # (64, 10)
    b2 = fc2_b.reshape(1, 10).astype(jnp.float32)

    out = pl.pallas_call(
        fused_cnn_kernel,
        out_shape=jax.ShapeDtypeStruct((n_pad, 10), jnp.float32),
        grid=(n_pad // bt,),
        in_specs=[
            pl.BlockSpec((14, bt, 28), lambda i: (0, i, 0)),
            pl.BlockSpec((14, bt, 28), lambda i: (0, i, 0)),
            pl.BlockSpec((3, 28, 512), lambda i: (0, 0, 0)),   # resident
            pl.BlockSpec((1, 512), lambda i: (0, 0)),          # resident
            pl.BlockSpec((13, 256, 64), lambda i: (0, 0, 0)),  # resident
            pl.BlockSpec((1, 64), lambda i: (0, 0)),           # resident
            pl.BlockSpec((64, 10), lambda i: (0, 0)),          # resident
            pl.BlockSpec((1, 10), lambda i: (0, 0)),           # resident
        ],
        out_specs=pl.BlockSpec((bt, 10), lambda i: (i, 0)),
        compiler_params=pltpu.CompilerParams(
            dimension_semantics=("parallel",),
            vmem_limit_bytes=48 * 1024 * 1024),
    )(img_e, img_o, a_all, bc, w1, b1, w2, b2)
    return out[:n]


# ------------------------ reference & parameter init ----------------------- #

def cnn_reference(x, params):
    conv_w, conv_b, fc1_w, fc1_b, fc2_w, fc2_b = params
    with jax.default_matmul_precision("highest"):
        y = lax.conv_general_dilated(
            x, conv_w, window_strides=(1, 1), padding="VALID",
            dimension_numbers=("NCHW", "OIHW", "NCHW"))
        y = y + conv_b.reshape(1, 16, 1, 1)
        y = jnp.maximum(y, 0.0)
        y = lax.reduce_window(y, -jnp.inf, lax.max,
                              (1, 1, 2, 2), (1, 1, 2, 2), "VALID")
        f = y.reshape(x.shape[0], -1)
        h = jnp.maximum(f @ fc1_w.T + fc1_b, 0.0)
        return h @ fc2_w.T + fc2_b


def init_params(key):
    """Deterministic PyTorch-shaped parameters: U(-1/sqrt(fan_in), 1/sqrt(fan_in))."""
    ks = jax.random.split(key, 6)

    def u(k, shape, fan_in):
        bound = 1.0 / (fan_in ** 0.5)
        return jax.random.uniform(k, shape, jnp.float32, -bound, bound)

    conv_w = u(ks[0], (16, 1, 3, 3), 9)
    conv_b = u(ks[1], (16,), 9)
    fc1_w = u(ks[2], (64, 16 * 13 * 13), 16 * 13 * 13)
    fc1_b = u(ks[3], (64,), 16 * 13 * 13)
    fc2_w = u(ks[4], (10, 64), 64)
    fc2_b = u(ks[5], (10,), 64)
    return conv_w, conv_b, fc1_w, fc1_b, fc2_w, fc2_b


if __name__ == "__main__":
    key = jax.random.PRNGKey(0)
    k_param, k_x = jax.random.split(key)
    params = init_params(k_param)

    # batch=2, single-channel 28x28 images (shape implied by Linear(16*13*13, 64))
    x = jax.random.normal(k_x, (2, 1, 28, 28), dtype=jnp.float32)

    out = jax.jit(cnn_forward)(x, params)
    out = jax.block_until_ready(out)

    ref = cnn_reference(x, params)
    assert out.shape == (2, 10) and out.dtype == jnp.float32
    assert jnp.allclose(out, ref, atol=2e-2, rtol=2e-2), (
        f"mismatch: max abs diff = {float(jnp.max(jnp.abs(out - ref)))}")

    print("KERNEL_OK")
</pallas_src>

<mosaic_0001>
module attributes {stable_mosaic.version = 11 : i64} {
  func.func @fused_cnn_kernel(%arg0: i32, %arg1: memref<14x16x28xbf16, #tpu.memory_space<vmem>>, %arg2: memref<14x16x28xbf16, #tpu.memory_space<vmem>>, %arg3: memref<3x28x512xbf16, #tpu.memory_space<vmem>>, %arg4: memref<1x512xf32, #tpu.memory_space<vmem>>, %arg5: memref<13x256x64xbf16, #tpu.memory_space<vmem>>, %arg6: memref<1x64xf32, #tpu.memory_space<vmem>>, %arg7: memref<64x10xbf16, #tpu.memory_space<vmem>>, %arg8: memref<1x10xf32, #tpu.memory_space<vmem>>, %arg9: memref<16x10xf32, #tpu.memory_space<vmem>>) attributes {dimension_semantics = [#tpu.dimension_semantics<parallel>], iteration_bounds = array<i64: 1>, scalar_prefetch = 0 : i64, scratch_operands = 0 : i64, tpu.core_type = #tpu.core_type<tc>, window_params = [{transform_indices = @transform_0, window_bounds = array<i64: 14, 16, 28>}, {transform_indices = @transform_1, window_bounds = array<i64: 14, 16, 28>}, {pipeline_mode = #tpu.pipeline_mode<synchronous>, transform_indices = @transform_2, window_bounds = array<i64: 3, 28, 512>}, {pipeline_mode = #tpu.pipeline_mode<synchronous>, transform_indices = @transform_3, window_bounds = array<i64: 1, 512>}, {pipeline_mode = #tpu.pipeline_mode<synchronous>, transform_indices = @transform_4, window_bounds = array<i64: 13, 256, 64>}, {pipeline_mode = #tpu.pipeline_mode<synchronous>, transform_indices = @transform_5, window_bounds = array<i64: 1, 64>}, {pipeline_mode = #tpu.pipeline_mode<synchronous>, transform_indices = @transform_6, window_bounds = array<i64: 64, 10>}, {pipeline_mode = #tpu.pipeline_mode<synchronous>, transform_indices = @transform_7, window_bounds = array<i64: 1, 10>}, {transform_indices = @transform_8, window_bounds = array<i64: 16, 10>}]} {
    %c0 = arith.constant 0 : index
    %c0_0 = arith.constant 0 : index
    %c0_1 = arith.constant 0 : index
    %0 = vector.load %arg1[%c0, %c0_0, %c0_1] : memref<14x16x28xbf16, #tpu.memory_space<vmem>>, vector<14x16x28xbf16>
    %c0_2 = arith.constant 0 : index
    %c0_3 = arith.constant 0 : index
    %c0_4 = arith.constant 0 : index
    %1 = vector.load %arg2[%c0_2, %c0_3, %c0_4] : memref<14x16x28xbf16, #tpu.memory_space<vmem>>, vector<14x16x28xbf16>
    %2 = vector.extract_strided_slice %0 {offsets = [0, 0, 0], sizes = [13, 16, 28], strides = [1, 1, 1]} : vector<14x16x28xbf16> to vector<13x16x28xbf16>
    %3 = vector.shape_cast %2 : vector<13x16x28xbf16> to vector<208x28xbf16>
    %4 = vector.extract_strided_slice %1 {offsets = [0, 0, 0], sizes = [13, 16, 28], strides = [1, 1, 1]} : vector<14x16x28xbf16> to vector<13x16x28xbf16>
    %5 = vector.shape_cast %4 : vector<13x16x28xbf16> to vector<208x28xbf16>
    %6 = vector.extract_strided_slice %0 {offsets = [1, 0, 0], sizes = [13, 16, 28], strides = [1, 1, 1]} : vector<14x16x28xbf16> to vector<13x16x28xbf16>
    %7 = vector.shape_cast %6 : vector<13x16x28xbf16> to vector<208x28xbf16>
    %8 = vector.extract_strided_slice %1 {offsets = [1, 0, 0], sizes = [13, 16, 28], strides = [1, 1, 1]} : vector<14x16x28xbf16> to vector<13x16x28xbf16>
    %9 = vector.shape_cast %8 : vector<13x16x28xbf16> to vector<208x28xbf16>
    %c0_5 = arith.constant 0 : index
    %c0_6 = arith.constant 0 : index
    %c0_7 = arith.constant 0 : index
    %10 = vector.load %arg3[%c0_5, %c0_6, %c0_7] : memref<3x28x512xbf16, #tpu.memory_space<vmem>>, vector<1x28x512xbf16>
    %11 = vector.shape_cast %10 : vector<1x28x512xbf16> to vector<28x512xbf16>
    %c1 = arith.constant 1 : index
    %c0_8 = arith.constant 0 : index
    %c0_9 = arith.constant 0 : index
    %12 = vector.load %arg3[%c1, %c0_8, %c0_9] : memref<3x28x512xbf16, #tpu.memory_space<vmem>>, vector<1x28x512xbf16>
    %13 = vector.shape_cast %12 : vector<1x28x512xbf16> to vector<28x512xbf16>
    %c2 = arith.constant 2 : index
    %c0_10 = arith.constant 0 : index
    %c0_11 = arith.constant 0 : index
    %14 = vector.load %arg3[%c2, %c0_10, %c0_11] : memref<3x28x512xbf16, #tpu.memory_space<vmem>>, vector<1x28x512xbf16>
    %15 = vector.shape_cast %14 : vector<1x28x512xbf16> to vector<28x512xbf16>
    %cst = arith.constant dense<0.000000e+00> : vector<208x512xf32>
    %16 = tpu.matmul %3, %11, %cst {dimension_numbers = #tpu.dot_dimension_numbers<[1], [0], [0], [1], [0, 0, 1, 1], [], []>} : vector<208x28xbf16>, vector<28x512xbf16>, vector<208x512xf32> -> vector<208x512xf32>
    %cst_12 = arith.constant dense<0.000000e+00> : vector<208x512xf32>
    %17 = tpu.matmul %5, %13, %cst_12 {dimension_numbers = #tpu.dot_dimension_numbers<[1], [0], [0], [1], [0, 0, 1, 1], [], []>} : vector<208x28xbf16>, vector<28x512xbf16>, vector<208x512xf32> -> vector<208x512xf32>
    %18 = arith.addf %16, %17 : vector<208x512xf32>
    %cst_13 = arith.constant dense<0.000000e+00> : vector<208x512xf32>
    %19 = tpu.matmul %7, %15, %cst_13 {dimension_numbers = #tpu.dot_dimension_numbers<[1], [0], [0], [1], [0, 0, 1, 1], [], []>} : vector<208x28xbf16>, vector<28x512xbf16>, vector<208x512xf32> -> vector<208x512xf32>
    %20 = arith.addf %18, %19 : vector<208x512xf32>
    %cst_14 = arith.constant dense<0.000000e+00> : vector<208x512xf32>
    %21 = tpu.matmul %5, %11, %cst_14 {dimension_numbers = #tpu.dot_dimension_numbers<[1], [0], [0], [1], [0, 0, 1, 1], [], []>} : vector<208x28xbf16>, vector<28x512xbf16>, vector<208x512xf32> -> vector<208x512xf32>
    %cst_15 = arith.constant dense<0.000000e+00> : vector<208x512xf32>
    %22 = tpu.matmul %7, %13, %cst_15 {dimension_numbers = #tpu.dot_dimension_numbers<[1], [0], [0], [1], [0, 0, 1, 1], [], []>} : vector<208x28xbf16>, vector<28x512xbf16>, vector<208x512xf32> -> vector<208x512xf32>
    %23 = arith.addf %21, %22 : vector<208x512xf32>
    %cst_16 = arith.constant dense<0.000000e+00> : vector<208x512xf32>
    %24 = tpu.matmul %9, %15, %cst_16 {dimension_numbers = #tpu.dot_dimension_numbers<[1], [0], [0], [1], [0, 0, 1, 1], [], []>} : vector<208x28xbf16>, vector<28x512xbf16>, vector<208x512xf32> -> vector<208x512xf32>
    %25 = arith.addf %23, %24 : vector<208x512xf32>
    %26 = arith.maximumf %20, %25 : vector<208x512xf32>
    %c0_17 = arith.constant 0 : index
    %c0_18 = arith.constant 0 : index
    %27 = vector.load %arg4[%c0_17, %c0_18] : memref<1x512xf32, #tpu.memory_space<vmem>>, vector<1x512xf32>
    %28 = vector.broadcast %27 : vector<1x512xf32> to vector<208x512xf32>
    %29 = arith.addf %26, %28 : vector<208x512xf32>
    %cst_19 = arith.constant 0.000000e+00 : f32
    %30 = vector.broadcast %cst_19 : f32 to vector<208x512xf32>
    %31 = arith.maximumf %29, %30 : vector<208x512xf32>
    %32 = vector.extract_strided_slice %31 {offsets = [0, 0], sizes = [208, 256], strides = [1, 1]} : vector<208x512xf32> to vector<208x256xf32>
    %33 = vector.extract_strided_slice %31 {offsets = [0, 256], sizes = [208, 256], strides = [1, 1]} : vector<208x512xf32> to vector<208x256xf32>
    %34 = arith.maximumf %32, %33 : vector<208x256xf32>
    %35 = arith.truncf %34 : vector<208x256xf32> to vector<208x256xbf16>
    %c0_20 = arith.constant 0 : index
    %c0_21 = arith.constant 0 : index
    %c0_22 = arith.constant 0 : index
    %36 = vector.load %arg5[%c0_20, %c0_21, %c0_22] : memref<13x256x64xbf16, #tpu.memory_space<vmem>>, vector<13x256x64xbf16>
    %cst_23 = arith.constant 0.000000e+00 : f32
    %37 = vector.broadcast %cst_23 : f32 to vector<16x64xf32>
    %38 = vector.extract_strided_slice %35 {offsets = [0, 0], sizes = [16, 256], strides = [1, 1]} : vector<208x256xbf16> to vector<16x256xbf16>
    %39 = vector.extract_strided_slice %36 {offsets = [0, 0, 0], sizes = [1, 256, 64], strides = [1, 1, 1]} : vector<13x256x64xbf16> to vector<1x256x64xbf16>
    %40 = vector.shape_cast %39 : vector<1x256x64xbf16> to vector<256x64xbf16>
    %cst_24 = arith.constant dense<0.000000e+00> : vector<16x64xf32>
    %41 = tpu.matmul %38, %40, %cst_24 {dimension_numbers = #tpu.dot_dimension_numbers<[1], [0], [0], [1], [0, 0, 1, 1], [], []>} : vector<16x256xbf16>, vector<256x64xbf16>, vector<16x64xf32> -> vector<16x64xf32>
    %42 = arith.addf %37, %41 : vector<16x64xf32>
    %43 = vector.extract_strided_slice %35 {offsets = [16, 0], sizes = [16, 256], strides = [1, 1]} : vector<208x256xbf16> to vector<16x256xbf16>
    %44 = vector.extract_strided_slice %36 {offsets = [1, 0, 0], sizes = [1, 256, 64], strides = [1, 1, 1]} : vector<13x256x64xbf16> to vector<1x256x64xbf16>
    %45 = vector.shape_cast %44 : vector<1x256x64xbf16> to vector<256x64xbf16>
    %cst_25 = arith.constant dense<0.000000e+00> : vector<16x64xf32>
    %46 = tpu.matmul %43, %45, %cst_25 {dimension_numbers = #tpu.dot_dimension_numbers<[1], [0], [0], [1], [0, 0, 1, 1], [], []>} : vector<16x256xbf16>, vector<256x64xbf16>, vector<16x64xf32> -> vector<16x64xf32>
    %47 = arith.addf %42, %46 : vector<16x64xf32>
    %48 = vector.extract_strided_slice %35 {offsets = [32, 0], sizes = [16, 256], strides = [1, 1]} : vector<208x256xbf16> to vector<16x256xbf16>
    %49 = vector.extract_strided_slice %36 {offsets = [2, 0, 0], sizes = [1, 256, 64], strides = [1, 1, 1]} : vector<13x256x64xbf16> to vector<1x256x64xbf16>
    %50 = vector.shape_cast %49 : vector<1x256x64xbf16> to vector<256x64xbf16>
    %cst_26 = arith.constant dense<0.000000e+00> : vector<16x64xf32>
    %51 = tpu.matmul %48, %50, %cst_26 {dimension_numbers = #tpu.dot_dimension_numbers<[1], [0], [0], [1], [0, 0, 1, 1], [], []>} : vector<16x256xbf16>, vector<256x64xbf16>, vector<16x64xf32> -> vector<16x64xf32>
    %52 = arith.addf %47, %51 : vector<16x64xf32>
    %53 = vector.extract_strided_slice %35 {offsets = [48, 0], sizes = [16, 256], strides = [1, 1]} : vector<208x256xbf16> to vector<16x256xbf16>
    %54 = vector.extract_strided_slice %36 {offsets = [3, 0, 0], sizes = [1, 256, 64], strides = [1, 1, 1]} : vector<13x256x64xbf16> to vector<1x256x64xbf16>
    %55 = vector.shape_cast %54 : vector<1x256x64xbf16> to vector<256x64xbf16>
    %cst_27 = arith.constant dense<0.000000e+00> : vector<16x64xf32>
    %56 = tpu.matmul %53, %55, %cst_27 {dimension_numbers = #tpu.dot_dimension_numbers<[1], [0], [0], [1], [0, 0, 1, 1], [], []>} : vector<16x256xbf16>, vector<256x64xbf16>, vector<16x64xf32> -> vector<16x64xf32>
    %57 = arith.addf %52, %56 : vector<16x64xf32>
    %58 = vector.extract_strided_slice %35 {offsets = [64, 0], sizes = [16, 256], strides = [1, 1]} : vector<208x256xbf16> to vector<16x256xbf16>
    %59 = vector.extract_strided_slice %36 {offsets = [4, 0, 0], sizes = [1, 256, 64], strides = [1, 1, 1]} : vector<13x256x64xbf16> to vector<1x256x64xbf16>
    %60 = vector.shape_cast %59 : vector<1x256x64xbf16> to vector<256x64xbf16>
    %cst_28 = arith.constant dense<0.000000e+00> : vector<16x64xf32>
    %61 = tpu.matmul %58, %60, %cst_28 {dimension_numbers = #tpu.dot_dimension_numbers<[1], [0], [0], [1], [0, 0, 1, 1], [], []>} : vector<16x256xbf16>, vector<256x64xbf16>, vector<16x64xf32> -> vector<16x64xf32>
    %62 = arith.addf %57, %61 : vector<16x64xf32>
    %63 = vector.extract_strided_slice %35 {offsets = [80, 0], sizes = [16, 256], strides = [1, 1]} : vector<208x256xbf16> to vector<16x256xbf16>
    %64 = vector.extract_strided_slice %36 {offsets = [5, 0, 0], sizes = [1, 256, 64], strides = [1, 1, 1]} : vector<13x256x64xbf16> to vector<1x256x64xbf16>
    %65 = vector.shape_cast %64 : vector<1x256x64xbf16> to vector<256x64xbf16>
    %cst_29 = arith.constant dense<0.000000e+00> : vector<16x64xf32>
    %66 = tpu.matmul %63, %65, %cst_29 {dimension_numbers = #tpu.dot_dimension_numbers<[1], [0], [0], [1], [0, 0, 1, 1], [], []>} : vector<16x256xbf16>, vector<256x64xbf16>, vector<16x64xf32> -> vector<16x64xf32>
    %67 = arith.addf %62, %66 : vector<16x64xf32>
    %68 = vector.extract_strided_slice %35 {offsets = [96, 0], sizes = [16, 256], strides = [1, 1]} : vector<208x256xbf16> to vector<16x256xbf16>
    %69 = vector.extract_strided_slice %36 {offsets = [6, 0, 0], sizes = [1, 256, 64], strides = [1, 1, 1]} : vector<13x256x64xbf16> to vector<1x256x64xbf16>
    %70 = vector.shape_cast %69 : vector<1x256x64xbf16> to vector<256x64xbf16>
    %cst_30 = arith.constant dense<0.000000e+00> : vector<16x64xf32>
    %71 = tpu.matmul %68, %70, %cst_30 {dimension_numbers = #tpu.dot_dimension_numbers<[1], [0], [0], [1], [0, 0, 1, 1], [], []>} : vector<16x256xbf16>, vector<256x64xbf16>, vector<16x64xf32> -> vector<16x64xf32>
    %72 = arith.addf %67, %71 : vector<16x64xf32>
    %73 = vector.extract_strided_slice %35 {offsets = [112, 0], sizes = [16, 256], strides = [1, 1]} : vector<208x256xbf16> to vector<16x256xbf16>
    %74 = vector.extract_strided_slice %36 {offsets = [7, 0, 0], sizes = [1, 256, 64], strides = [1, 1, 1]} : vector<13x256x64xbf16> to vector<1x256x64xbf16>
    %75 = vector.shape_cast %74 : vector<1x256x64xbf16> to vector<256x64xbf16>
    %cst_31 = arith.constant dense<0.000000e+00> : vector<16x64xf32>
    %76 = tpu.matmul %73, %75, %cst_31 {dimension_numbers = #tpu.dot_dimension_numbers<[1], [0], [0], [1], [0, 0, 1, 1], [], []>} : vector<16x256xbf16>, vector<256x64xbf16>, vector<16x64xf32> -> vector<16x64xf32>
    %77 = arith.addf %72, %76 : vector<16x64xf32>
    %78 = vector.extract_strided_slice %35 {offsets = [128, 0], sizes = [16, 256], strides = [1, 1]} : vector<208x256xbf16> to vector<16x256xbf16>
    %79 = vector.extract_strided_slice %36 {offsets = [8, 0, 0], sizes = [1, 256, 64], strides = [1, 1, 1]} : vector<13x256x64xbf16> to vector<1x256x64xbf16>
    %80 = vector.shape_cast %79 : vector<1x256x64xbf16> to vector<256x64xbf16>
    %cst_32 = arith.constant dense<0.000000e+00> : vector<16x64xf32>
    %81 = tpu.matmul %78, %80, %cst_32 {dimension_numbers = #tpu.dot_dimension_numbers<[1], [0], [0], [1], [0, 0, 1, 1], [], []>} : vector<16x256xbf16>, vector<256x64xbf16>, vector<16x64xf32> -> vector<16x64xf32>
    %82 = arith.addf %77, %81 : vector<16x64xf32>
    %83 = vector.extract_strided_slice %35 {offsets = [144, 0], sizes = [16, 256], strides = [1, 1]} : vector<208x256xbf16> to vector<16x256xbf16>
    %84 = vector.extract_strided_slice %36 {offsets = [9, 0, 0], sizes = [1, 256, 64], strides = [1, 1, 1]} : vector<13x256x64xbf16> to vector<1x256x64xbf16>
    %85 = vector.shape_cast %84 : vector<1x256x64xbf16> to vector<256x64xbf16>
    %cst_33 = arith.constant dense<0.000000e+00> : vector<16x64xf32>
    %86 = tpu.matmul %83, %85, %cst_33 {dimension_numbers = #tpu.dot_dimension_numbers<[1], [0], [0], [1], [0, 0, 1, 1], [], []>} : vector<16x256xbf16>, vector<256x64xbf16>, vector<16x64xf32> -> vector<16x64xf32>
    %87 = arith.addf %82, %86 : vector<16x64xf32>
    %88 = vector.extract_strided_slice %35 {offsets = [160, 0], sizes = [16, 256], strides = [1, 1]} : vector<208x256xbf16> to vector<16x256xbf16>
    %89 = vector.extract_strided_slice %36 {offsets = [10, 0, 0], sizes = [1, 256, 64], strides = [1, 1, 1]} : vector<13x256x64xbf16> to vector<1x256x64xbf16>
    %90 = vector.shape_cast %89 : vector<1x256x64xbf16> to vector<256x64xbf16>
    %cst_34 = arith.constant dense<0.000000e+00> : vector<16x64xf32>
    %91 = tpu.matmul %88, %90, %cst_34 {dimension_numbers = #tpu.dot_dimension_numbers<[1], [0], [0], [1], [0, 0, 1, 1], [], []>} : vector<16x256xbf16>, vector<256x64xbf16>, vector<16x64xf32> -> vector<16x64xf32>
    %92 = arith.addf %87, %91 : vector<16x64xf32>
    %93 = vector.extract_strided_slice %35 {offsets = [176, 0], sizes = [16, 256], strides = [1, 1]} : vector<208x256xbf16> to vector<16x256xbf16>
    %94 = vector.extract_strided_slice %36 {offsets = [11, 0, 0], sizes = [1, 256, 64], strides = [1, 1, 1]} : vector<13x256x64xbf16> to vector<1x256x64xbf16>
    %95 = vector.shape_cast %94 : vector<1x256x64xbf16> to vector<256x64xbf16>
    %cst_35 = arith.constant dense<0.000000e+00> : vector<16x64xf32>
    %96 = tpu.matmul %93, %95, %cst_35 {dimension_numbers = #tpu.dot_dimension_numbers<[1], [0], [0], [1], [0, 0, 1, 1], [], []>} : vector<16x256xbf16>, vector<256x64xbf16>, vector<16x64xf32> -> vector<16x64xf32>
    %97 = arith.addf %92, %96 : vector<16x64xf32>
    %98 = vector.extract_strided_slice %35 {offsets = [192, 0], sizes = [16, 256], strides = [1, 1]} : vector<208x256xbf16> to vector<16x256xbf16>
    %99 = vector.extract_strided_slice %36 {offsets = [12, 0, 0], sizes = [1, 256, 64], strides = [1, 1, 1]} : vector<13x256x64xbf16> to vector<1x256x64xbf16>
    %100 = vector.shape_cast %99 : vector<1x256x64xbf16> to vector<256x64xbf16>
    %cst_36 = arith.constant dense<0.000000e+00> : vector<16x64xf32>
    %101 = tpu.matmul %98, %100, %cst_36 {dimension_numbers = #tpu.dot_dimension_numbers<[1], [0], [0], [1], [0, 0, 1, 1], [], []>} : vector<16x256xbf16>, vector<256x64xbf16>, vector<16x64xf32> -> vector<16x64xf32>
    %102 = arith.addf %97, %101 : vector<16x64xf32>
    %c0_37 = arith.constant 0 : index
    %c0_38 = arith.constant 0 : index
    %103 = vector.load %arg6[%c0_37, %c0_38] : memref<1x64xf32, #tpu.memory_space<vmem>>, vector<1x64xf32>
    %104 = vector.broadcast %103 : vector<1x64xf32> to vector<16x64xf32>
    %105 = arith.addf %102, %104 : vector<16x64xf32>
    %cst_39 = arith.constant 0.000000e+00 : f32
    %106 = vector.broadcast %cst_39 : f32 to vector<16x64xf32>
    %107 = arith.maximumf %105, %106 : vector<16x64xf32>
    %108 = arith.truncf %107 : vector<16x64xf32> to vector<16x64xbf16>
    %c0_40 = arith.constant 0 : index
    %c0_41 = arith.constant 0 : index
    %109 = vector.load %arg7[%c0_40, %c0_41] : memref<64x10xbf16, #tpu.memory_space<vmem>>, vector<64x10xbf16>
    %cst_42 = arith.constant dense<0.000000e+00> : vector<16x10xf32>
    %110 = tpu.matmul %108, %109, %cst_42 {dimension_numbers = #tpu.dot_dimension_numbers<[1], [0], [0], [1], [0, 0, 1, 1], [], []>} : vector<16x64xbf16>, vector<64x10xbf16>, vector<16x10xf32> -> vector<16x10xf32>
    %c0_43 = arith.constant 0 : index
    %c0_44 = arith.constant 0 : index
    %111 = vector.load %arg8[%c0_43, %c0_44] : memref<1x10xf32, #tpu.memory_space<vmem>>, vector<1x10xf32>
    %112 = vector.broadcast %111 : vector<1x10xf32> to vector<16x10xf32>
    %113 = arith.addf %110, %112 : vector<16x10xf32>
    %c0_45 = arith.constant 0 : index
    %c0_46 = arith.constant 0 : index
    %114 = vector.load %arg9[%c0_45, %c0_46] : memref<16x10xf32, #tpu.memory_space<vmem>>, vector<16x10xf32>
    tpu.vector_store %arg9[%c0_45, %c0_46], %113 {strides = array<i32>} : memref<16x10xf32, #tpu.memory_space<vmem>>, vector<16x10xf32>,
    return
  }
  func.func @transform_0(%arg0: i32) -> (i32, i32, i32) {
    %c0_i32 = arith.constant 0 : i32
    %c0_i32_0 = arith.constant 0 : i32
    %c0_i32_1 = arith.constant 0 : i32
    return %c0_i32, %arg0, %c0_i32_0 : i32, i32, i32
  }
  func.func @transform_1(%arg0: i32) -> (i32, i32, i32) {
    %c0_i32 = arith.constant 0 : i32
    %c0_i32_0 = arith.constant 0 : i32
    %c0_i32_1 = arith.constant 0 : i32
    return %c0_i32, %arg0, %c0_i32_0 : i32, i32, i32
  }
  func.func @transform_2(%arg0: i32) -> (i32, i32, i32) {
    %c0_i32 = arith.constant 0 : i32
    %c0_i32_0 = arith.constant 0 : i32
    %c0_i32_1 = arith.constant 0 : i32
    %c0_i32_2 = arith.constant 0 : i32
    return %c0_i32, %c0_i32_0, %c0_i32_1 : i32, i32, i32
  }
  func.func @transform_3(%arg0: i32) -> (i32, i32) {
    %c0_i32 = arith.constant 0 : i32
    %c0_i32_0 = arith.constant 0 : i32
    %c0_i32_1 = arith.constant 0 : i32
    return %c0_i32, %c0_i32_0 : i32, i32
  }
  func.func @transform_4(%arg0: i32) -> (i32, i32, i32) {
    %c0_i32 = arith.constant 0 : i32
    %c0_i32_0 = arith.constant 0 : i32
    %c0_i32_1 = arith.constant 0 : i32
    %c0_i32_2 = arith.constant 0 : i32
    return %c0_i32, %c0_i32_0, %c0_i32_1 : i32, i32, i32
  }
  func.func @transform_5(%arg0: i32) -> (i32, i32) {
    %c0_i32 = arith.constant 0 : i32
    %c0_i32_0 = arith.constant 0 : i32
    %c0_i32_1 = arith.constant 0 : i32
    return %c0_i32, %c0_i32_0 : i32, i32
  }
  func.func @transform_6(%arg0: i32) -> (i32, i32) {
    %c0_i32 = arith.constant 0 : i32
    %c0_i32_0 = arith.constant 0 : i32
    %c0_i32_1 = arith.constant 0 : i32
    return %c0_i32, %c0_i32_0 : i32, i32
  }
  func.func @transform_7(%arg0: i32) -> (i32, i32) {
    %c0_i32 = arith.constant 0 : i32
    %c0_i32_0 = arith.constant 0 : i32
    %c0_i32_1 = arith.constant 0 : i32
    return %c0_i32, %c0_i32_0 : i32, i32
  }
  func.func @transform_8(%arg0: i32) -> (i32, i32) {
    %c0_i32 = arith.constant 0 : i32
    %c0_i32_0 = arith.constant 0 : i32
    return %arg0, %c0_i32 : i32, i32
  }
}

</mosaic_0001>

<bundles_post_ra>
// kernel: tile.13
= control target key start
LH: loop header
LB: loop body
LE: loop exit
PB: predicated region body
PF: predicated region fallthrough
CT: control target
= control target key end

     0   :  { %s28_s0 = inlined_call_operand.vmem [shape: f32[16], index: 0, kind: input, shape index: {}]   ;;  %s29_s1 = inlined_call_operand.vmem [shape: f32[13,16], index: 1, kind: output, shape index: {}]  }
   0x1   :  { %v4_v0 = vld [vmem:[%s28_s0] ss:$0 sm:$0xff] }
   0x2   :  { %5 = vst [vmem:[%s29_s1] sm:$0xff] %v4_v0  ;;  %8 = vst [vmem:[%s29_s1 + $0x8] sm:$0xff] %v4_v0 }

// kernel: tile.14
= control target key start
LH: loop header
LB: loop body
LE: loop exit
PB: predicated region body
PF: predicated region fallthrough
CT: control target
= control target key end

     0   :  { %s72_s10 = smov 112   ;;  %s73_s11 = smov 80   ;;  %vm4_vm0 = vcmask 130048   ;;  %vm10_vm1 = vcmask 1048448   ;;  %vm16_vm2 = vcmask 917248   ;;  %vm22_vm3 = vcmask 786048   ;;  %s116_s0 = inlined_call_operand.vmem [shape: f32[13,16], index: 0, kind: input, shape index: {}]   ;;  %s117_s1 = inlined_call_operand.vmem [shape: f32[208], index: 1, kind: output, shape index: {}]  }
   0x1   :  { %v58_v0 = vld [vmem:[%s116_s0 + $0x7] sm:$0x1]   ;;  %v60_v1 = vld [vmem:[%s116_s0 + $0x5] sm:$0x1]   ;;  %s25_s12 = smov 3  ;;  %s32_s17 = smov 3 }
   0x2   :  { %8 = vrot.lane.b32.xlu0 %v58_v0, %s72_s10  ;;  %20 = vrot.lane.b32.xlu1 %v60_v1, %s73_s11  ;;  %v59_v2 = vld [vmem:[%s116_s0 + $0x6] sm:$0x1]   ;;  %s39_s18 = smov 3  ;;  %s74_s19 = smov 96   ;;  %vm29_vm4 = vcmask 654848   ;;  %vm36_vm5 = vcmask 523648  }
   0x3   :  { %v61_v3 = vld [vmem:[%s116_s0 + $0x4] ss:$8 sm:%s25_s12]   ;;  %s75_s20 = smov 64   ;;  %v62_v4 = vld [vmem:[%s116_s0 + $0x3] ss:$8 sm:%s32_s17]   ;;  %s2_s23 = smov 3 }
   0x4   :  { %v63_v5 = vld [vmem:[%s116_s0 + $0x2] ss:$8 sm:%s39_s18]   ;;  %v3_v6 = vld [vmem:[%s116_s0] ss:$8 sm:%s2_s23]   ;;  %s46_s28 = smov 3  ;;  %s76_s29 = smov 48  }
   0x5   :  { %5 = vst.msk [vmem:[#allocation0] sm:$0x3] %vm4_vm0, %v3_v6   ;;  %s77_s30 = smov 32   ;;  %v64_v7 = vld [vmem:[%s116_s0 + $0x1] ss:$8 sm:%s46_s28]   ;;  %s78_s0 = smov 16  }
   0x6   :  { %14 = vrot.lane.b32.xlu0 %v59_v2, %s74_s19  ;;  %27 = vrot.lane.b32.xlu1 %v61_v3, %s75_s20  ;;  %vm43_vm6 = vcmask 392448   ;;  %vm50_vm7 = vcmask 261248  }
   0xa   :  { %34 = vrot.lane.b32.xlu0 %v62_v4, %s76_s29  ;;  %41 = vrot.lane.b32.xlu1 %v63_v5, %s77_s30 }
   0xe   :  { %48 = vrot.lane.b32.xlu0 %v64_v7, %s78_s0 }
  0x74   :  { %v9_v8 = vpop.permute.xlu0 %8   ;;  %v21_v9 = vpop.permute.xlu1 %20  }
  0x75   :  { %11 = vst.msk [vmem:[#allocation0] sm:$0x1] %vm10_vm1, %v9_v8  }
  0x78   :  { %v15_v10 = vpop.permute.xlu0 %14   ;;  %v28_v11 = vpop.permute.xlu1 %27  }
  0x79   :  { %17 = vst.msk [vmem:[#allocation0] sm:$0x1] %vm16_vm2, %v15_v10  }
  0x7a   :  { %23 = vst.msk [vmem:[#allocation0] sm:$0x1] %vm22_vm3, %v21_v9  }
  0x7b   :  { %30 = vst.msk [vmem:[#allocation0] sm:$0x3] %vm29_vm4, %v28_v11  }
  0x7c   :  { %v35_v12 = vpop.permute.xlu0 %34   ;;  %v42_v13 = vpop.permute.xlu1 %41  }
  0x7d   :  { %37 = vst.msk [vmem:[#allocation0] sm:$0x3] %vm36_vm5, %v35_v12  }
  0x7e   :  { %44 = vst.msk [vmem:[#allocation0] sm:$0x3] %vm43_vm6, %v42_v13  }
  0x80   :  { %v49_v14 = vpop.permute.xlu0 %48  }
  0x81   :  { %51 = vst.msk [vmem:[#allocation0] sm:$0x3] %vm50_vm7, %v49_v14  }
  0x88   :  { %v55_v15 = vld [vmem:[#allocation0] sm:$0x3] }
  0x89   :  { %57 = vst [vmem:[%s117_s1] sm:$0x3] %v55_v15 }

// kernel: cnn_forward.1
= control target key start
LH: loop header
LB: loop body
LE: loop exit
PB: predicated region body
PF: predicated region fallthrough
CT: control target
= control target key end

     0   :  { %v9260_v1 = vmov 0   ;;  %vm253_vm0 = vcmask 1045504   ;;  %vm213_vm1 = vcmask 228352   ;;  %vm6847_vm2 = vmmov 0   ;;  %s9237_s2 = inlined_call_operand.vmem [shape: bf16[3,28,512], index: 2, kind: input, shape index: {}]   ;;  %s9238_s1 = inlined_call_operand.vmem [shape: bf16[14,16,28], index: 1, kind: input, shape index: {}]   ;;  %s9239_s0 = inlined_call_operand.vmem [shape: bf16[14,16,28], index: 0, kind: input, shape index: {}]   ;;  %s9240_s4 = inlined_call_operand.vmem [shape: bf16[13,256,64], index: 4, kind: input, shape index: {}]   ;;  %s9241_s3 = inlined_call_operand.vmem [shape: f32[1,512], index: 3, kind: input, shape index: {}]   ;;  %s9242_s6 = inlined_call_operand.vmem [shape: bf16[64,10], index: 6, kind: input, shape index: {}]   ;;  %s9243_s5 = inlined_call_operand.vmem [shape: f32[1,64], index: 5, kind: input, shape index: {}]   ;;  %s9244_s7 = inlined_call_operand.vmem [shape: f32[1,10], index: 7, kind: input, shape index: {}]   ;;  %s9245_s8 = inlined_call_operand.vmem [shape: f32[16,10], index: 8, kind: output, shape index: {}]  }
   0x1   :  { %v6896_v0 = vld [vmem:[%s9237_s2 + $0x44] ss:$16 sps:$4 sm:$0xff]   ;;  %298 = vmatprep.mubr.bf16.mxu0 %v9260_v1  ;;  %418 = vmatprep.mubr.bf16.mxu1 %v9260_v1  ;;  %v6903_v2 = vld [vmem:[%s9237_s2 + $0x40] ss:$16 sps:$4 sm:$0xff]   ;;  %v6937_v8 = vld [vmem:[%s9237_s2 + $0x48] ss:$16 sps:$4 sm:$0xff]  }
   0x2   :  { %266 = vmatprep.subr.bf16.mxu0 %v6896_v0  ;;  %6134 = vmatprep.subr.bf16.mxu1 %v6896_v0  ;;  %v6910_v3 = vld [vmem:[%s9237_s2 + $0x64] ss:$16 sps:$4 sm:$0x3f]   ;;  %v6562_v4 = vld [vmem:[%s9237_s2 + $0x60] ss:$16 sps:$4 sm:$0x3f]  }
   0x3   :  { %267 = vmatpush1.bf16.msra.mxu0 %v6903_v2  ;;  %6136 = vmatpush1.bf16.msra.mxu1 %v6903_v2  ;;  %v6922_v5 = vsel %vm253_vm0, %v6562_v4, 0  ;;  %v6927_v6 = vld [vmem:[%s9238_s1] sm:$0xff]   ;;  %v6942_v9 = vld [vmem:[%s9237_s2 + $0x4c] ss:$16 sps:$4 sm:$0xff]   ;;  %v6992_v17 = vld [vmem:[%s9237_s2 + $0x8] ss:$16 sps:$4 sm:$0xff]  }
   0x4   :  { %5417 = vmatprep.subr.msk.bf16.mxu0 %vm253_vm0, %v6910_v3  ;;  %6135 = vmatprep.subr.msk.bf16.mxu1 %vm253_vm0, %v6910_v3  ;;  %v6932_v7 = vld [vmem:[%s9238_s1 + $0x60] sm:$0xff]   ;;  %v6949_v10 = vld [vmem:[%s9237_s2 + $0x6c] ss:$16 sps:$4 sm:$0x3f]   ;;  %v7024_v22 = vld [vmem:[%s9238_s1 + $0x10] sm:$0xff]   ;;  %vm5328_vm3 = vcmask 523264  }
   0x5   :  { %v6570_v11 = vld [vmem:[%s9237_s2 + $0x68] ss:$16 sps:$4 sm:$0x3f]   ;;  %v6967_v13 = vld [vmem:[%s9237_s2 + $0xc] ss:$16 sps:$4 sm:$0xff]   ;;  %v7068_v28 = vld [vmem:[%s9238_s1 + $0x20] sm:$0xff]  }
   0x6   :  { %v6961_v12 = vsel %vm253_vm0, %v6570_v11, 0  ;;  %v6975_v14 = vld [vmem:[%s9237_s2] ss:$16 sps:$4 sm:$0xff]   ;;  %v6980_v15 = vld [vmem:[%s9237_s2 + $0x4] ss:$16 sps:$4 sm:$0xff]   ;;  %v6985_v16 = vld [vmem:[%s9238_s1 + $0x8] sm:$0xff]  }
   0x7   :  { %269 = vmatpush1.bf16.msra.mxu0 %v6922_v5  ;;  %6137 = vmatpush1.bf16.msra.mxu1 %v6922_v5  ;;  %v7003_v18 = vld [vmem:[%s9237_s2 + $0x2c] ss:$16 sps:$4 sm:$0x3f]   ;;  %v6586_v19 = vld [vmem:[%s9237_s2 + $0x28] ss:$16 sps:$4 sm:$0x3f]  }
   0x8   :  { %429 = vmatprep.subr.bf16.mxu1 %v6942_v9  ;;  %744 = vmatprep.subr.bf16.mxu0 %v6980_v15  ;;  %v7014_v20 = vsel %vm253_vm0, %v6586_v19, 0  ;;  %v7019_v21 = vld [vmem:[%s9237_s2 + $0x24] ss:$16 sps:$4 sm:$0x3f]   ;;  %v7050_v26 = vld [vmem:[%s9238_s1 + $0x18] sm:$0xff]   ;;  %v7079_v29 = vld [vmem:[%s9238_s1 + $0x28] sm:$0xff]  }
   0x9   :  { %v6590_v23 = vld [vmem:[%s9237_s2 + $0x20] ss:$16 sps:$4 sm:$0x3f]   ;;  %v7045_v25 = vld [vmem:[%s9237_s2 + $0x84] ss:$16 sps:$4 sm:$0xff]   ;;  %v7101_v31 = vld [vmem:[%s9238_s1 + $0x38] sm:$0xff]  }
   0xa   :  { %5418 = vmatmul.mubr.msk.bf16.vlgmr.msra.gmra.mrb[0].mxu0 %vm213_vm1, %v6927_v6  ;;  %5430 = vmatmul.mubr.msk.bf16.vlgmr.msra.gmra.mrb[0].mxu1 %vm213_vm1, %v6932_v7  ;;  %v7033_v24 = vsel %vm253_vm0, %v6590_v23, 0  ;;  %v7056_v27 = vld [vmem:[%s9237_s2 + $0x8c] ss:$16 sps:$4 sm:$0xff]   ;;  %v7090_v30 = vld [vmem:[%s9238_s1 + $0x30] sm:$0xff]   ;;  %v7112_v32 = vld [vmem:[%s9238_s1 + $0x40] sm:$0xff]   ;;  %vm5373_vm4 = vcmask 80896  }
   0xb   :  { %430 = vmatpush1.bf16.msra.mxu1 %v6937_v8  ;;  %308 = vmatprep.mubr.bf16.mxu0 %v9260_v1  ;;  %v7123_v33 = vld [vmem:[%s9238_s1 + $0x48] sm:$0xff]   ;;  %v7134_v34 = vld [vmem:[%s9238_s1 + $0x50] sm:$0xff]   ;;  %v7145_v35 = vld [vmem:[%s9238_s1 + $0x58] sm:$0xff]  }
   0xc   :  { %5431 = vmatprep.subr.msk.bf16.mxu1 %vm253_vm0, %v6949_v10  ;;  %461 = vmatprep.mubr.bf16.mxu1 %v9260_v1  ;;  %v6594_v36 = vld [vmem:[%s9239_s0] sm:$0xff]   ;;  %v7183_v41 = vld [vmem:[%s9239_s0 + $0x8] sm:$0xff]   ;;  %v7196_v42 = vld [vmem:[%s9239_s0 + $0x10] sm:$0xff]  }
   0xd   :  { %745 = vmatpush1.bf16.msra.mxu0 %v6975_v14  ;;  %v7159_v37 = vld [vmem:[%s9237_s2 + $0x80] ss:$16 sps:$4 sm:$0xff]   ;;  %v7164_v38 = vld [vmem:[%s9237_s2 + $0xa4] ss:$16 sps:$4 sm:$0x3f]   ;;  %v7225_v47 = vld [vmem:[%s9239_s0 + $0x18] sm:$0xff]  }
   0xe   :  { %5466 = vmatprep.subr.msk.bf16.mxu0 %vm253_vm0, %v7019_v21  ;;  %v6613_v39 = vld [vmem:[%s9237_s2 + $0xa0] ss:$16 sps:$4 sm:$0x3f]   ;;  %v7201_v43 = vld [vmem:[%s9237_s2 + $0x88] ss:$16 sps:$4 sm:$0xff]  }
   0xf   :  { %432 = vmatpush1.bf16.msra.mxu1 %v6961_v12  ;;  %v7178_v40 = vsel %vm253_vm0, %v6613_v39, 0  ;;  %v7206_v44 = vld [vmem:[%s9237_s2 + $0xac] ss:$16 sps:$4 sm:$0x3f]   ;;  %v7238_v48 = vld [vmem:[%s9239_s0 + $0x20] sm:$0xff]   ;;  %v7260_v50 = vld [vmem:[%s9239_s0 + $0x30] sm:$0xff]  }
  0x10   :  { %907 = vmatprep.subr.bf16.mxu1 %v6967_v13  ;;  %v6614_v45 = vld [vmem:[%s9237_s2 + $0xa8] ss:$16 sps:$4 sm:$0x3f]   ;;  %v7282_v52 = vld [vmem:[%s9239_s0 + $0x40] sm:$0xff]   ;;  %v7304_v54 = vld [vmem:[%s9239_s0 + $0x50] sm:$0xff]  }
  0x11   :  { %747 = vmatpush1.bf16.msra.mxu0 %v7033_v24  ;;  %v7220_v46 = vsel %vm253_vm0, %v6614_v45, 0  ;;  %v7249_v49 = vld [vmem:[%s9239_s0 + $0x28] sm:$0xff]   ;;  %v7271_v51 = vld [vmem:[%s9239_s0 + $0x38] sm:$0xff]   ;;  %v7326_v56 = vld [vmem:[%s9239_s0 + $0x60] sm:$0xff]  }
  0x12   :  { %5419 = vmatmul.mubr.msk.bf16.gmra.mrb[4].mxu0 %vm213_vm1, %v6985_v16  ;;  %5432 = vmatmul.mubr.msk.bf16.vlgmr.msra.gmra.mrb[4].mxu1 %vm213_vm1, %v6927_v6  ;;  %v7293_v53 = vld [vmem:[%s9239_s0 + $0x48] sm:$0xff]   ;;  %v7315_v55 = vld [vmem:[%s9239_s0 + $0x58] sm:$0xff]  }
  0x13   :  { %908 = vmatpush1.bf16.msra.mxu1 %v6992_v17  ;;  %318 = vmatprep.mubr.bf16.mxu0 %v9260_v1  ;;  %v7427_v61 = vld [vmem:[%s9239_s0 + $0x68] sm:$0xff]  }
  0x14   :  { %471 = vmatprep.mubr.bf16.mxu1 %v9260_v1  ;;  %5480 = vmatprep.subr.msk.bf16.mxu1 %vm253_vm0, %v7003_v18 }
  0x15   :  { %1126 = vmatprep.subr.bf16.mxu0 %v7045_v25 }
  0x17   :  { %910 = vmatpush1.bf16.msra.mxu1 %v7014_v20 }
  0x18   :  { %1289 = vmatprep.subr.bf16.mxu1 %v7056_v27 }
  0x1a   :  { %5420 = vmatmul.mubr.msk.bf16.gmra.mrb[8].mxu0 %vm213_vm1, %v7024_v22  ;;  %5433 = vmatmul.mubr.msk.bf16.gmra.mrb[8].mxu1 %vm213_vm1, %v6985_v16 }
  0x1b   :  { %328 = vmatprep.mubr.bf16.mxu0 %v9260_v1  ;;  %481 = vmatprep.mubr.bf16.mxu1 %v9260_v1 }
  0x22   :  { %5421 = vmatmul.mubr.msk.bf16.gmra.mrb[12].mxu0 %vm213_vm1, %v7050_v26  ;;  %5434 = vmatmul.mubr.msk.bf16.gmra.mrb[12].mxu1 %vm213_vm1, %v7024_v22 }
  0x23   :  { %338 = vmatprep.mubr.bf16.mxu0 %v9260_v1  ;;  %491 = vmatprep.mubr.bf16.mxu1 %v9260_v1 }
  0x2a   :  { %5422 = vmatmul.mubr.msk.bf16.gmra.mrb[16].mxu0 %vm213_vm1, %v7068_v28  ;;  %5435 = vmatmul.mubr.msk.bf16.gmra.mrb[16].mxu1 %vm213_vm1, %v7050_v26 }
  0x2b   :  { %348 = vmatprep.mubr.bf16.mxu0 %v9260_v1  ;;  %501 = vmatprep.mubr.bf16.mxu1 %v9260_v1 }
  0x32   :  { %5423 = vmatmul.mubr.msk.bf16.gmra.mrb[20].mxu0 %vm213_vm1, %v7079_v29  ;;  %5436 = vmatmul.mubr.msk.bf16.gmra.mrb[20].mxu1 %vm213_vm1, %v7068_v28 }
  0x33   :  { %358 = vmatprep.mubr.bf16.mxu0 %v9260_v1  ;;  %511 = vmatprep.mubr.bf16.mxu1 %v9260_v1 }
  0x3a   :  { %5424 = vmatmul.mubr.msk.bf16.gmra.mrb[24].mxu0 %vm213_vm1, %v7090_v30  ;;  %5437 = vmatmul.mubr.msk.bf16.gmra.mrb[24].mxu1 %vm213_vm1, %v7079_v29 }
  0x3b   :  { %368 = vmatprep.mubr.bf16.mxu0 %v9260_v1  ;;  %521 = vmatprep.mubr.bf16.mxu1 %v9260_v1 }
  0x42   :  { %5425 = vmatmul.mubr.msk.bf16.gmra.mrb[28].mxu0 %vm213_vm1, %v7101_v31  ;;  %5438 = vmatmul.mubr.msk.bf16.gmra.mrb[28].mxu1 %vm213_vm1, %v7090_v30 }
  0x43   :  { %378 = vmatprep.mubr.bf16.mxu0 %v9260_v1  ;;  %531 = vmatprep.mubr.bf16.mxu1 %v9260_v1 }
  0x4a   :  { %5426 = vmatmul.mubr.msk.bf16.gmra.mrb[32].mxu0 %vm213_vm1, %v7112_v32  ;;  %5439 = vmatmul.mubr.msk.bf16.gmra.mrb[32].mxu1 %vm213_vm1, %v7101_v31 }
  0x4b   :  { %388 = vmatprep.mubr.bf16.mxu0 %v9260_v1  ;;  %541 = vmatprep.mubr.bf16.mxu1 %v9260_v1 }
  0x52   :  { %5427 = vmatmul.mubr.msk.bf16.gmra.mrb[36].mxu0 %vm213_vm1, %v7123_v33  ;;  %5440 = vmatmul.mubr.msk.bf16.gmra.mrb[36].mxu1 %vm213_vm1, %v7112_v32 }
  0x53   :  { %398 = vmatprep.mubr.bf16.mxu0 %v9260_v1  ;;  %551 = vmatprep.mubr.bf16.mxu1 %v9260_v1 }
  0x5a   :  { %5428 = vmatmul.mubr.msk.bf16.gmra.mrb[40].mxu0 %vm213_vm1, %v7134_v34  ;;  %5441 = vmatmul.mubr.msk.bf16.gmra.mrb[40].mxu1 %vm213_vm1, %v7123_v33 }
  0x5b   :  { %408 = vmatprep.mubr.bf16.mxu0 %v9260_v1  ;;  %561 = vmatprep.mubr.bf16.mxu1 %v9260_v1 }
  0x62   :  { %5429 = vmatmul.mubr.msk.bf16.gmra.mrb[44].mxu0 %vm213_vm1, %v7145_v35  ;;  %5442 = vmatmul.mubr.msk.bf16.gmra.mrb[44].mxu1 %vm213_vm1, %v7134_v34 }
  0x63   :  { %571 = vmatprep.mubr.bf16.mxu1 %v9260_v1  ;;  %776 = vmatprep.mubr.bf16.mxu0 %v9260_v1 }
  0x6a   :  { %5443 = vmatmul.mubr.msk.bf16.gmra.mrb[48].mxu1 %vm213_vm1, %v7145_v35  ;;  %5467 = vmatmul.mubr.msk.bf16.vlgmr.msra.gmra.mrb[0].mxu0 %vm213_vm1, %v6594_v36 }
  0x6b   :  { %581 = vmatprep.mubr.bf16.mxu1 %v9260_v1  ;;  %786 = vmatprep.mubr.bf16.mxu0 %v9260_v1 }
  0x6c   :  { %1127 = vmatpush1.bf16.msra.mxu0 %v7159_v37 }
  0x6d   :  { %5503 = vmatprep.subr.msk.bf16.mxu0 %vm253_vm0, %v7164_v38 }
  0x70   :  { %1129 = vmatpush1.bf16.msra.mxu0 %v7178_v40 }
  0x71   :  { %1556 = vmatprep.subr.bf16.mxu0 %v6896_v0 }
  0x72   :  { %5444 = vmatmul.mubr.msk.bf16.gmra.mrb[52].mxu1 %vm213_vm1, %v6932_v7  ;;  %5468 = vmatmul.mubr.msk.bf16.gmra.mrb[4].mxu0 %vm213_vm1, %v7183_v41 }
  0x73   :  { %796 = vmatprep.mubr.bf16.mxu0 %v9260_v1  ;;  %939 = vmatprep.mubr.bf16.mxu1 %v9260_v1 }
  0x7a   :  { %5469 = vmatmul.mubr.msk.bf16.gmra.mrb[8].mxu0 %vm213_vm1, %v7196_v42  ;;  %5481 = vmatmul.mubr.msk.bf16.vlgmr.msra.gmra.mrb[4].mxu1 %vm213_vm1, %v6594_v36 }
  0x7b   :  { %1290 = vmatpush1.bf16.msra.mxu1 %v7201_v43  ;;  %806 = vmatprep.mubr.bf16.mxu0 %v9260_v1 }
  0x7c   :  { %949 = vmatprep.mubr.bf16.mxu1 %v9260_v1  ;;  %5517 = vmatprep.subr.msk.bf16.mxu1 %vm253_vm0, %v7206_v44 }
  0x7f   :  { %1292 = vmatpush1.bf16.msra.mxu1 %v7220_v46 }
  0x80   :  { %1719 = vmatprep.subr.bf16.mxu1 %v6942_v9 }
  0x82   :  { %5470 = vmatmul.mubr.msk.bf16.gmra.mrb[12].mxu0 %vm213_vm1, %v7225_v47  ;;  %5482 = vmatmul.mubr.msk.bf16.gmra.mrb[8].mxu1 %vm213_vm1, %v7183_v41 }
  0x83   :  { %816 = vmatprep.mubr.bf16.mxu0 %v9260_v1  ;;  %959 = vmatprep.mubr.bf16.mxu1 %v9260_v1 }
  0x8a   :  { %5471 = vmatmul.mubr.msk.bf16.gmra.mrb[16].mxu0 %vm213_vm1, %v7238_v48  ;;  %5483 = vmatmul.mubr.msk.bf16.gmra.mrb[12].mxu1 %vm213_vm1, %v7196_v42 }
  0x8b   :  { %826 = vmatprep.mubr.bf16.mxu0 %v9260_v1  ;;  %969 = vmatprep.mubr.bf16.mxu1 %v9260_v1 }
  0x92   :  { %5472 = vmatmul.mubr.msk.bf16.gmra.mrb[20].mxu0 %vm213_vm1, %v7249_v49  ;;  %5484 = vmatmul.mubr.msk.bf16.gmra.mrb[16].mxu1 %vm213_vm1, %v7225_v47 }
  0x93   :  { %836 = vmatprep.mubr.bf16.mxu0 %v9260_v1  ;;  %979 = vmatprep.mubr.bf16.mxu1 %v9260_v1 }
  0x9a   :  { %5473 = vmatmul.mubr.msk.bf16.gmra.mrb[24].mxu0 %vm213_vm1, %v7260_v50  ;;  %5485 = vmatmul.mubr.msk.bf16.gmra.mrb[20].mxu1 %vm213_vm1, %v7238_v48 }
  0x9b   :  { %846 = vmatprep.mubr.bf16.mxu0 %v9260_v1  ;;  %989 = vmatprep.mubr.bf16.mxu1 %v9260_v1 }
  0xa2   :  { %5474 = vmatmul.mubr.msk.bf16.gmra.mrb[28].mxu0 %vm213_vm1, %v7271_v51  ;;  %5486 = vmatmul.mubr.msk.bf16.gmra.mrb[24].mxu1 %vm213_vm1, %v7249_v49 }
  0xa3   :  { %856 = vmatprep.mubr.bf16.mxu0 %v9260_v1  ;;  %999 = vmatprep.mubr.bf16.mxu1 %v9260_v1 }
  0xaa   :  { %5475 = vmatmul.mubr.msk.bf16.gmra.mrb[32].mxu0 %vm213_vm1, %v7282_v52  ;;  %5487 = vmatmul.mubr.msk.bf16.gmra.mrb[28].mxu1 %vm213_vm1, %v7260_v50 }
  0xab   :  { %866 = vmatprep.mubr.bf16.mxu0 %v9260_v1  ;;  %1009 = vmatprep.mubr.bf16.mxu1 %v9260_v1 }
  0xb2   :  { %5476 = vmatmul.mubr.msk.bf16.gmra.mrb[36].mxu0 %vm213_vm1, %v7293_v53  ;;  %5488 = vmatmul.mubr.msk.bf16.gmra.mrb[32].mxu1 %vm213_vm1, %v7271_v51 }
  0xb3   :  { %876 = vmatprep.mubr.bf16.mxu0 %v9260_v1  ;;  %1019 = vmatprep.mubr.bf16.mxu1 %v9260_v1 }
  0xba   :  { %5477 = vmatmul.mubr.msk.bf16.gmra.mrb[40].mxu0 %vm213_vm1, %v7304_v54  ;;  %5489 = vmatmul.mubr.msk.bf16.gmra.mrb[36].mxu1 %vm213_vm1, %v7282_v52 }
  0xbb   :  { %886 = vmatprep.mubr.bf16.mxu0 %v9260_v1  ;;  %1029 = vmatprep.mubr.bf16.mxu1 %v9260_v1 }
  0xc2   :  { %5478 = vmatmul.mubr.msk.bf16.gmra.mrb[44].mxu0 %vm213_vm1, %v7315_v55  ;;  %5490 = vmatmul.mubr.msk.bf16.gmra.mrb[40].mxu1 %vm213_vm1, %v7293_v53 }
  0xc3   :  { %896 = vmatprep.mubr.bf16.mxu0 %v9260_v1  ;;  %1039 = vmatprep.mubr.bf16.mxu1 %v9260_v1 }
  0xca   :  { %5479 = vmatmul.mubr.msk.bf16.gmra.mrb[48].mxu0 %vm213_vm1, %v7326_v56  ;;  %5491 = vmatmul.mubr.msk.bf16.gmra.mrb[44].mxu1 %vm213_vm1, %v7304_v54 }
  0xcb   :  { %1049 = vmatprep.mubr.bf16.mxu1 %v9260_v1  ;;  %1158 = vmatprep.mubr.bf16.mxu0 %v9260_v1 }
  0xd2   :  { %5492 = vmatmul.mubr.msk.bf16.gmra.mrb[48].mxu1 %vm213_vm1, %v7315_v55  ;;  %5504 = vmatmul.mubr.msk.bf16.vlgmr.msra.gmra.mrb[0].mxu0 %vm213_vm1, %v7183_v41 }
  0xd3   :  { %1059 = vmatprep.mubr.bf16.mxu1 %v9260_v1  ;;  %1168 = vmatprep.mubr.bf16.mxu0 %v9260_v1 }
  0xd4   :  { %1557 = vmatpush1.bf16.msra.mxu0 %v6903_v2 }
  0xd5   :  { %5531 = vmatprep.subr.msk.bf16.mxu0 %vm253_vm0, %v6910_v3 }
  0xd8   :  { %1559 = vmatpush1.bf16.msra.mxu0 %v6922_v5 }
  0xd9   :  { %1882 = vmatprep.subr.bf16.mxu0 %v6980_v15 }
  0xda   :  { %5493 = vmatmul.mubr.msk.bf16.gmra.mrb[52].mxu1 %vm213_vm1, %v7326_v56  ;;  %5505 = vmatmul.mubr.msk.bf16.gmra.mrb[4].mxu0 %vm213_vm1, %v7196_v42 }
  0xdb   :  { %1178 = vmatprep.mubr.bf16.mxu0 %v9260_v1  ;;  %1321 = vmatprep.mubr.bf16.mxu1 %v9260_v1 }
  0xdd   :  { %v7351_v57 = vpop.f32.mrb[0].mxu1 }
  0xde   :  { %v7353_v58 = vpop.f32.mrb[1].mxu1 }
  0xdf   :  { %v7355_v59 = vpop.f32.mrb[2].mxu1 }
  0xe0   :  { %v7357_v60 = vpop.f32.mrb[3].mxu1 }
  0xe2   :  { %5506 = vmatmul.mubr.msk.bf16.gmra.mrb[8].mxu0 %vm213_vm1, %v7225_v47  ;;  %5518 = vmatmul.mubr.msk.bf16.vlgmr.msra.gmra.mrb[4].mxu1 %vm213_vm1, %v7183_v41 }
  0xe3   :  { %1720 = vmatpush1.bf16.msra.mxu1 %v6937_v8  ;;  %1188 = vmatprep.mubr.bf16.mxu0 %v9260_v1 }
  0xe4   :  { %1331 = vmatprep.mubr.bf16.mxu1 %v9260_v1  ;;  %5545 = vmatprep.subr.msk.bf16.mxu1 %vm253_vm0, %v6949_v10 }
  0xe7   :  { %1722 = vmatpush1.bf16.msra.mxu1 %v6961_v12 }
  0xe8   :  { %2045 = vmatprep.subr.bf16.mxu1 %v6967_v13 }
  0xea   :  { %5507 = vmatmul.mubr.msk.bf16.gmra.mrb[12].mxu0 %vm213_vm1, %v7238_v48  ;;  %5519 = vmatmul.mubr.msk.bf16.gmra.mrb[8].mxu1 %vm213_vm1, %v7196_v42 }
  0xeb   :  { %1198 = vmatprep.mubr.bf16.mxu0 %v9260_v1  ;;  %1341 = vmatprep.mubr.bf16.mxu1 %v9260_v1 }
  0xf2   :  { %5508 = vmatmul.mubr.msk.bf16.gmra.mrb[16].mxu0 %vm213_vm1, %v7249_v49  ;;  %5520 = vmatmul.mubr.msk.bf16.gmra.mrb[12].mxu1 %vm213_vm1, %v7225_v47 }
  0xf3   :  { %1208 = vmatprep.mubr.bf16.mxu0 %v9260_v1  ;;  %1351 = vmatprep.mubr.bf16.mxu1 %v9260_v1 }
  0xfa   :  { %5509 = vmatmul.mubr.msk.bf16.gmra.mrb[20].mxu0 %vm213_vm1, %v7260_v50  ;;  %5521 = vmatmul.mubr.msk.bf16.gmra.mrb[16].mxu1 %vm213_vm1, %v7238_v48 }
  0xfb   :  { %1218 = vmatprep.mubr.bf16.mxu0 %v9260_v1  ;;  %1361 = vmatprep.mubr.bf16.mxu1 %v9260_v1 }
 0x102   :  { %5510 = vmatmul.mubr.msk.bf16.gmra.mrb[24].mxu0 %vm213_vm1, %v7271_v51  ;;  %5522 = vmatmul.mubr.msk.bf16.gmra.mrb[20].mxu1 %vm213_vm1, %v7249_v49 }
 0x103   :  { %1228 = vmatprep.mubr.bf16.mxu0 %v9260_v1  ;;  %1371 = vmatprep.mubr.bf16.mxu1 %v9260_v1 }
 0x10a   :  { %5511 = vmatmul.mubr.msk.bf16.gmra.mrb[28].mxu0 %vm213_vm1, %v7282_v52  ;;  %5523 = vmatmul.mubr.msk.bf16.gmra.mrb[24].mxu1 %vm213_vm1, %v7260_v50 }
 0x10b   :  { %1238 = vmatprep.mubr.bf16.mxu0 %v9260_v1  ;;  %1381 = vmatprep.mubr.bf16.mxu1 %v9260_v1 }
 0x112   :  { %5512 = vmatmul.mubr.msk.bf16.gmra.mrb[32].mxu0 %vm213_vm1, %v7293_v53  ;;  %5524 = vmatmul.mubr.msk.bf16.gmra.mrb[28].mxu1 %vm213_vm1, %v7271_v51 }
 0x113   :  { %1248 = vmatprep.mubr.bf16.mxu0 %v9260_v1  ;;  %1391 = vmatprep.mubr.bf16.mxu1 %v9260_v1 }
 0x11a   :  { %5513 = vmatmul.mubr.msk.bf16.gmra.mrb[36].mxu0 %vm213_vm1, %v7304_v54  ;;  %5525 = vmatmul.mubr.msk.bf16.gmra.mrb[32].mxu1 %vm213_vm1, %v7282_v52 }
 0x11b   :  { %1258 = vmatprep.mubr.bf16.mxu0 %v9260_v1  ;;  %1401 = vmatprep.mubr.bf16.mxu1 %v9260_v1 }
 0x122   :  { %5514 = vmatmul.mubr.msk.bf16.gmra.mrb[40].mxu0 %vm213_vm1, %v7315_v55  ;;  %5526 = vmatmul.mubr.msk.bf16.gmra.mrb[36].mxu1 %vm213_vm1, %v7293_v53 }
 0x123   :  { %1268 = vmatprep.mubr.bf16.mxu0 %v9260_v1  ;;  %1411 = vmatprep.mubr.bf16.mxu1 %v9260_v1 }
 0x12a   :  { %5515 = vmatmul.mubr.msk.bf16.gmra.mrb[44].mxu0 %vm213_vm1, %v7326_v56  ;;  %5527 = vmatmul.mubr.msk.bf16.gmra.mrb[40].mxu1 %vm213_vm1, %v7304_v54 }
 0x12b   :  { %1278 = vmatprep.mubr.bf16.mxu0 %v9260_v1  ;;  %1421 = vmatprep.mubr.bf16.mxu1 %v9260_v1 }
 0x132   :  { %5516 = vmatmul.mubr.msk.bf16.gmra.mrb[48].mxu0 %vm213_vm1, %v7427_v61  ;;  %5528 = vmatmul.mubr.msk.bf16.gmra.mrb[44].mxu1 %vm213_vm1, %v7315_v55 }
 0x133   :  { %1431 = vmatprep.mubr.bf16.mxu1 %v9260_v1  ;;  %1588 = vmatprep.mubr.bf16.mxu0 %v9260_v1 }
 0x13a   :  { %5529 = vmatmul.mubr.msk.bf16.gmra.mrb[48].mxu1 %vm213_vm1, %v7326_v56  ;;  %5532 = vmatmul.mubr.msk.bf16.vlgmr.msra.gmra.mrb[52].mxu0 %vm213_vm1, %v7183_v41 }
 0x13b   :  { %1441 = vmatprep.mubr.bf16.mxu1 %v9260_v1  ;;  %1598 = vmatprep.mubr.bf16.mxu0 %v9260_v1 }
 0x13c   :  { %1883 = vmatpush1.bf16.msra.mxu0 %v6975_v14 }
 0x13d   :  { %5559 = vmatprep.subr.msk.bf16.mxu0 %vm253_vm0, %v7019_v21 }
 0x140   :  { %1885 = vmatpush1.bf16.msra.mxu0 %v7033_v24 }
 0x141   :  { %2216 = vmatprep.subr.bf16.mxu0 %v7045_v25 }
 0x142   :  { %5530 = vmatmul.mubr.msk.bf16.gmra.mrb[52].mxu1 %vm213_vm1, %v7427_v61  ;;  %5533 = vmatmul.mubr.msk.bf16.gmra.mrb[56].mxu0 %vm213_vm1, %v7196_v42 }
 0x143   :  { %1608 = vmatprep.mubr.bf16.mxu0 %v9260_v1  ;;  %1751 = vmatprep.mubr.bf16.mxu1 %v9260_v1 }
 0x14a   :  { %5534 = vmatmul.mubr.msk.bf16.gmra.mrb[60].mxu0 %vm213_vm1, %v7225_v47  ;;  %5546 = vmatmul.mubr.msk.bf16.vlgmr.msra.gmra.mrb[56].mxu1 %vm213_vm1, %v7183_v41 }
 0x14b   :  { %2046 = vmatpush1.bf16.msra.mxu1 %v6992_v17  ;;  %1618 = vmatprep.mubr.bf16.mxu0 %v9260_v1 }
 0x14c   :  { %1761 = vmatprep.mubr.bf16.mxu1 %v9260_v1  ;;  %5573 = vmatprep.subr.msk.bf16.mxu1 %vm253_vm0, %v7003_v18 }
 0x14f   :  { %2048 = vmatpush1.bf16.msra.mxu1 %v7014_v20 }
 0x150   :  { %2379 = vmatprep.subr.bf16.mxu1 %v7056_v27 }
 0x152   :  { %5535 = vmatmul.mubr.msk.bf16.gmra.mrb[64].mxu0 %vm213_vm1, %v7238_v48  ;;  %5547 = vmatmul.mubr.msk.bf16.gmra.mrb[60].mxu1 %vm213_vm1, %v7196_v42 }
 0x153   :  { %1628 = vmatprep.mubr.bf16.mxu0 %v9260_v1  ;;  %1771 = vmatprep.mubr.bf16.mxu1 %v9260_v1 }
 0x15a   :  { %5536 = vmatmul.mubr.msk.bf16.gmra.mrb[68].mxu0 %vm213_vm1, %v7249_v49  ;;  %5548 = vmatmul.mubr.msk.bf16.gmra.mrb[64].mxu1 %vm213_vm1, %v7225_v47 }
 0x15b   :  { %1638 = vmatprep.mubr.bf16.mxu0 %v9260_v1  ;;  %1781 = vmatprep.mubr.bf16.mxu1 %v9260_v1 }
 0x162   :  { %5537 = vmatmul.mubr.msk.bf16.gmra.mrb[72].mxu0 %vm213_vm1, %v7260_v50  ;;  %5549 = vmatmul.mubr.msk.bf16.gmra.mrb[68].mxu1 %vm213_vm1, %v7238_v48 }
 0x163   :  { %1648 = vmatprep.mubr.bf16.mxu0 %v9260_v1  ;;  %1791 = vmatprep.mubr.bf16.mxu1 %v9260_v1 }
 0x16a   :  { %5538 = vmatmul.mubr.msk.bf16.gmra.mrb[76].mxu0 %vm213_vm1, %v7271_v51  ;;  %5550 = vmatmul.mubr.msk.bf16.gmra.mrb[72].mxu1 %vm213_vm1, %v7249_v49 }
 0x16b   :  { %1658 = vmatprep.mubr.bf16.mxu0 %v9260_v1  ;;  %1801 = vmatprep.mubr.bf16.mxu1 %v9260_v1 }
 0x172   :  { %5539 = vmatmul.mubr.msk.bf16.gmra.mrb[80].mxu0 %vm213_vm1, %v7282_v52  ;;  %5551 = vmatmul.mubr.msk.bf16.gmra.mrb[76].mxu1 %vm213_vm1, %v7260_v50 }
 0x173   :  { %1668 = vmatprep.mubr.bf16.mxu0 %v9260_v1  ;;  %1811 = vmatprep.mubr.bf16.mxu1 %v9260_v1 }
 0x17a   :  { %5540 = vmatmul.mubr.msk.bf16.gmra.mrb[84].mxu0 %vm213_vm1, %v7293_v53  ;;  %5552 = vmatmul.mubr.msk.bf16.gmra.mrb[80].mxu1 %vm213_vm1, %v7271_v51 }
 0x17b   :  { %1678 = vmatprep.mubr.bf16.mxu0 %v9260_v1  ;;  %1821 = vmatprep.mubr.bf16.mxu1 %v9260_v1 }
 0x182   :  { %5541 = vmatmul.mubr.msk.bf16.gmra.mrb[88].mxu0 %vm213_vm1, %v7304_v54  ;;  %5553 = vmatmul.mubr.msk.bf16.gmra.mrb[84].mxu1 %vm213_vm1, %v7282_v52 }
 0x183   :  { %1688 = vmatprep.mubr.bf16.mxu0 %v9260_v1  ;;  %1831 = vmatprep.mubr.bf16.mxu1 %v9260_v1 }
 0x18a   :  { %5542 = vmatmul.mubr.msk.bf16.gmra.mrb[92].mxu0 %vm213_vm1, %v7315_v55  ;;  %5554 = vmatmul.mubr.msk.bf16.gmra.mrb[88].mxu1 %vm213_vm1, %v7293_v53 }
 0x18b   :  { %1698 = vmatprep.mubr.bf16.mxu0 %v9260_v1  ;;  %1841 = vmatprep.mubr.bf16.mxu1 %v9260_v1 }
 0x192   :  { %5543 = vmatmul.mubr.msk.bf16.gmra.mrb[96].mxu0 %vm213_vm1, %v7326_v56  ;;  %5555 = vmatmul.mubr.msk.bf16.gmra.mrb[92].mxu1 %vm213_vm1, %v7304_v54 }
 0x193   :  { %1708 = vmatprep.mubr.bf16.mxu0 %v9260_v1  ;;  %1851 = vmatprep.mubr.bf16.mxu1 %v9260_v1 }
 0x19a   :  { %5544 = vmatmul.mubr.msk.bf16.gmra.mrb[100].mxu0 %vm213_vm1, %v7427_v61  ;;  %5556 = vmatmul.mubr.msk.bf16.gmra.mrb[96].mxu1 %vm213_vm1, %v7315_v55 }
 0x19b   :  { %1861 = vmatprep.mubr.bf16.mxu1 %v9260_v1  ;;  %1914 = vmatprep.mubr.bf16.mxu0 %v9260_v1 }
 0x1a2   :  { %5557 = vmatmul.mubr.msk.bf16.gmra.mrb[100].mxu1 %vm213_vm1, %v7326_v56  ;;  %5560 = vmatmul.mubr.msk.bf16.vlgmr.msra.gmra.mrb[52].mxu0 %vm213_vm1, %v6927_v6 }
 0x1a3   :  { %1871 = vmatprep.mubr.bf16.mxu1 %v9260_v1  ;;  %1924 = vmatprep.mubr.bf16.mxu0 %v9260_v1 }
 0x1a4   :  { %2217 = vmatpush1.bf16.msra.mxu0 %v7159_v37 }
 0x1a5   :  { %v7530_v62 = vpop.f32.mrb[0].mxu0  ;;  %5588 = vmatprep.subr.msk.bf16.mxu0 %vm253_vm0, %v7164_v38 }
 0x1a6   :  { %v7534_v63 = vpop.f32.mrb[1].mxu0 }
 0x1a7   :  { %v7536_v0 = vpop.f32.mrb[2].mxu0 }
 0x1a8   :  { %v7538_v2 = vpop.f32.mrb[3].mxu0  ;;  %2219 = vmatpush1.bf16.msra.mxu0 %v7178_v40 }
 0x1aa   :  { %5558 = vmatmul.mubr.msk.bf16.gmra.mrb[104].mxu1 %vm213_vm1, %v7427_v61  ;;  %5561 = vmatmul.mubr.msk.bf16.gmra.mrb[56].mxu0 %vm213_vm1, %v6985_v16 }
 0x1ab   :  { %1934 = vmatprep.mubr.bf16.mxu0 %v9260_v1  ;;  %2077 = vmatprep.mubr.bf16.mxu1 %v9260_v1 }
 0x1ad   :  { %v7547_v3 = vpop.f32.mrb[4].mxu0 }
 0x1ae   :  { %v7549_v4 = vpop.f32.mrb[5].mxu0 }
 0x1af   :  { %v7551_v5 = vpop.f32.mrb[6].mxu0 }
 0x1b0   :  { %v7553_v7 = vpop.f32.mrb[7].mxu0 }
 0x1b2   :  { %5562 = vmatmul.mubr.msk.bf16.gmra.mrb[60].mxu0 %vm213_vm1, %v7024_v22  ;;  %5574 = vmatmul.mubr.msk.bf16.vlgmr.msra.gmra.mrb[56].mxu1 %vm213_vm1, %v6927_v6 }
 0x1b3   :  { %2380 = vmatpush1.bf16.msra.mxu1 %v7201_v43  ;;  %1944 = vmatprep.mubr.bf16.mxu0 %v9260_v1 }
 0x1b4   :  { %2087 = vmatprep.mubr.bf16.mxu1 %v9260_v1  ;;  %5602 = vmatprep.subr.msk.bf16.mxu1 %vm253_vm0, %v7206_v44 }
 0x1b5   :  { %v7564_v8 = vpop.f32.mrb[8].mxu0  ;;  %v7566_v9 = vpop.f32.mrb[4].mxu1 }
 0x1b6   :  { %v7568_v10 = vpop.f32.mrb[9].mxu0  ;;  %v7570_v11 = vpop.f32.mrb[5].mxu1 }
 0x1b7   :  { %v7572_v12 = vpop.f32.mrb[10].mxu0  ;;  %v7574_v6 = vpop.f32.mrb[6].mxu1  ;;  %2382 = vmatpush1.bf16.msra.mxu1 %v7220_v46 }
 0x1b8   :  { %v7577_v13 = vpop.f32.mrb[11].mxu0  ;;  %v7579_v14 = vpop.f32.mrb[7].mxu1 }
 0x1ba   :  { %5563 = vmatmul.mubr.msk.bf16.gmra.mrb[64].mxu0 %vm213_vm1, %v7050_v26  ;;  %5575 = vmatmul.mubr.msk.bf16.gmra.mrb[60].mxu1 %vm213_vm1, %v6985_v16 }
 0x1bb   :  { %1954 = vmatprep.mubr.bf16.mxu0 %v9260_v1  ;;  %2097 = vmatprep.mubr.bf16.mxu1 %v9260_v1 }
 0x1bd   :  { %v7587_v15 = vpop.f32.mrb[12].mxu0  ;;  %v7589_v17 = vpop.f32.mrb[8].mxu1 }
 0x1be   :  { %v7591_v18 = vpop.f32.mrb[13].mxu0  ;;  %v7593_v19 = vpop.f32.mrb[9].mxu1 }
 0x1bf   :  { %v7595_v20 = vpop.f32.mrb[14].mxu0  ;;  %v7597_v21 = vpop.f32.mrb[10].mxu1 }
 0x1c0   :  { %v7599_v23 = vpop.f32.mrb[15].mxu0  ;;  %v7601_v24 = vpop.f32.mrb[11].mxu1 }
 0x1c2   :  { %5564 = vmatmul.mubr.msk.bf16.gmra.mrb[68].mxu0 %vm213_vm1, %v7068_v28  ;;  %5576 = vmatmul.mubr.msk.bf16.gmra.mrb[64].mxu1 %vm213_vm1, %v7024_v22 }
 0x1c3   :  { %1964 = vmatprep.mubr.bf16.mxu0 %v9260_v1  ;;  %2107 = vmatprep.mubr.bf16.mxu1 %v9260_v1 }
 0x1c5   :  { %v7609_v16 = vpop.f32.mrb[16].mxu0  ;;  %v7611_v25 = vpop.f32.mrb[12].mxu1 }
 0x1c6   :  { %v7613_v27 = vpop.f32.mrb[17].mxu0  ;;  %v7615_v36 = vpop.f32.mrb[13].mxu1 }
 0x1c7   :  { %v7617_v37 = vpop.f32.mrb[18].mxu0  ;;  %v7619_v38 = vpop.f32.mrb[14].mxu1 }
 0x1c8   :  { %v7621_v39 = vpop.f32.mrb[19].mxu0  ;;  %v7623_v40 = vpop.f32.mrb[15].mxu1 }
 0x1ca   :  { %5565 = vmatmul.mubr.msk.bf16.gmra.mrb[72].mxu0 %vm213_vm1, %v7079_v29  ;;  %5577 = vmatmul.mubr.msk.bf16.gmra.mrb[68].mxu1 %vm213_vm1, %v7050_v26 }
 0x1cb   :  { %1974 = vmatprep.mubr.bf16.mxu0 %v9260_v1  ;;  %2117 = vmatprep.mubr.bf16.mxu1 %v9260_v1 }
 0x1cd   :  { %v7631_v22 = vpop.f32.mrb[20].mxu0  ;;  %v7633_v41 = vpop.f32.mrb[16].mxu1 }
 0x1ce   :  { %v7635_v42 = vpop.f32.mrb[21].mxu0  ;;  %v7637_v43 = vpop.f32.mrb[17].mxu1 }
 0x1cf   :  { %v7639_v44 = vpop.f32.mrb[22].mxu0  ;;  %v7641_v45 = vpop.f32.mrb[18].mxu1 }
 0x1d0   :  { %v7643_v46 = vpop.f32.mrb[23].mxu0  ;;  %v7645_v47 = vpop.f32.mrb[19].mxu1 }
 0x1d1   :  { %9276 = vst [vmem:[#allocation2_spill] sm:$0xff] %v7645_v47 }
 0x1d2   :  { %5566 = vmatmul.mubr.msk.bf16.gmra.mrb[76].mxu0 %vm213_vm1, %v7090_v30  ;;  %5578 = vmatmul.mubr.msk.bf16.gmra.mrb[72].mxu1 %vm213_vm1, %v7068_v28 }
 0x1d3   :  { %1984 = vmatprep.mubr.bf16.mxu0 %v9260_v1  ;;  %2127 = vmatprep.mubr.bf16.mxu1 %v9260_v1 }
 0x1d5   :  { %v7653_v26 = vpop.f32.mrb[24].mxu0  ;;  %v7655_v48 = vpop.f32.mrb[20].mxu1 }
 0x1d6   :  { %9277 = vst [vmem:[#allocation3_spill] sm:$0xff] %v7653_v26  ;;  %9278 = vst [vmem:[#allocation4_spill] sm:$0xff] %v7655_v48  ;;  %v7657_v49 = vpop.f32.mrb[25].mxu0  ;;  %v7659_v50 = vpop.f32.mrb[21].mxu1 }
 0x1d7   :  { %9279 = vst [vmem:[#allocation5_spill] sm:$0xff] %v7657_v49  ;;  %9280 = vst [vmem:[#allocation6_spill] sm:$0xff] %v7659_v50  ;;  %v7661_v51 = vpop.f32.mrb[26].mxu0  ;;  %v7663_v52 = vpop.f32.mrb[22].mxu1 }
 0x1d8   :  { %9281 = vst [vmem:[#allocation7_spill] sm:$0xff] %v7661_v51  ;;  %9282 = vst [vmem:[#allocation8_spill] sm:$0xff] %v7663_v52  ;;  %v7665_v53 = vpop.f32.mrb[27].mxu0  ;;  %v7667_v54 = vpop.f32.mrb[23].mxu1 }
 0x1d9   :  { %9283 = vst [vmem:[#allocation9_spill] sm:$0xff] %v7665_v53  ;;  %9284 = vst [vmem:[#allocation10_spill] sm:$0xff] %v7667_v54 }
 0x1da   :  { %5567 = vmatmul.mubr.msk.bf16.gmra.mrb[80].mxu0 %vm213_vm1, %v7101_v31  ;;  %5579 = vmatmul.mubr.msk.bf16.gmra.mrb[76].mxu1 %vm213_vm1, %v7079_v29 }
 0x1db   :  { %1994 = vmatprep.mubr.bf16.mxu0 %v9260_v1  ;;  %2137 = vmatprep.mubr.bf16.mxu1 %v9260_v1 }
 0x1dd   :  { %v7675_v28 = vpop.f32.mrb[28].mxu0  ;;  %v7677_v55 = vpop.f32.mrb[24].mxu1 }
 0x1de   :  { %9285 = vst [vmem:[#allocation11_spill] sm:$0xff] %v7675_v28  ;;  %9286 = vst [vmem:[#allocation12_spill] sm:$0xff] %v7677_v55  ;;  %v7679_v56 = vpop.f32.mrb[29].mxu0  ;;  %v7681_v61 = vpop.f32.mrb[25].mxu1 }
 0x1df   :  { %9287 = vst [vmem:[#allocation13_spill] sm:$0xff] %v7679_v56  ;;  %9288 = vst [vmem:[#allocation14_spill] sm:$0xff] %v7681_v61  ;;  %v7683_v53 = vpop.f32.mrb[30].mxu0  ;;  %v7685_v54 = vpop.f32.mrb[26].mxu1 }
 0x1e0   :  { %9289 = vst [vmem:[#allocation15_spill] sm:$0xff] %v7683_v53  ;;  %9290 = vst [vmem:[#allocation16_spill] sm:$0xff] %v7685_v54  ;;  %v7687_v52 = vpop.f32.mrb[31].mxu0  ;;  %v7689_v51 = vpop.f32.mrb[27].mxu1 }
 0x1e1   :  { %9291 = vst [vmem:[#allocation17_spill] sm:$0xff] %v7687_v52  ;;  %9292 = vst [vmem:[#allocation18_spill] sm:$0xff] %v7689_v51 }
 0x1e2   :  { %5568 = vmatmul.mubr.msk.bf16.gmra.mrb[84].mxu0 %vm213_vm1, %v7112_v32  ;;  %5580 = vmatmul.mubr.msk.bf16.gmra.mrb[80].mxu1 %vm213_vm1, %v7090_v30 }
 0x1e3   :  { %2004 = vmatprep.mubr.bf16.mxu0 %v9260_v1  ;;  %2147 = vmatprep.mubr.bf16.mxu1 %v9260_v1 }
 0x1e5   :  { %v7697_v29 = vpop.f32.mrb[32].mxu0  ;;  %v7699_v61 = vpop.f32.mrb[28].mxu1 }
 0x1e6   :  { %9293 = vst [vmem:[#allocation19_spill] sm:$0xff] %v7697_v29  ;;  %9294 = vst [vmem:[#allocation20_spill] sm:$0xff] %v7699_v61  ;;  %v7701_v53 = vpop.f32.mrb[33].mxu0  ;;  %v7703_v54 = vpop.f32.mrb[29].mxu1 }
 0x1e7   :  { %9295 = vst [vmem:[#allocation21_spill] sm:$0xff] %v7701_v53  ;;  %9296 = vst [vmem:[#allocation22_spill] sm:$0xff] %v7703_v54  ;;  %v7705_v52 = vpop.f32.mrb[34].mxu0  ;;  %v7707_v51 = vpop.f32.mrb[30].mxu1 }
 0x1e8   :  { %9297 = vst [vmem:[#allocation23_spill] sm:$0xff] %v7705_v52  ;;  %9298 = vst [vmem:[#allocation24_spill] sm:$0xff] %v7707_v51  ;;  %v7709_v56 = vpop.f32.mrb[35].mxu0  ;;  %v7711_v55 = vpop.f32.mrb[31].mxu1 }
 0x1e9   :  { %9299 = vst [vmem:[#allocation25_spill] sm:$0xff] %v7709_v56  ;;  %9300 = vst [vmem:[#allocation26_spill] sm:$0xff] %v7711_v55 }
 0x1ea   :  { %5569 = vmatmul.mubr.msk.bf16.gmra.mrb[88].mxu0 %vm213_vm1, %v7123_v33  ;;  %5581 = vmatmul.mubr.msk.bf16.gmra.mrb[84].mxu1 %vm213_vm1, %v7101_v31 }
 0x1eb   :  { %2014 = vmatprep.mubr.bf16.mxu0 %v9260_v1  ;;  %2157 = vmatprep.mubr.bf16.mxu1 %v9260_v1 }
 0x1ed   :  { %v7719_v30 = vpop.f32.mrb[36].mxu0  ;;  %v7721_v54 = vpop.f32.mrb[32].mxu1 }
 0x1ee   :  { %9301 = vst [vmem:[#allocation27_spill] sm:$0xff] %v7719_v30  ;;  %9302 = vst [vmem:[#allocation28_spill] sm:$0xff] %v7721_v54  ;;  %v7723_v52 = vpop.f32.mrb[37].mxu0  ;;  %v7725_v51 = vpop.f32.mrb[33].mxu1 }
 0x1ef   :  { %9303 = vst [vmem:[#allocation29_spill] sm:$0xff] %v7723_v52  ;;  %9304 = vst [vmem:[#allocation30_spill] sm:$0xff] %v7725_v51  ;;  %v7727_v56 = vpop.f32.mrb[38].mxu0  ;;  %v7729_v55 = vpop.f32.mrb[34].mxu1 }
 0x1f0   :  { %9305 = vst [vmem:[#allocation31_spill] sm:$0xff] %v7727_v56  ;;  %9306 = vst [vmem:[#allocation32_spill] sm:$0xff] %v7729_v55  ;;  %v7731_v53 = vpop.f32.mrb[39].mxu0  ;;  %v7733_v61 = vpop.f32.mrb[35].mxu1 }
 0x1f1   :  { %9307 = vst [vmem:[#allocation33_spill] sm:$0xff] %v7731_v53  ;;  %9308 = vst [vmem:[#allocation34_spill] sm:$0xff] %v7733_v61 }
 0x1f2   :  { %5570 = vmatmul.mubr.msk.bf16.gmra.mrb[92].mxu0 %vm213_vm1, %v7134_v34  ;;  %5582 = vmatmul.mubr.msk.bf16.gmra.mrb[88].mxu1 %vm213_vm1, %v7112_v32  ;;  %v6621_v32 = vld [vmem:[%s9240_s4 + $0xc0] sm:$0xff]  }
 0x1f3   :  { %2024 = vmatprep.mubr.bf16.mxu0 %v9260_v1  ;;  %2167 = vmatprep.mubr.bf16.mxu1 %v9260_v1 }
 0x1f4   :  { %5831 = vmatprep.subr.bf16.mxu0 %v6621_v32  ;;  %v6627_v32 = vld [vmem:[%s9240_s4 + $0x40] sm:$0xff]  }
 0x1f5   :  { %v7741_v31 = vpop.f32.mrb[40].mxu0  ;;  %v7743_v51 = vpop.f32.mrb[36].mxu1  ;;  %5853 = vmatprep.subr.bf16.mxu1 %v6627_v32 }
 0x1f6   :  { %9309 = vst [vmem:[#allocation35_spill] sm:$0xff] %v7741_v31  ;;  %9310 = vst [vmem:[#allocation36_spill] sm:$0xff] %v7743_v51  ;;  %v7745_v56 = vpop.f32.mrb[41].mxu0  ;;  %v7747_v55 = vpop.f32.mrb[37].mxu1  ;;  %v7785_v51 = vld [vmem:[%s9238_s1 + $0x60] sm:$0xff]  }
 0x1f7   :  { %9311 = vst [vmem:[#allocation37_spill] sm:$0xff] %v7745_v56  ;;  %9312 = vst [vmem:[#allocation38_spill] sm:$0xff] %v7747_v55  ;;  %v7749_v53 = vpop.f32.mrb[42].mxu0  ;;  %v7751_v61 = vpop.f32.mrb[38].mxu1 }
 0x1f8   :  { %9313 = vst [vmem:[#allocation39_spill] sm:$0xff] %v7749_v53  ;;  %9314 = vst [vmem:[#allocation40_spill] sm:$0xff] %v7751_v61  ;;  %v7753_v52 = vpop.f32.mrb[43].mxu0  ;;  %v7755_v54 = vpop.f32.mrb[39].mxu1 }
 0x1f9   :  { %9315 = vst [vmem:[#allocation41_spill] sm:$0xff] %v7753_v52  ;;  %9316 = vst [vmem:[#allocation42_spill] sm:$0xff] %v7755_v54 }
 0x1fa   :  { %5571 = vmatmul.mubr.msk.bf16.gmra.mrb[96].mxu0 %vm213_vm1, %v7145_v35  ;;  %5583 = vmatmul.mubr.msk.bf16.gmra.mrb[92].mxu1 %vm213_vm1, %v7123_v33 }
 0x1fb   :  { %2034 = vmatprep.mubr.bf16.mxu0 %v9260_v1  ;;  %2177 = vmatprep.mubr.bf16.mxu1 %v9260_v1 }
 0x1fd   :  { %v7766_v53 = vpop.f32.mrb[44].mxu0  ;;  %v7768_v61 = vpop.f32.mrb[40].mxu1 }
 0x1fe   :  { %9317 = vst [vmem:[#allocation43_spill] sm:$0xff] %v7766_v53  ;;  %9318 = vst [vmem:[#allocation44_spill] sm:$0xff] %v7768_v61  ;;  %v7770_v54 = vpop.f32.mrb[45].mxu0  ;;  %v7772_v52 = vpop.f32.mrb[41].mxu1 }
 0x1ff   :  { %9319 = vst [vmem:[#allocation45_spill] sm:$0xff] %v7770_v54  ;;  %9320 = vst [vmem:[#allocation46_spill] sm:$0xff] %v7772_v52  ;;  %v7774_v55 = vpop.f32.mrb[46].mxu0  ;;  %v7776_v33 = vpop.f32.mrb[42].mxu1 }
 0x200   :  { %9321 = vst [vmem:[#allocation47_spill] sm:$0xff] %v7774_v55  ;;  %9322 = vst [vmem:[#allocation48_spill] sm:$0xff] %v7776_v33  ;;  %v7778_v56 = vpop.f32.mrb[47].mxu0  ;;  %v7780_v1 = vpop.f32.mrb[43].mxu1  ;;  %v9325_v33 = vmov 0  }
 0x201   :  { %9323 = vst [vmem:[#allocation49_spill] sm:$0xff] %v7778_v56  ;;  %9324 = vst [vmem:[#allocation50_spill] sm:$0xff] %v7780_v1 }
 0x202   :  { %5572 = vmatmul.mubr.msk.bf16.gmra.mrb[100].mxu0 %vm213_vm1, %v7785_v51  ;;  %5584 = vmatmul.mubr.msk.bf16.gmra.mrb[96].mxu1 %vm213_vm1, %v7134_v34 }
 0x203   :  { %2187 = vmatprep.mubr.bf16.mxu1 %v9325_v33  ;;  %2248 = vmatprep.mubr.bf16.mxu0 %v9325_v33 }
 0x205   :  { %v1280_v1 = vpop.f32.mrb[48].mxu0  ;;  %v7796_v56 = vpop.f32.mrb[44].mxu1 }
 0x206   :  { %9326 = vst [vmem:[#allocation51_spill] sm:$0xff] %v7796_v56  ;;  %v7799_v55 = vadd.f32 %v1280_v1, %v7351_v57  ;;  %v1282_v52 = vpop.f32.mrb[49].mxu0  ;;  %v7801_v54 = vpop.f32.mrb[45].mxu1  ;;  %v6622_v1 = vld [vmem:[%s9240_s4 + $0x80] sm:$0xff]   ;;  %v6623_v57 = vld [vmem:[%s9240_s4 + $0xc8] sm:$0xff]  }
 0x207   :  { %9328 = vst [vmem:[#allocation53_spill] sm:$0xff] %v7801_v54  ;;  %v7804_v34 = vadd.f32 %v1282_v52, %v7353_v58  ;;  %v1284_v61 = vpop.f32.mrb[50].mxu0  ;;  %v7806_v53 = vpop.f32.mrb[46].mxu1  ;;  %v6624_v52 = vld [vmem:[%s9240_s4 + $0x88] sm:$0xff]  }
 0x208   :  { %9327 = vst [vmem:[#allocation52_spill] sm:$0xff] %v7799_v55  ;;  %9330 = vst [vmem:[#allocation55_spill] sm:$0xff] %v7806_v53  ;;  %v7809_v31 = vadd.f32 %v1284_v61, %v7355_v59  ;;  %v1286_v30 = vpop.f32.mrb[51].mxu0  ;;  %v7811_v32 = vpop.f32.mrb[47].mxu1  ;;  %v6834_v59 = vld [vmem:[%s9238_s1 + $0x8] sm:$0xff]  }
 0x209   :  { %9329 = vst [vmem:[#allocation54_spill] sm:$0xff] %v7804_v34  ;;  %9332 = vst [vmem:[#allocation57_spill] sm:$0xff] %v7811_v32  ;;  %v7820_v58 = vadd.f32 %v1286_v30, %v7357_v60  ;;  %v6626_v32 = vld [vmem:[%s9240_s4 + $0x90] sm:$0xff]   ;;  %v6631_v53 = vld [vmem:[%s9240_s4 + $0x48] sm:$0xff]  }
 0x20a   :  { %9331 = vst [vmem:[#allocation56_spill] sm:$0xff] %v7809_v31  ;;  %5585 = vmatmul.mubr.msk.bf16.gmra.mrb[100].mxu1 %vm213_vm1, %v7145_v35  ;;  %5589 = vmatmul.mubr.msk.bf16.vlgmr.msra.gmra.mrb[52].mxu0 %vm213_vm1, %v6834_v59  ;;  %v6625_v35 = vld [vmem:[%s9240_s4 + $0xd0] sm:$0xff]  }
 0x20b   :  { %9333 = vst [vmem:[#allocation58_spill] sm:$0xff] %v7820_v58  ;;  %2197 = vmatprep.mubr.bf16.mxu1 %v9325_v33  ;;  %2258 = vmatprep.mubr.bf16.mxu0 %v9325_v33 }
 0x20c   :  { %5832 = vmatpush3.bf16.msra.mxu0 %v6622_v1 }
 0x20d   :  { %v7833_v60 = vpop.f32.mrb[48].mxu1  ;;  %5833 = vmatprep.subr.bf16.mxu0 %v6623_v57  ;;  %v6835_v57 = vld [vmem:[%s9238_s1 + $0x10] sm:$0xff]  }
 0x20e   :  { %9334 = vst [vmem:[#allocation59_spill] sm:$0xff] %v7833_v60  ;;  %v7838_v61 = vpop.f32.mrb[49].mxu1  ;;  %v6629_v60 = vld [vmem:[%s9240_s4 + $0xd8] sm:$0xff]  }
 0x20f   :  { %9335 = vst [vmem:[#allocation60_spill] sm:$0xff] %v7838_v61  ;;  %v7840_v30 = vpop.f32.mrb[50].mxu1  ;;  %v6628_v61 = vld [vmem:[%s9240_s4] sm:$0xff]  }
 0x210   :  { %9336 = vst [vmem:[#allocation61_spill] sm:$0xff] %v7840_v30  ;;  %v7845_v1 = vpop.f32.mrb[51].mxu1  ;;  %5834 = vmatpush3.bf16.msra.mxu0 %v6624_v52  ;;  %v6630_v30 = vld [vmem:[%s9240_s4 + $0x98] sm:$0xff]  }
 0x211   :  { %9337 = vst [vmem:[#allocation62_spill] sm:$0xff] %v7845_v1  ;;  %5835 = vmatprep.subr.bf16.mxu0 %v6625_v35  ;;  %v6633_v35 = vld [vmem:[%s9240_s4 + $0xe0] sm:$0xff]  }
 0x212   :  { %5586 = vmatmul.mubr.msk.bf16.gmra.mrb[104].mxu1 %vm213_vm1, %v7785_v51  ;;  %5590 = vmatmul.mubr.msk.bf16.gmra.mrb[56].mxu0 %vm213_vm1, %v6835_v57 }
 0x213   :  { %2268 = vmatprep.mubr.bf16.mxu0 %v9325_v33  ;;  %2411 = vmatprep.mubr.bf16.mxu1 %v9325_v33 }
 0x214   :  { %5836 = vmatpush3.bf16.msra.mxu0 %v6626_v32 }
 0x215   :  { %v7861_v52 = vpop.f32.mrb[52].mxu1  ;;  %5837 = vmatprep.subr.bf16.mxu0 %v6629_v60  ;;  %v6634_v60 = vld [vmem:[%s9240_s4 + $0xa0] sm:$0xff]  }
 0x216   :  { %9338 = vst [vmem:[#allocation63_spill] sm:$0xff] %v7861_v52  ;;  %v7866_v1 = vpop.f32.mrb[53].mxu1 }
 0x217   :  { %9339 = vst [vmem:[#allocation64_spill] sm:$0xff] %v7866_v1  ;;  %v7871_v58 = vpop.f32.mrb[54].mxu1  ;;  %v6836_v1 = vld [vmem:[%s9238_s1 + $0x18] sm:$0xff]  }
 0x218   :  { %9340 = vst [vmem:[#allocation65_spill] sm:$0xff] %v7871_v58  ;;  %v7876_v32 = vpop.f32.mrb[55].mxu1  ;;  %5838 = vmatpush3.bf16.msra.mxu0 %v6630_v30  ;;  %v6632_v58 = vld [vmem:[%s9240_s4 + $0x8] sm:$0xff]   ;;  %v6635_v30 = vld [vmem:[%s9240_s4 + $0x50] sm:$0xff]  }
 0x219   :  { %9341 = vst [vmem:[#allocation66_spill] sm:$0xff] %v7876_v32  ;;  %5839 = vmatprep.subr.bf16.mxu0 %v6633_v35  ;;  %v6636_v35 = vld [vmem:[%s9240_s4 + $0x10] sm:$0xff]  }
 0x21a   :  { %5591 = vmatmul.mubr.msk.bf16.gmra.mrb[60].mxu0 %vm213_vm1, %v6836_v1  ;;  %5603 = vmatmul.mubr.msk.bf16.vlgmr.msra.gmra.mrb[56].mxu1 %vm213_vm1, %v6834_v59  ;;  %v6837_v59 = vld [vmem:[%s9238_s1 + $0x20] sm:$0xff]  }
 0x21b   :  { %2278 = vmatprep.mubr.bf16.mxu0 %v9325_v33  ;;  %2421 = vmatprep.mubr.bf16.mxu1 %v9325_v33 }
 0x21c   :  { %5854 = vmatpush3.bf16.msra.mxu1 %v6628_v61  ;;  %5840 = vmatpush3.bf16.msra.mxu0 %v6634_v60  ;;  %v6840_v61 = vld [vmem:[%s9238_s1 + $0x38] sm:$0xff]   ;;  %v6843_v60 = vld [vmem:[%s9238_s1 + $0x50] sm:$0xff]  }
 0x21d   :  { %5855 = vmatprep.subr.bf16.mxu1 %v6631_v53  ;;  %v6838_v53 = vld [vmem:[%s9238_s1 + $0x28] sm:$0xff]  }
 0x220   :  { %5856 = vmatpush3.bf16.msra.mxu1 %v6632_v58  ;;  %v6839_v58 = vld [vmem:[%s9238_s1 + $0x30] sm:$0xff]  }
 0x221   :  { %5857 = vmatprep.subr.bf16.mxu1 %v6635_v30  ;;  %v6844_v30 = vld [vmem:[%s9238_s1 + $0x58] sm:$0xff]  }
 0x222   :  { %5592 = vmatmul.mubr.msk.bf16.gmra.mrb[64].mxu0 %vm213_vm1, %v6837_v59  ;;  %5604 = vmatmul.mubr.msk.bf16.gmra.mrb[60].mxu1 %vm213_vm1, %v6835_v57  ;;  %v6842_v57 = vld [vmem:[%s9238_s1 + $0x48] sm:$0xff]  }
 0x223   :  { %2288 = vmatprep.mubr.bf16.mxu0 %v9325_v33  ;;  %2431 = vmatprep.mubr.bf16.mxu1 %v9325_v33 }
 0x224   :  { %5858 = vmatpush3.bf16.msra.mxu1 %v6636_v35  ;;  %v6637_v35 = vld [vmem:[%s9240_s4 + $0xe8] sm:$0xff]  }
 0x225   :  { %5841 = vmatprep.subr.bf16.mxu0 %v6637_v35  ;;  %v6642_v35 = vld [vmem:[%s9240_s4 + $0xb0] sm:$0xff]  }
 0x22a   :  { %5593 = vmatmul.mubr.msk.bf16.gmra.mrb[68].mxu0 %vm213_vm1, %v6838_v53  ;;  %5605 = vmatmul.mubr.msk.bf16.gmra.mrb[64].mxu1 %vm213_vm1, %v6836_v1  ;;  %v6841_v1 = vld [vmem:[%s9238_s1 + $0x40] sm:$0xff]  }
 0x22b   :  { %2298 = vmatprep.mubr.bf16.mxu0 %v9325_v33  ;;  %2441 = vmatprep.mubr.bf16.mxu1 %v9325_v33 }
 0x232   :  { %5594 = vmatmul.mubr.msk.bf16.gmra.mrb[72].mxu0 %vm213_vm1, %v6839_v58  ;;  %5606 = vmatmul.mubr.msk.bf16.gmra.mrb[68].mxu1 %vm213_vm1, %v6837_v59  ;;  %v6638_v59 = vld [vmem:[%s9240_s4 + $0xa8] sm:$0xff]  }
 0x233   :  { %2308 = vmatprep.mubr.bf16.mxu0 %v9325_v33  ;;  %2451 = vmatprep.mubr.bf16.mxu1 %v9325_v33 }
 0x234   :  { %5842 = vmatpush3.bf16.msra.mxu0 %v6638_v59  ;;  %v6646_v59 = vld [vmem:[%s9240_s4 + $0x28] sm:$0xff]  }
 0x23a   :  { %5595 = vmatmul.mubr.msk.bf16.gmra.mrb[76].mxu0 %vm213_vm1, %v6840_v61  ;;  %5607 = vmatmul.mubr.msk.bf16.gmra.mrb[72].mxu1 %vm213_vm1, %v6838_v53  ;;  %v6620_v53 = vld [vmem:[%s9238_s1 + $0x68] sm:$0xff]  }
 0x23b   :  { %2318 = vmatprep.mubr.bf16.mxu0 %v9325_v33  ;;  %2461 = vmatprep.mubr.bf16.mxu1 %v9325_v33 }
 0x242   :  { %5596 = vmatmul.mubr.msk.bf16.gmra.mrb[80].mxu0 %vm213_vm1, %v6841_v1  ;;  %5608 = vmatmul.mubr.msk.bf16.gmra.mrb[76].mxu1 %vm213_vm1, %v6839_v58  ;;  %v6639_v58 = vld [vmem:[%s9240_s4 + $0x58] sm:$0xff]  }
 0x243   :  { %2328 = vmatprep.mubr.bf16.mxu0 %v9325_v33  ;;  %2471 = vmatprep.mubr.bf16.mxu1 %v9325_v33 }
 0x244   :  { %5859 = vmatprep.subr.bf16.mxu1 %v6639_v58  ;;  %v6647_v58 = vld [vmem:[%s9240_s4 + $0x70] sm:$0xff]  }
 0x24a   :  { %5597 = vmatmul.mubr.msk.bf16.gmra.mrb[84].mxu0 %vm213_vm1, %v6842_v57  ;;  %5609 = vmatmul.mubr.msk.bf16.gmra.mrb[80].mxu1 %vm213_vm1, %v6840_v61  ;;  %v6640_v61 = vld [vmem:[%s9240_s4 + $0x18] sm:$0xff]  }
 0x24b   :  { %2338 = vmatprep.mubr.bf16.mxu0 %v9325_v33  ;;  %2481 = vmatprep.mubr.bf16.mxu1 %v9325_v33 }
 0x24c   :  { %5860 = vmatpush3.bf16.msra.mxu1 %v6640_v61  ;;  %v6648_v61 = vld [vmem:[%s9240_s4 + $0x30] sm:$0xff]  }
 0x252   :  { %5598 = vmatmul.mubr.msk.bf16.gmra.mrb[88].mxu0 %vm213_vm1, %v6843_v60  ;;  %5610 = vmatmul.mubr.msk.bf16.gmra.mrb[84].mxu1 %vm213_vm1, %v6841_v1  ;;  %v6643_v1 = vld [vmem:[%s9240_s4 + $0x60] sm:$0xff]  }
 0x253   :  { %2348 = vmatprep.mubr.bf16.mxu0 %v9325_v33  ;;  %2491 = vmatprep.mubr.bf16.mxu1 %v9325_v33 }
 0x254   :  { %5861 = vmatprep.subr.bf16.mxu1 %v6643_v1  ;;  %v6650_v1 = vld [vmem:[%s9240_s4 + $0x78] sm:$0xff]  }
 0x25a   :  { %5599 = vmatmul.mubr.msk.bf16.gmra.mrb[92].mxu0 %vm213_vm1, %v6844_v30  ;;  %5611 = vmatmul.mubr.msk.bf16.gmra.mrb[88].mxu1 %vm213_vm1, %v6842_v57  ;;  %v6644_v57 = vld [vmem:[%s9240_s4 + $0x20] sm:$0xff]  }
 0x25b   :  { %2358 = vmatprep.mubr.bf16.mxu0 %v9325_v33  ;;  %2501 = vmatprep.mubr.bf16.mxu1 %v9325_v33 }
 0x25c   :  { %5862 = vmatpush3.bf16.msra.mxu1 %v6644_v57  ;;  %v6652_v57 = vld [vmem:[%s9240_s4 + $0x38] sm:$0xff]  }
 0x262   :  { %5600 = vmatmul.mubr.msk.bf16.gmra.mrb[96].mxu0 %vm213_vm1, %v7785_v51  ;;  %5612 = vmatmul.mubr.msk.bf16.gmra.mrb[92].mxu1 %vm213_vm1, %v6843_v60  ;;  %v6641_v60 = vld [vmem:[%s9240_s4 + $0xf0] sm:$0xff]  }
 0x263   :  { %2368 = vmatprep.mubr.bf16.mxu0 %v9325_v33  ;;  %2511 = vmatprep.mubr.bf16.mxu1 %v9325_v33 }
 0x264   :  { %5843 = vmatprep.subr.bf16.mxu0 %v6641_v60  ;;  %v6651_v60 = vld [vmem:[%s9240_s4 + $0xb8] sm:$0xff]  }
 0x265   :  { %5844 = vmatpush3.bf16.msra.mxu0 %v6642_v35  ;;  %v6657_v35 = vld [vmem:[%s9240_s4 + $0x140] sm:$0xff]  }
 0x26a   :  { %5601 = vmatmul.mubr.msk.bf16.gmra.mrb[100].mxu0 %vm213_vm1, %v6620_v53  ;;  %5613 = vmatmul.mubr.msk.bf16.gmra.mrb[96].mxu1 %vm213_vm1, %v6844_v30  ;;  %v6645_v30 = vld [vmem:[%s9240_s4 + $0x68] sm:$0xff]  }
 0x26b   :  { %2521 = vmatprep.mubr.bf16.mxu1 %v9325_v33  ;;  %5863 = vmatprep.subr.bf16.mxu1 %v6645_v30 }
 0x26c   :  { %5864 = vmatpush3.bf16.msra.mxu1 %v6646_v59  ;;  %v2752_v59 = vlaneseq }
 0x26d   :  { %5865 = vmatprep.subr.bf16.mxu1 %v6647_v58 }
 0x270   :  { %5866 = vmatpush3.bf16.msra.mxu1 %v6648_v61 }
 0x271   :  { %5867 = vmatprep.subr.bf16.mxu1 %v6650_v1 }
 0x272   :  { %5614 = vmatmul.mubr.msk.bf16.gmra.mrb[100].mxu1 %vm213_vm1, %v7785_v51  ;;  %v6653_v51 = vld [vmem:[%s9240_s4 + $0x1c0] sm:$0xff]  }
 0x273   :  { %2531 = vmatprep.mubr.bf16.mxu1 %v9325_v33  ;;  %v6649_v33 = vld [vmem:[%s9240_s4 + $0xf8] sm:$0xff]  }
 0x274   :  { %5868 = vmatpush3.bf16.msra.mxu1 %v6652_v57  ;;  %5845 = vmatprep.subr.bf16.mxu0 %v6649_v33  ;;  %v2753_v33 = vshrl.u32 %v2752_v59, 7 }
 0x275   :  { %5897 = vmatprep.subr.bf16.mxu1 %v6653_v51  ;;  %5846 = vmatpush3.bf16.msra.mxu0 %v6651_v60 }
 0x276   :  { %5875 = vmatprep.subr.bf16.mxu0 %v6657_v35  ;;  %v2754_v52 = vsub.s32 0, %v2753_v33  ;;  %v2758_v35 = vsub.s32 1, %v2753_v33  ;;  %v2766_v59 = vsub.s32 3, %v2753_v33 }
 0x27a   :  { %5615 = vmatmul.mubr.msk.bf16.gmra.mrb[104].mxu1 %vm213_vm1, %v6620_v53 }
 0x2dd   :  { %v2250_v53 = vpop.f32.mrb[52].mxu0 }
 0x2de   :  { %v2646_v30 = vmax.f32 %v7530_v62, %v2250_v53  ;;  %v2252_v58 = vpop.f32.mrb[53].mxu0  ;;  %v2750_v62 = vld [vmem:[%s9241_s3] sm:$0xf] }
 0x2df   :  { %v2647_v61 = vmax.f32 %v7534_v63, %v2252_v58  ;;  %v2254_v1 = vpop.f32.mrb[54].mxu0 }
 0x2e0   :  { %v2650_v57 = vmax.f32 %v7536_v0, %v2254_v1  ;;  %v2256_v51 = vpop.f32.mrb[55].mxu0  ;;  %v2762_v1 = vsub.s32 2, %v2753_v33 }
 0x2e1   :  { %v2651_v32 = vmax.f32 %v7538_v2, %v2256_v51  ;;  %v8036_v51 = vrot.slane %v2750_v62, %v2754_v52 }
 0x2e5   :  { %v2260_v60 = vpop.f32.mrb[56].mxu0 }
 0x2e6   :  { %v2654_v31 = vmax.f32 %v7547_v3, %v2260_v60  ;;  %v2262_v54 = vpop.f32.mrb[57].mxu0  ;;  %v8038_v3 = vrot.slane %v2750_v62, %v2758_v35  ;;  %v8040_v60 = vrot.slane %v2750_v62, %v2762_v1 }
 0x2e7   :  { %v2655_v53 = vmax.f32 %v7549_v4, %v2262_v54  ;;  %v2264_v63 = vpop.f32.mrb[58].mxu0  ;;  %v8044_v4 = vrot.slane %v2750_v62, %v2766_v59 }
 0x2e8   :  { %v2658_v58 = vmax.f32 %v7551_v5, %v2264_v63  ;;  %v8032_v0 = vpop.f32.mrb[59].mxu0  ;;  %v2772_v5 = vadd.f32 %v8036_v51, %v2646_v30  ;;  %v2773_v33 = vadd.f32 %v8038_v3, %v2647_v61  ;;  %v2776_v30 = vadd.f32 %v8036_v51, %v2650_v57 }
 0x2e9   :  { %v2659_v2 = vmax.f32 %v7553_v7, %v8032_v0  ;;  %v2777_v55 = vadd.f32 %v8038_v3, %v2651_v32 }
 0x2ea   :  { %v2876_v57 = vmax.f32 %v2772_v5, 0.0  ;;  %v2877_v28 = vmax.f32 %v2773_v33, 0.0 }
 0x2eb   :  { %v2881_v48 = vmax.f32 %v2777_v55, 0.0 }
 0x2ed   :  { %v8042_v34 = vpop.f32.mrb[60].mxu0  ;;  %v2413_v56 = vpop.f32.mrb[56].mxu1 }
 0x2ee   :  { %v2648_v63 = vmax.f32 %v7566_v9, %v2413_v56  ;;  %v8050_v7 = vpop.f32.mrb[61].mxu0  ;;  %v2415_v52 = vpop.f32.mrb[57].mxu1 }
 0x2ef   :  { %v2649_v0 = vmax.f32 %v7570_v11, %v2415_v52  ;;  %v8056_v1 = vpop.f32.mrb[62].mxu0  ;;  %v2417_v62 = vpop.f32.mrb[58].mxu1  ;;  %v2780_v11 = vadd.f32 %v8036_v51, %v2654_v31 }
 0x2f0   :  { %v2774_v59 = vadd.f32 %v8040_v60, %v2648_v63  ;;  %v2652_v56 = vmax.f32 %v7574_v6, %v2417_v62  ;;  %v8063_v54 = vpop.f32.mrb[63].mxu0  ;;  %v2419_v61 = vpop.f32.mrb[59].mxu1  ;;  %v2880_v62 = vmax.f32 %v2776_v30, 0.0 }
 0x2f1   :  { %v2775_v35 = vadd.f32 %v8044_v4, %v2649_v0  ;;  %v2653_v52 = vmax.f32 %v7579_v14, %v2419_v61 }
 0x2f2   :  { %v2878_v29 = vmax.f32 %v2774_v59, 0.0  ;;  %v2778_v63 = vadd.f32 %v8040_v60, %v2652_v56 }
 0x2f3   :  { %v2879_v9 = vmax.f32 %v2775_v35, 0.0  ;;  %v2779_v6 = vadd.f32 %v8044_v4, %v2653_v52 }
 0x2f4   :  { %v2980_v50 = vmax.f32 %v2876_v57, %v2878_v29  ;;  %v2882_v49 = vmax.f32 %v2778_v63, 0.0  ;;  %v2781_v29 = vadd.f32 %v8038_v3, %v2655_v53  ;;  %v2884_v57 = vmax.f32 %v2780_v11, 0.0 }
 0x2f5   :  { %v2981_v32 = vmax.f32 %v2877_v28, %v2879_v9  ;;  %v2883_v26 = vmax.f32 %v2779_v6, 0.0  ;;  %v8072_v0 = vpop.f32.mrb[64].mxu0  ;;  %v2423_v47 = vpop.f32.mrb[60].mxu1 }
 0x2f6   :  { %v2982_v14 = vmax.f32 %v2880_v62, %v2882_v49  ;;  %v2670_v5 = vmax.f32 %v7587_v15, %v8072_v0  ;;  %v2656_v33 = vmax.f32 %v7589_v17, %v2423_v47  ;;  %v8078_v35 = vpop.f32.mrb[65].mxu0  ;;  %v2425_v59 = vpop.f32.mrb[61].mxu1  ;;  %v2784_v49 = vadd.f32 %v8036_v51, %v2658_v58  ;;  %v6662_v15 = vld [vmem:[%s9240_s4 + $0x1d8] sm:$0xff]  }
 0x2f7   :  { %v2983_v30 = vmax.f32 %v2881_v48, %v2883_v26  ;;  %v2671_v28 = vmax.f32 %v7591_v18, %v8078_v35  ;;  %v2657_v55 = vmax.f32 %v7593_v19, %v2425_v59  ;;  %v8084_v9 = vpop.f32.mrb[66].mxu0  ;;  %v2427_v31 = vpop.f32.mrb[62].mxu1  ;;  %v2785_v26 = vadd.f32 %v8038_v3, %v2659_v2 }
 0x2f8   :  { %v3032_v56 = vpack.c.bf16 %v2982_v14, %v2980_v50  ;;  %v2782_v61 = vadd.f32 %v8040_v60, %v2656_v33  ;;  %v2674_v17 = vmax.f32 %v7595_v20, %v8084_v9  ;;  %v8090_v47 = vpop.f32.mrb[67].mxu0  ;;  %v2429_v53 = vpop.f32.mrb[63].mxu1  ;;  %v2660_v19 = vmax.f32 %v7597_v21, %v2427_v31  ;;  %v6654_v21 = vld [vmem:[%s9240_s4 + $0x180] sm:$0xff]   ;;  %v6664_v20 = vld [vmem:[%s9240_s4 + $0x198] sm:$0xff]  }
 0x2f9   :  { %v2783_v48 = vadd.f32 %v8044_v4, %v2657_v55  ;;  %v2675_v52 = vmax.f32 %v7599_v23, %v8090_v47  ;;  %v2661_v50 = vmax.f32 %v7601_v24, %v2429_v53  ;;  %v2885_v63 = vmax.f32 %v2781_v29, 0.0  ;;  %v6655_v29 = vld [vmem:[%s9240_s4 + $0x1c8] sm:$0xff]  }
 0x2fa   :  { %v2886_v58 = vmax.f32 %v2782_v61, 0.0  ;;  %v2786_v62 = vadd.f32 %v8040_v60, %v2660_v19  ;;  %v3033_v2 = vpack.c.bf16 %v2983_v30, %v2981_v32  ;;  %v2888_v59 = vmax.f32 %v2784_v49, 0.0 }
 0x2fb   :  { %v2887_v6 = vmax.f32 %v2783_v48, 0.0  ;;  %v2787_v33 = vadd.f32 %v8044_v4, %v2661_v50  ;;  %v2889_v55 = vmax.f32 %v2785_v26, 0.0  ;;  %v9342_v53 = vmax.f32 %v7564_v8, %v8042_v34 }
 0x2fc   :  { %v8099_v14 = vmax.f32 %v2884_v57, %v2886_v58  ;;  %v2890_v11 = vmax.f32 %v2786_v62, 0.0  ;;  %3739 = vmatprep.mubr.bf16.mxu1 %v3033_v2  ;;  %v9343_v57 = vmax.f32 %v7568_v10, %v8050_v7  ;;  %v2801_v9 = vadd.f32 %v8038_v3, %v2675_v52 }
 0x2fd   :  { %v2985_v31 = vmax.f32 %v2885_v63, %v2887_v6  ;;  %v8105_v61 = vpop.f32.mrb[68].mxu0  ;;  %v2433_v24 = vpop.f32.mrb[64].mxu1  ;;  %v2788_v32 = vadd.f32 %v8036_v51, %v9342_v53  ;;  %v2891_v30 = vmax.f32 %v2787_v33, 0.0  ;;  %3740 = vmatmul.mubr.bf16.vlgmr.msra.gmra.mrb[108].mxu1 %v3032_v56 }
 0x2fe   :  { %v2678_v49 = vmax.f32 %v7609_v16, %v8105_v61  ;;  %v2664_v26 = vmax.f32 %v7611_v25, %v2433_v24  ;;  %v8117_v48 = vpop.f32.mrb[69].mxu0  ;;  %v2435_v19 = vpop.f32.mrb[65].mxu1  ;;  %v2789_v58 = vadd.f32 %v8038_v3, %v9343_v57  ;;  %v2986_v50 = vmax.f32 %v2888_v59, %v2890_v11  ;;  %5898 = vmatpush3.bf16.msra.mxu1 %v6654_v21  ;;  %v6658_v11 = vld [vmem:[%s9240_s4 + $0x1d0] sm:$0xff]  }
 0x2ff   :  { %v2679_v8 = vmax.f32 %v7613_v27, %v8117_v48  ;;  %v2665_v34 = vmax.f32 %v7615_v36, %v2435_v19  ;;  %v8126_v63 = vpop.f32.mrb[70].mxu0  ;;  %v2437_v6 = vpop.f32.mrb[66].mxu1  ;;  %v9344_v25 = vmax.f32 %v7572_v12, %v8056_v1  ;;  %v2987_v33 = vmax.f32 %v2889_v55, %v2891_v30  ;;  %v6656_v36 = vld [vmem:[%s9240_s4 + $0x188] sm:$0xff]   ;;  %5899 = vmatprep.subr.bf16.mxu1 %v6655_v29  ;;  %v6659_v29 = vld [vmem:[%s9240_s4 + $0x100] sm:$0xff]   ;;  %v6671_v48 = vld [vmem:[%s9240_s4 + $0x118] sm:$0xff]  }
 0x300   :  { %v2790_v10 = vadd.f32 %v8040_v60, %v2664_v26  ;;  %v2682_v7 = vmax.f32 %v7617_v37, %v8126_v63  ;;  %v8135_v56 = vpop.f32.mrb[71].mxu0  ;;  %v2439_v2 = vpop.f32.mrb[67].mxu1  ;;  %v9345_v59 = vmax.f32 %v7577_v13, %v8063_v54  ;;  %v3034_v1 = vpack.c.bf16 %v2986_v50, %v8099_v14 }
 0x301   :  { %v2792_v62 = vadd.f32 %v8036_v51, %v9344_v25  ;;  %v2791_v21 = vadd.f32 %v8044_v4, %v2665_v34  ;;  %v2668_v55 = vmax.f32 %v7619_v38, %v2437_v6  ;;  %v2892_v24 = vmax.f32 %v2788_v32, 0.0  ;;  %v6660_v32 = vld [vmem:[%s9240_s4 + $0x190] sm:$0xff]  }
 0x302   :  { %v2793_v12 = vadd.f32 %v8038_v3, %v9345_v59  ;;  %v2894_v53 = vmax.f32 %v2790_v10, 0.0  ;;  %v2683_v30 = vmax.f32 %v7621_v39, %v8135_v56  ;;  %v2893_v26 = vmax.f32 %v2789_v58, 0.0  ;;  %5900 = vmatpush3.bf16.msra.mxu1 %v6656_v36  ;;  %v6676_v39 = vld [vmem:[%s9240_s4 + $0x1b0] sm:$0xff]  }
 0x303   :  { %v2895_v13 = vmax.f32 %v2791_v21, 0.0  ;;  %v2794_v54 = vadd.f32 %v8040_v60, %v2668_v55  ;;  %v2669_v14 = vmax.f32 %v7623_v40, %v2439_v2  ;;  %v2896_v19 = vmax.f32 %v2792_v62, 0.0  ;;  %5901 = vmatprep.subr.bf16.mxu1 %v6658_v11 }
 0x304   :  { %v8154_v57 = vmax.f32 %v2892_v24, %v2894_v53  ;;  %v3035_v38 = vpack.c.bf16 %v2987_v33, %v2985_v31  ;;  %v2897_v50 = vmax.f32 %v2793_v12, 0.0  ;;  %v6661_v31 = vld [vmem:[%s9240_s4 + $0x148] sm:$0xff]   ;;  %v2796_v62 = vadd.f32 %v8036_v51, %v2670_v5 }
 0x305   :  { %v8162_v58 = vmax.f32 %v2893_v26, %v2895_v13  ;;  %v2898_v34 = vmax.f32 %v2794_v54, 0.0  ;;  %v2795_v6 = vadd.f32 %v8044_v4, %v2669_v14  ;;  %v8165_v40 = vpop.f32.mrb[72].mxu0  ;;  %v2443_v25 = vpop.f32.mrb[68].mxu1  ;;  %v2797_v33 = vadd.f32 %v8038_v3, %v2671_v28  ;;  %v6665_v26 = vld [vmem:[%s9240_s4 + $0x150] sm:$0xff]   ;;  %v6666_v13 = vld [vmem:[%s9240_s4 + $0x1e0] sm:$0xff]  }
 0x306   :  { %3602 = vmatprep.mubr.bf16.mxu0 %v3035_v38  ;;  %v2686_v10 = vmax.f32 %v7631_v22, %v8165_v40  ;;  %v2672_v2 = vmax.f32 %v7633_v41, %v2443_v25  ;;  %v8181_v36 = vpop.f32.mrb[73].mxu0  ;;  %v2445_v59 = vpop.f32.mrb[69].mxu1  ;;  %v2800_v41 = vadd.f32 %v8036_v51, %v2674_v17  ;;  %5902 = vmatpush3.bf16.msra.mxu1 %v6660_v32  ;;  %v2900_v54 = vmax.f32 %v2796_v62, 0.0  ;;  %v9346_v38 = vld [vmem:[#allocation2_spill] sm:$0xff]  ;;  %v9355_v22 = vld [vmem:[#allocation11_spill] sm:$0xff] }
 0x307   :  { %v8186_v0 = vmax.f32 %v2896_v19, %v2898_v34  ;;  %v2899_v5 = vmax.f32 %v2795_v6, 0.0  ;;  %3603 = vmatmul.mubr.bf16.vlgmr.msra.gmra.mrb[104].mxu0 %v3034_v1  ;;  %v2687_v18 = vmax.f32 %v7635_v42, %v8181_v36  ;;  %v2673_v35 = vmax.f32 %v7637_v43, %v2445_v59  ;;  %v8191_v28 = vpop.f32.mrb[74].mxu0  ;;  %v2447_v12 = vpop.f32.mrb[70].mxu1  ;;  %v6663_v43 = vld [vmem:[%s9240_s4 + $0x108] sm:$0xff]   ;;  %5903 = vmatprep.subr.bf16.mxu1 %v6662_v15  ;;  %v6668_v6 = vld [vmem:[%s9240_s4 + $0x1a0] sm:$0xff]  }
 0x308   :  { %5876 = vmatpush3.bf16.msra.mxu0 %v6659_v29  ;;  %v2798_v21 = vadd.f32 %v8040_v60, %v2672_v2  ;;  %v2690_v1 = vmax.f32 %v7639_v44, %v8191_v28  ;;  %v8200_v55 = vpop.f32.mrb[75].mxu0  ;;  %v2449_v11 = vpop.f32.mrb[71].mxu1  ;;  %v2676_v23 = vmax.f32 %v7641_v45, %v2447_v12  ;;  %v2901_v47 = vmax.f32 %v2797_v33, 0.0  ;;  %v6667_v45 = vld [vmem:[%s9240_s4 + $0x110] sm:$0xff]   ;;  %v9369_v44 = vld [vmem:[#allocation25_spill] sm:$0xff] }
 0x309   :  { %v3036_v17 = vpack.c.bf16 %v8186_v0, %v8154_v57  ;;  %v2991_v24 = vmax.f32 %v2897_v50, %v2899_v5  ;;  %v2799_v53 = vadd.f32 %v8044_v4, %v2673_v35  ;;  %5877 = vmatprep.subr.bf16.mxu0 %v6661_v31  ;;  %v2691_v19 = vmax.f32 %v7643_v46, %v8200_v55  ;;  %v9347_v35 = vld [vmem:[#allocation3_spill] sm:$0xff]  ;;  %v6684_v46 = vld [vmem:[%s9240_s4 + $0x280] sm:$0xff]  }
 0x30a   :  { %v2902_v14 = vmax.f32 %v2798_v21, 0.0  ;;  %v2677_v29 = vmax.f32 %v9346_v38, %v2449_v11  ;;  %v2802_v50 = vadd.f32 %v8040_v60, %v2676_v23  ;;  %5904 = vmatpush3.bf16.msra.mxu1 %v6664_v20  ;;  %v2904_v25 = vmax.f32 %v2800_v41, 0.0  ;;  %v9348_v41 = vld [vmem:[#allocation4_spill] sm:$0xff]  ;;  %v6670_v20 = vld [vmem:[%s9240_s4 + $0x1e8] sm:$0xff]  }
 0x30b   :  { %v2903_v52 = vmax.f32 %v2799_v53, 0.0  ;;  %v3037_v34 = vpack.c.bf16 %v2991_v24, %v8162_v58  ;;  %v2905_v31 = vmax.f32 %v2801_v9, 0.0  ;;  %5905 = vmatprep.subr.bf16.mxu1 %v6666_v13  ;;  %v6669_v58 = vld [vmem:[%s9240_s4 + $0x158] sm:$0xff]   ;;  %v2804_v15 = vadd.f32 %v8036_v51, %v2678_v49  ;;  %v9350_v24 = vld [vmem:[#allocation6_spill] sm:$0xff] }
 0x30c   :  { %v8225_v32 = vmax.f32 %v2900_v54, %v2902_v14  ;;  %5878 = vmatpush3.bf16.msra.mxu0 %v6663_v43  ;;  %v2803_v33 = vadd.f32 %v8044_v4, %v2677_v29  ;;  %v2906_v5 = vmax.f32 %v2802_v50, 0.0  ;;  %v2805_v16 = vadd.f32 %v8038_v3, %v2679_v8  ;;  %v9349_v49 = vld [vmem:[#allocation5_spill] sm:$0xff]  ;;  %v6672_v8 = vld [vmem:[%s9240_s4 + $0x1a8] sm:$0xff]  }
 0x30d   :  { %v8235_v62 = vmax.f32 %v2901_v47, %v2903_v52  ;;  %5879 = vmatprep.subr.bf16.mxu0 %v6665_v26  ;;  %v8238_v2 = vpop.f32.mrb[76].mxu0  ;;  %v2453_v59 = vpop.f32.mrb[72].mxu1  ;;  %3876 = vmatprep.mubr.bf16.mxu0 %v3037_v34  ;;  %v2808_v47 = vadd.f32 %v8036_v51, %v2682_v7  ;;  %v9351_v29 = vld [vmem:[#allocation7_spill] sm:$0xff]  ;;  %v6673_v34 = vld [vmem:[%s9240_s4 + $0x160] sm:$0xff]   ;;  %v9352_v7 = vld [vmem:[#allocation8_spill] sm:$0xff] }
 0x30e   :  { %v2694_v12 = vmax.f32 %v9347_v35, %v8238_v2  ;;  %v2680_v21 = vmax.f32 %v9348_v41, %v2453_v59  ;;  %v8250_v11 = vpop.f32.mrb[77].mxu0  ;;  %v2455_v43 = vpop.f32.mrb[73].mxu1  ;;  %v2907_v61 = vmax.f32 %v2803_v33, 0.0  ;;  %v8264_v54 = vmax.f32 %v2904_v25, %v2906_v5  ;;  %5906 = vmatpush3.bf16.msra.mxu1 %v6668_v6 }
 0x30f   :  { %v2695_v9 = vmax.f32 %v9349_v49, %v8250_v11  ;;  %v2681_v53 = vmax.f32 %v9350_v24, %v2455_v43  ;;  %v8262_v26 = vpop.f32.mrb[78].mxu0  ;;  %v2457_v13 = vpop.f32.mrb[74].mxu1  ;;  %v2908_v6 = vmax.f32 %v2804_v15, 0.0  ;;  %5907 = vmatprep.subr.bf16.mxu1 %v6670_v20  ;;  %v2809_v33 = vadd.f32 %v8038_v3, %v2683_v30  ;;  %v6675_v20 = vld [vmem:[%s9240_s4 + $0x120] sm:$0xff]  }
 0x310   :  { %5880 = vmatpush3.bf16.msra.mxu0 %v6667_v45  ;;  %v2806_v14 = vadd.f32 %v8040_v60, %v2680_v21  ;;  %v8267_v23 = vpop.f32.mrb[79].mxu0  ;;  %v2459_v27 = vpop.f32.mrb[75].mxu1  ;;  %v2995_v52 = vmax.f32 %v2905_v31, %v2907_v61  ;;  %v2698_v50 = vmax.f32 %v9351_v29, %v8262_v26  ;;  %v6674_v45 = vld [vmem:[%s9240_s4 + $0x1f0] sm:$0xff]   ;;  %v3038_v37 = vpack.c.bf16 %v8264_v54, %v8225_v32  ;;  %v9354_v21 = vld [vmem:[#allocation10_spill] sm:$0xff]  ;;  %v6687_v32 = vld [vmem:[%s9240_s4 + $0x138] sm:$0xff]  }
 0x311   :  { %v2807_v38 = vadd.f32 %v8044_v4, %v2681_v53  ;;  %5881 = vmatprep.subr.bf16.mxu0 %v6669_v58  ;;  %v2684_v25 = vmax.f32 %v9352_v7, %v2457_v13  ;;  %v2909_v31 = vmax.f32 %v2805_v16, 0.0  ;;  %v9353_v58 = vld [vmem:[#allocation9_spill] sm:$0xff]  ;;  %v2685_v43 = vmax.f32 %v9354_v21, %v2459_v27  ;;  %v6677_v13 = vld [vmem:[%s9240_s4 + $0x168] sm:$0xff]  }
 0x312   :  { %v2910_v63 = vmax.f32 %v2806_v14, 0.0  ;;  %v2699_v5 = vmax.f32 %v9353_v58, %v8267_v23  ;;  %5908 = vmatpush3.bf16.msra.mxu1 %v6672_v8  ;;  %v2912_v56 = vmax.f32 %v2808_v47, 0.0  ;;  %v2812_v30 = vadd.f32 %v8036_v51, %v2686_v10  ;;  %v9356_v10 = vld [vmem:[#allocation12_spill] sm:$0xff]  ;;  %v6680_v21 = vld [vmem:[%s9240_s4 + $0x1b8] sm:$0xff]   ;;  %v6688_v54 = vld [vmem:[%s9240_s4 + $0x288] sm:$0xff]  }
 0x313   :  { %v2911_v59 = vmax.f32 %v2807_v38, 0.0  ;;  %v2810_v15 = vadd.f32 %v8040_v60, %v2684_v25  ;;  %5909 = vmatprep.subr.bf16.mxu1 %v6674_v45  ;;  %v3039_v61 = vpack.c.bf16 %v2995_v52, %v8235_v62  ;;  %v2811_v27 = vadd.f32 %v8044_v4, %v2685_v43  ;;  %v6678_v62 = vld [vmem:[%s9240_s4 + $0x1f8] sm:$0xff]   ;;  %v9358_v45 = vld [vmem:[#allocation14_spill] sm:$0xff] }
 0x314   :  { %v8297_v41 = vmax.f32 %v2908_v6, %v2910_v63  ;;  %5882 = vmatpush3.bf16.msra.mxu0 %v6671_v48  ;;  %v2813_v52 = vadd.f32 %v8038_v3, %v2687_v18  ;;  %v9357_v38 = vld [vmem:[#allocation13_spill] sm:$0xff]  ;;  %v2913_v25 = vmax.f32 %v2809_v33, 0.0  ;;  %v6679_v18 = vld [vmem:[%s9240_s4 + $0x128] sm:$0xff]   ;;  %v2816_v33 = vadd.f32 %v8036_v51, %v2690_v1 }
 0x315   :  { %v8311_v16 = vmax.f32 %v2909_v31, %v2911_v59  ;;  %5883 = vmatprep.subr.bf16.mxu0 %v6673_v34  ;;  %v8314_v24 = vpop.f32.mrb[80].mxu0  ;;  %v2463_v53 = vpop.f32.mrb[76].mxu1  ;;  %v2914_v14 = vmax.f32 %v2810_v15, 0.0  ;;  %4015 = vmatprep.mubr.bf16.mxu1 %v3039_v61  ;;  %v2915_v59 = vmax.f32 %v2811_v27, 0.0  ;;  %v2916_v27 = vmax.f32 %v2812_v30, 0.0  ;;  %v9361_v30 = vld [vmem:[#allocation17_spill] sm:$0xff] }
 0x316   :  { %v2702_v40 = vmax.f32 %v9355_v22, %v8314_v24  ;;  %v2688_v48 = vmax.f32 %v9356_v10, %v2463_v53  ;;  %v8323_v8 = vpop.f32.mrb[81].mxu0  ;;  %v2465_v47 = vpop.f32.mrb[77].mxu1  ;;  %5910 = vmatpush3.bf16.msra.mxu1 %v6676_v39  ;;  %v6681_v53 = vld [vmem:[%s9240_s4 + $0x170] sm:$0xff]   ;;  %v2917_v10 = vmax.f32 %v2813_v52, 0.0  ;;  %v2920_v55 = vmax.f32 %v2816_v33, 0.0  ;;  %v9363_v33 = vld [vmem:[#allocation19_spill] sm:$0xff] }
 0x317   :  { %v2703_v34 = vmax.f32 %v9357_v38, %v8323_v8  ;;  %v2689_v6 = vmax.f32 %v9358_v45, %v2465_v47  ;;  %v8335_v63 = vpop.f32.mrb[82].mxu0  ;;  %v2467_v7 = vpop.f32.mrb[78].mxu1  ;;  %v8337_v31 = vmax.f32 %v2912_v56, %v2914_v14  ;;  %v9360_v56 = vld [vmem:[#allocation16_spill] sm:$0xff]  ;;  %v6682_v14 = vld [vmem:[%s9240_s4 + $0x2c0] sm:$0xff]   ;;  %v8364_v28 = vmax.f32 %v2913_v25, %v2915_v59  ;;  %5911 = vmatprep.subr.bf16.mxu1 %v6678_v62  ;;  %v9371_v24 = vld [vmem:[#allocation27_spill] sm:$0xff] }
 0x318   :  { %5884 = vmatpush3.bf16.msra.mxu0 %v6675_v20  ;;  %v2814_v15 = vadd.f32 %v8040_v60, %v2688_v48  ;;  %v8340_v42 = vpop.f32.mrb[83].mxu0  ;;  %v2469_v36 = vpop.f32.mrb[79].mxu1  ;;  %v9359_v20 = vld [vmem:[#allocation15_spill] sm:$0xff]  ;;  %v2692_v61 = vmax.f32 %v9360_v56, %v2467_v7  ;;  %v9362_v7 = vld [vmem:[#allocation18_spill] sm:$0xff]  ;;  %v6683_v62 = vld [vmem:[%s9240_s4 + $0x130] sm:$0xff]   ;;  %v2821_v2 = vadd.f32 %v8038_v3, %v2695_v9  ;;  %v2828_v23 = vadd.f32 %v8036_v51, %v2702_v40 }
 0x319   :  { %v2815_v43 = vadd.f32 %v8044_v4, %v2689_v6  ;;  %v2706_v39 = vmax.f32 %v9359_v20, %v8335_v63  ;;  %5885 = vmatprep.subr.bf16.mxu0 %v6677_v13  ;;  %v2817_v13 = vadd.f32 %v8038_v3, %v2691_v19  ;;  %v2707_v6 = vmax.f32 %v9361_v30, %v8340_v42  ;;  %v9372_v40 = vld [vmem:[#allocation28_spill] sm:$0xff]  ;;  %v6695_v8 = vld [vmem:[%s9240_s4 + $0x208] sm:$0xff]  }
 0x31a   :  { %v2918_v1 = vmax.f32 %v2814_v15, 0.0  ;;  %v2818_v47 = vadd.f32 %v8040_v60, %v2692_v61  ;;  %v2693_v56 = vmax.f32 %v9362_v7, %v2469_v36  ;;  %5912 = vmatpush3.bf16.msra.mxu1 %v6680_v21  ;;  %v6685_v15 = vld [vmem:[%s9240_s4 + $0x178] sm:$0xff]   ;;  %v3041_v36 = vpack.c.bf16 %v8364_v28, %v8311_v16  ;;  %v9364_v61 = vld [vmem:[#allocation20_spill] sm:$0xff]  ;;  %v9375_v16 = vld [vmem:[#allocation31_spill] sm:$0xff] }
 0x31b   :  { %v2919_v48 = vmax.f32 %v2815_v43, 0.0  ;;  %5941 = vmatprep.subr.bf16.mxu1 %v6682_v14  ;;  %v2832_v38 = vadd.f32 %v8036_v51, %v2706_v39 }
 0x31c   :  { %v8371_v45 = vmax.f32 %v2916_v27, %v2918_v1  ;;  %5886 = vmatpush3.bf16.msra.mxu0 %v6679_v18  ;;  %v2922_v52 = vmax.f32 %v2818_v47, 0.0  ;;  %v2820_v18 = vadd.f32 %v8036_v51, %v2694_v12  ;;  %v2819_v21 = vadd.f32 %v8044_v4, %v2693_v56  ;;  %v6686_v1 = vld [vmem:[%s9240_s4 + $0x2c8] sm:$0xff]   ;;  %v9365_v12 = vld [vmem:[#allocation21_spill] sm:$0xff] }
 0x31d   :  { %v8382_v19 = vmax.f32 %v2917_v10, %v2919_v48  ;;  %5887 = vmatprep.subr.bf16.mxu0 %v6681_v53  ;;  %v8384_v25 = vpop.f32.mrb[84].mxu0  ;;  %v2473_v59 = vpop.f32.mrb[80].mxu1  ;;  %4016 = vmatmul.mubr.bf16.vlgmr.msra.gmra.mrb[112].mxu1 %v3038_v37  ;;  %v9366_v48 = vld [vmem:[#allocation22_spill] sm:$0xff]  ;;  %v2824_v37 = vadd.f32 %v8036_v51, %v2698_v50  ;;  %v2936_v30 = vmax.f32 %v2832_v38, 0.0 }
 0x31e   :  { %v2710_v43 = vmax.f32 %v9363_v33, %v8384_v25  ;;  %v2696_v53 = vmax.f32 %v9364_v61, %v2473_v59  ;;  %v8399_v14 = vpop.f32.mrb[85].mxu0  ;;  %v2475_v27 = vpop.f32.mrb[81].mxu1  ;;  %v8408_v35 = vmax.f32 %v2920_v55, %v2922_v52  ;;  %v2921_v59 = vmax.f32 %v2817_v13, 0.0  ;;  %5942 = vmatpush3.bf16.msra.mxu1 %v6684_v46  ;;  %v9367_v46 = vld [vmem:[#allocation23_spill] sm:$0xff]  ;;  %v6689_v52 = vld [vmem:[%s9240_s4 + $0x240] sm:$0xff]  }
 0x31f   :  { %v2697_v47 = vmax.f32 %v9366_v48, %v2475_v27  ;;  %v8416_v7 = vpop.f32.mrb[86].mxu0  ;;  %v2477_v56 = vpop.f32.mrb[82].mxu1  ;;  %v2923_v61 = vmax.f32 %v2819_v21, 0.0  ;;  %v6690_v21 = vld [vmem:[%s9240_s4 + $0x2d0] sm:$0xff]   ;;  %v2924_v26 = vmax.f32 %v2820_v18, 0.0  ;;  %5943 = vmatprep.subr.bf16.mxu1 %v6686_v1  ;;  %v2925_v48 = vmax.f32 %v2821_v2, 0.0 }
 0x320   :  { %5888 = vmatpush3.bf16.msra.mxu0 %v6683_v62  ;;  %v2822_v11 = vadd.f32 %v8040_v60, %v2696_v53  ;;  %v8419_v49 = vpop.f32.mrb[87].mxu0  ;;  %v2479_v9 = vpop.f32.mrb[83].mxu1  ;;  %v9368_v53 = vld [vmem:[#allocation24_spill] sm:$0xff]  ;;  %v9370_v18 = vld [vmem:[#allocation26_spill] sm:$0xff]  ;;  %v2928_v2 = vmax.f32 %v2824_v37, 0.0  ;;  %v6702_v25 = vld [vmem:[%s9240_s4 + $0x2e8] sm:$0xff]   ;;  %v9381_v33 = vmax.f32 %v9365_v12, %v8399_v14 }
 0x321   :  { %v2823_v62 = vadd.f32 %v8044_v4, %v2697_v47  ;;  %5889 = vmatprep.subr.bf16.mxu0 %v6685_v15  ;;  %v3003_v29 = vmax.f32 %v2921_v59, %v2923_v61  ;;  %v2700_v27 = vmax.f32 %v9368_v53, %v2477_v56  ;;  %v2825_v15 = vadd.f32 %v8038_v3, %v2699_v5  ;;  %v6691_v1 = vld [vmem:[%s9240_s4 + $0x200] sm:$0xff]   ;;  %v6692_v56 = vld [vmem:[%s9240_s4 + $0x290] sm:$0xff]   ;;  %v6703_v12 = vld [vmem:[%s9240_s4 + $0x218] sm:$0xff]  }
 0x322   :  { %v2926_v50 = vmax.f32 %v2822_v11, 0.0  ;;  %v2715_v13 = vmax.f32 %v9369_v44, %v8419_v49  ;;  %v2701_v59 = vmax.f32 %v9370_v18, %v2479_v9  ;;  %5944 = vmatpush3.bf16.msra.mxu1 %v6688_v54 }
 0x323   :  { %v2927_v47 = vmax.f32 %v2823_v62, 0.0  ;;  %v2826_v10 = vadd.f32 %v8040_v60, %v2700_v27  ;;  %5945 = vmatprep.subr.bf16.mxu1 %v6690_v21  ;;  %v3043_v5 = vpack.c.bf16 %v3003_v29, %v8382_v19  ;;  %v6693_v19 = vld [vmem:[%s9240_s4 + $0x248] sm:$0xff]   ;;  %v9373_v21 = vld [vmem:[#allocation29_spill] sm:$0xff]  ;;  %v9374_v29 = vld [vmem:[#allocation30_spill] sm:$0xff] }
 0x324   :  { %v8449_v55 = vmax.f32 %v2924_v26, %v2926_v50  ;;  %5890 = vmatpush3.bf16.msra.mxu0 %v6687_v32  ;;  %v2827_v32 = vadd.f32 %v8044_v4, %v2701_v59  ;;  %v6696_v59 = vld [vmem:[%s9240_s4 + $0x298] sm:$0xff]   ;;  %v2841_v63 = vadd.f32 %v8038_v3, %v2715_v13 }
 0x325   :  { %v8460_v58 = vmax.f32 %v2925_v48, %v2927_v47  ;;  %5919 = vmatprep.subr.bf16.mxu0 %v6689_v52  ;;  %v8466_v61 = vpop.f32.mrb[88].mxu0  ;;  %v2483_v11 = vpop.f32.mrb[84].mxu1  ;;  %v2930_v9 = vmax.f32 %v2826_v10, 0.0  ;;  %v6694_v52 = vld [vmem:[%s9240_s4 + $0x2d8] sm:$0xff]   ;;  %v2829_v10 = vadd.f32 %v8038_v3, %v2703_v34  ;;  %4293 = vmatprep.mubr.bf16.mxu1 %v3043_v5  ;;  %v2929_v48 = vmax.f32 %v2825_v15, 0.0  ;;  %v6698_v5 = vld [vmem:[%s9240_s4 + $0x2e0] sm:$0xff]  }
 0x326   :  { %v2718_v22 = vmax.f32 %v9371_v24, %v8466_v61  ;;  %v2704_v54 = vmax.f32 %v9372_v40, %v2483_v11  ;;  %v8472_v37 = vpop.f32.mrb[89].mxu0  ;;  %v2485_v62 = vpop.f32.mrb[85].mxu1  ;;  %v2931_v18 = vmax.f32 %v2827_v32, 0.0  ;;  %5946 = vmatpush3.bf16.msra.mxu1 %v6692_v56  ;;  %v2833_v11 = vadd.f32 %v8038_v3, %v2707_v6  ;;  %v9377_v40 = vld [vmem:[#allocation33_spill] sm:$0xff]  ;;  %v9390_v24 = vld [vmem:[#allocation44_spill] sm:$0xff] }
 0x327   :  { %3877 = vmatmul.mubr.bf16.vlgmr.msra.gmra.mrb[108].mxu0 %v3036_v17  ;;  %v2719_v26 = vmax.f32 %v9373_v21, %v8472_v37  ;;  %v2705_v50 = vmax.f32 %v9374_v29, %v2485_v62  ;;  %v8490_v53 = vpop.f32.mrb[90].mxu0  ;;  %v2487_v27 = vpop.f32.mrb[86].mxu1  ;;  %v8492_v47 = vmax.f32 %v2928_v2, %v2930_v9  ;;  %v2932_v2 = vmax.f32 %v2828_v23, 0.0  ;;  %5947 = vmatprep.subr.bf16.mxu1 %v6694_v52  ;;  %v9378_v62 = vld [vmem:[#allocation34_spill] sm:$0xff]  ;;  %v6699_v52 = vld [vmem:[%s9240_s4 + $0x210] sm:$0xff]   ;;  %v6711_v21 = vld [vmem:[%s9240_s4 + $0x228] sm:$0xff]  }
 0x328   :  { %5920 = vmatpush3.bf16.msra.mxu0 %v6691_v1  ;;  %4154 = vmatprep.mubr.bf16.mxu0 %v3041_v36  ;;  %v2830_v57 = vadd.f32 %v8040_v60, %v2704_v54  ;;  %v8498_v0 = vpop.f32.mrb[91].mxu0  ;;  %v2489_v17 = vpop.f32.mrb[87].mxu1  ;;  %v2722_v28 = vmax.f32 %v9375_v16, %v8490_v53  ;;  %v9376_v36 = vld [vmem:[#allocation32_spill] sm:$0xff]  ;;  %v8519_v20 = vmax.f32 %v2929_v48, %v2931_v18  ;;  %v2933_v56 = vmax.f32 %v2829_v10, 0.0  ;;  %v6700_v29 = vld [vmem:[%s9240_s4 + $0x2a0] sm:$0xff]  }
 0x329   :  { %v2831_v34 = vadd.f32 %v8044_v4, %v2705_v50  ;;  %v2708_v15 = vmax.f32 %v9376_v36, %v2487_v27  ;;  %v6697_v1 = vld [vmem:[%s9240_s4 + $0x250] sm:$0xff]   ;;  %5921 = vmatprep.subr.bf16.mxu0 %v6693_v19  ;;  %v2723_v54 = vmax.f32 %v9377_v40, %v8498_v0  ;;  %v2709_v19 = vmax.f32 %v9378_v62, %v2489_v17 }
 0x32a   :  { %v2934_v39 = vmax.f32 %v2830_v57, 0.0  ;;  %5948 = vmatpush3.bf16.msra.mxu1 %v6696_v59  ;;  %v2836_v48 = vadd.f32 %v8036_v51, %v2710_v43  ;;  %v9379_v57 = vld [vmem:[#allocation35_spill] sm:$0xff]  ;;  %v2837_v43 = vadd.f32 %v8038_v3, %v9381_v33  ;;  %v2844_v13 = vadd.f32 %v8036_v51, %v2718_v22 }
 0x32b   :  { %v2935_v9 = vmax.f32 %v2831_v34, 0.0  ;;  %v2834_v23 = vadd.f32 %v8040_v60, %v2708_v15  ;;  %v2835_v18 = vadd.f32 %v8044_v4, %v2709_v19  ;;  %5949 = vmatprep.subr.bf16.mxu1 %v6698_v5  ;;  %v6701_v15 = vld [vmem:[%s9240_s4 + $0x258] sm:$0xff]  }
 0x32c   :  { %v8529_v32 = vmax.f32 %v2932_v2, %v2934_v39  ;;  %5922 = vmatpush3.bf16.msra.mxu0 %v6695_v8  ;;  %v9380_v8 = vld [vmem:[#allocation36_spill] sm:$0xff]  ;;  %v9383_v39 = vld [vmem:[#allocation38_spill] sm:$0xff] }
 0x32d   :  { %v8539_v6 = vmax.f32 %v2933_v56, %v2935_v9  ;;  %v2938_v10 = vmax.f32 %v2834_v23, 0.0  ;;  %5923 = vmatprep.subr.bf16.mxu0 %v6697_v1  ;;  %v8544_v50 = vpop.f32.mrb[92].mxu0  ;;  %v2493_v27 = vpop.f32.mrb[88].mxu1  ;;  %v9382_v1 = vld [vmem:[#allocation37_spill] sm:$0xff]  ;;  %v2937_v23 = vmax.f32 %v2833_v11, 0.0  ;;  %v2939_v62 = vmax.f32 %v2835_v18, 0.0 }
 0x32e   :  { %v2726_v17 = vmax.f32 %v9379_v57, %v8544_v50  ;;  %v2712_v38 = vmax.f32 %v9380_v8, %v2493_v27  ;;  %v8554_v34 = vpop.f32.mrb[93].mxu0  ;;  %v2495_v36 = vpop.f32.mrb[89].mxu1  ;;  %5950 = vmatpush3.bf16.msra.mxu1 %v6700_v29  ;;  %v6706_v29 = vld [vmem:[%s9240_s4 + $0x2f0] sm:$0xff]   ;;  %v9398_v57 = vld [vmem:[#allocation51_spill] sm:$0xff] }
 0x32f   :  { %v8566_v59 = vmax.f32 %v2936_v30, %v2938_v10  ;;  %v2727_v2 = vmax.f32 %v9382_v1, %v8554_v34  ;;  %v2713_v5 = vmax.f32 %v9383_v39, %v2495_v36  ;;  %v8571_v56 = vpop.f32.mrb[94].mxu0  ;;  %v2497_v9 = vpop.f32.mrb[90].mxu1  ;;  %v9384_v30 = vmax.f32 %v9367_v46, %v8416_v7  ;;  %v6705_v36 = vld [vmem:[%s9240_s4 + $0x260] sm:$0xff]   ;;  %v9386_v39 = vld [vmem:[#allocation40_spill] sm:$0xff]  ;;  %5951 = vmatprep.subr.bf16.mxu1 %v6702_v25 }
 0x330   :  { %5924 = vmatpush3.bf16.msra.mxu0 %v6699_v52  ;;  %v2838_v19 = vadd.f32 %v8040_v60, %v2712_v38  ;;  %v8574_v27 = vpop.f32.mrb[95].mxu0  ;;  %v2499_v14 = vpop.f32.mrb[91].mxu1  ;;  %v9385_v52 = vld [vmem:[#allocation39_spill] sm:$0xff]  ;;  %v2940_v7 = vmax.f32 %v2836_v48, 0.0  ;;  %v8594_v46 = vmax.f32 %v2937_v23, %v2939_v62  ;;  %v9387_v48 = vld [vmem:[#allocation41_spill] sm:$0xff] }
 0x331   :  { %v2840_v10 = vadd.f32 %v8036_v51, %v9384_v30  ;;  %v2839_v11 = vadd.f32 %v8044_v4, %v2713_v5  ;;  %v2730_v18 = vmax.f32 %v9385_v52, %v8571_v56  ;;  %v6704_v38 = vld [vmem:[%s9240_s4 + $0x2a8] sm:$0xff]   ;;  %v2716_v30 = vmax.f32 %v9386_v39, %v2497_v9  ;;  %5925 = vmatprep.subr.bf16.mxu0 %v6701_v15  ;;  %v9388_v15 = vld [vmem:[#allocation42_spill] sm:$0xff]  ;;  %v6710_v39 = vld [vmem:[%s9240_s4 + $0x2f8] sm:$0xff]  }
 0x332   :  { %v2942_v33 = vmax.f32 %v2838_v19, 0.0  ;;  %v2941_v5 = vmax.f32 %v2837_v43, 0.0  ;;  %v2717_v25 = vmax.f32 %v9388_v15, %v2499_v14  ;;  %v6707_v43 = vld [vmem:[%s9240_s4 + $0x220] sm:$0xff]   ;;  %5952 = vmatpush3.bf16.msra.mxu1 %v6704_v38  ;;  %v6708_v14 = vld [vmem:[%s9240_s4 + $0x2b0] sm:$0xff]   ;;  %v9403_v52 = vmax.f32 %v9387_v48, %v8574_v27 }
 0x333   :  { %v2943_v8 = vmax.f32 %v2839_v11, 0.0  ;;  %v2842_v9 = vadd.f32 %v8040_v60, %v2716_v30  ;;  %v2944_v49 = vmax.f32 %v2840_v10, 0.0  ;;  %5953 = vmatprep.subr.bf16.mxu1 %v6706_v29  ;;  %v9389_v10 = vld [vmem:[#allocation43_spill] sm:$0xff]  ;;  %v2845_v30 = vadd.f32 %v8038_v3, %v2719_v26  ;;  %v9391_v29 = vld [vmem:[#allocation45_spill] sm:$0xff]  ;;  %v6721_v56 = vld [vmem:[%s9240_s4 + $0x340] sm:$0xff]  }
 0x334   :  { %v8606_v62 = vmax.f32 %v2940_v7, %v2942_v33  ;;  %5926 = vmatpush3.bf16.msra.mxu0 %v6703_v12  ;;  %v2843_v33 = vadd.f32 %v8044_v4, %v2717_v25  ;;  %v2848_v26 = vadd.f32 %v8036_v51, %v2722_v28  ;;  %v9406_v27 = vld [vmem:[#allocation58_spill] sm:$0xff] }
 0x335   :  { %v8619_v19 = vmax.f32 %v2941_v5, %v2943_v8  ;;  %5927 = vmatprep.subr.bf16.mxu0 %v6705_v36  ;;  %v8624_v12 = vpop.f32.mrb[96].mxu0  ;;  %v2503_v11 = vpop.f32.mrb[92].mxu1  ;;  %v2946_v7 = vmax.f32 %v2842_v9, 0.0  ;;  %v6709_v36 = vld [vmem:[%s9240_s4 + $0x268] sm:$0xff]   ;;  %v9392_v9 = vld [vmem:[#allocation46_spill] sm:$0xff] }
 0x336   :  { %v2720_v22 = vmax.f32 %v9390_v24, %v2503_v11  ;;  %v8630_v8 = vpop.f32.mrb[97].mxu0  ;;  %v2505_v38 = vpop.f32.mrb[93].mxu1  ;;  %v2945_v24 = vmax.f32 %v2841_v63, 0.0  ;;  %v2947_v61 = vmax.f32 %v2843_v33, 0.0  ;;  %5954 = vmatpush3.bf16.msra.mxu1 %v6708_v14  ;;  %v6714_v14 = vld [vmem:[%s9240_s4 + $0x3c0] sm:$0xff]   ;;  %v2952_v40 = vmax.f32 %v2848_v26, 0.0 }
 0x337   :  { %v2735_v5 = vmax.f32 %v9391_v29, %v8630_v8  ;;  %v2721_v15 = vmax.f32 %v9392_v9, %v2505_v38  ;;  %v8645_v25 = vpop.f32.mrb[98].mxu0  ;;  %v2507_v11 = vpop.f32.mrb[94].mxu1  ;;  %v8647_v42 = vmax.f32 %v2944_v49, %v2946_v7  ;;  %v9393_v49 = vld [vmem:[#allocation47_spill] sm:$0xff]  ;;  %v9394_v7 = vld [vmem:[#allocation48_spill] sm:$0xff]  ;;  %v2948_v9 = vmax.f32 %v2844_v13, 0.0  ;;  %5955 = vmatprep.subr.bf16.mxu1 %v6710_v39 }
 0x338   :  { %5928 = vmatpush3.bf16.msra.mxu0 %v6707_v43  ;;  %v2846_v23 = vadd.f32 %v8040_v60, %v2720_v22  ;;  %v8650_v44 = vpop.f32.mrb[99].mxu0  ;;  %v2509_v37 = vpop.f32.mrb[95].mxu1  ;;  %v2724_v33 = vmax.f32 %v9394_v7, %v2507_v11  ;;  %v6712_v22 = vld [vmem:[%s9240_s4 + $0x2b8] sm:$0xff]   ;;  %v6713_v38 = vld [vmem:[%s9240_s4 + $0x270] sm:$0xff]   ;;  %v8671_v16 = vmax.f32 %v2945_v24, %v2947_v61  ;;  %v2849_v11 = vadd.f32 %v8038_v3, %v2723_v54 }
 0x339   :  { %v2847_v63 = vadd.f32 %v8044_v4, %v2721_v15  ;;  %5929 = vmatprep.subr.bf16.mxu0 %v6709_v36  ;;  %v2949_v15 = vmax.f32 %v2845_v30, 0.0  ;;  %v9395_v61 = vld [vmem:[#allocation49_spill] sm:$0xff]  ;;  %v9396_v36 = vld [vmem:[#allocation50_spill] sm:$0xff]  ;;  %v6715_v30 = vld [vmem:[%s9240_s4 + $0x230] sm:$0xff]   ;;  %v2852_v54 = vadd.f32 %v8036_v51, %v2726_v17 }
 0x33a   :  { %v2950_v28 = vmax.f32 %v2846_v23, 0.0  ;;  %v2850_v13 = vadd.f32 %v8040_v60, %v2724_v33  ;;  %v2725_v39 = vmax.f32 %v9396_v36, %v2509_v37  ;;  %5956 = vmatpush3.bf16.msra.mxu1 %v6712_v22  ;;  %v6716_v37 = vld [vmem:[%s9240_s4 + $0x380] sm:$0xff]   ;;  %v9397_v26 = vld [vmem:[#allocation52_spill] sm:$0xff]  ;;  %v6717_v22 = vld [vmem:[%s9240_s4 + $0x278] sm:$0xff]   ;;  %v2953_v0 = vmax.f32 %v2849_v11, 0.0 }
 0x33b   :  { %v2951_v7 = vmax.f32 %v2847_v63, 0.0  ;;  %5985 = vmatprep.subr.bf16.mxu1 %v6714_v14  ;;  %v2853_v14 = vadd.f32 %v8038_v3, %v2727_v2  ;;  %v9401_v23 = vpack.c.bf16 %v8408_v35, %v8371_v45  ;;  %v2856_v11 = vadd.f32 %v8036_v51, %v2730_v18 }
 0x33c   :  { %v8681_v43 = vmax.f32 %v2948_v9, %v2950_v28  ;;  %5930 = vmatpush3.bf16.msra.mxu0 %v6711_v21  ;;  %v2954_v63 = vmax.f32 %v2850_v13, 0.0  ;;  %v2851_v9 = vadd.f32 %v8044_v4, %v2725_v39  ;;  %v9399_v13 = vld [vmem:[#allocation54_spill] sm:$0xff]  ;;  %v9400_v39 = vld [vmem:[#allocation53_spill] sm:$0xff]  ;;  %v9402_v35 = vpack.c.bf16 %v8594_v46, %v8539_v6  ;;  %v9404_v6 = vld [vmem:[#allocation56_spill] sm:$0xff] }
 0x33d   :  { %v8695_v24 = vmax.f32 %v2949_v15, %v2951_v7  ;;  %5931 = vmatprep.subr.bf16.mxu0 %v6713_v38  ;;  %v8700_v21 = vpop.f32.mrb[100].mxu0  ;;  %v2513_v33 = vpop.f32.mrb[96].mxu1  ;;  %v6718_v38 = vld [vmem:[%s9240_s4 + $0x3c8] sm:$0xff]   ;;  %4294 = vmatmul.mubr.bf16.vlgmr.msra.gmra.mrb[116].mxu1 %v9401_v23  ;;  %v2857_v18 = vadd.f32 %v8038_v3, %v9403_v52  ;;  %v9408_v52 = vmax.f32 %v9389_v10, %v8624_v12 }
 0x33e   :  { %v2728_v17 = vmax.f32 %v9398_v57, %v2513_v33  ;;  %v8706_v28 = vpop.f32.mrb[101].mxu0  ;;  %v2515_v15 = vpop.f32.mrb[97].mxu1  ;;  %v8718_v7 = vmax.f32 %v2952_v40, %v2954_v63  ;;  %v2955_v50 = vmax.f32 %v2851_v9, 0.0  ;;  %v6719_v40 = vld [vmem:[%s9240_s4 + $0x238] sm:$0xff]   ;;  %v2956_v63 = vmax.f32 %v2852_v54, 0.0  ;;  %5986 = vmatpush3.bf16.msra.mxu1 %v6716_v37  ;;  %4571 = vmatprep.mubr.bf16.mxu1 %v9402_v35  ;;  %v6722_v9 = vld [vmem:[%s9240_s4 + $0x3d0] sm:$0xff]  }
 0x33f   :  { %v2743_v36 = vmax.f32 %v9399_v13, %v8706_v28  ;;  %v2729_v33 = vmax.f32 %v9400_v39, %v2515_v15  ;;  %v8723_v57 = vpop.f32.mrb[102].mxu0  ;;  %v2517_v53 = vpop.f32.mrb[98].mxu1  ;;  %5987 = vmatprep.subr.bf16.mxu1 %v6718_v38  ;;  %v9405_v39 = vld [vmem:[#allocation55_spill] sm:$0xff]  ;;  %v9410_v12 = vmax.f32 %v9393_v49, %v8645_v25  ;;  %v9415_v49 = vld [vmem:[#allocation61_spill] sm:$0xff] }
 0x340   :  { %5932 = vmatpush3.bf16.msra.mxu0 %v6715_v30  ;;  %v2854_v34 = vadd.f32 %v8040_v60, %v2728_v17  ;;  %v8729_v1 = vpop.f32.mrb[103].mxu0  ;;  %v2519_v2 = vpop.f32.mrb[99].mxu1  ;;  %v3050_v45 = vpack.c.bf16 %v8718_v7, %v8681_v43  ;;  %v6720_v30 = vld [vmem:[%s9240_s4 + $0x388] sm:$0xff]   ;;  %v8754_v54 = vmax.f32 %v2953_v0, %v2955_v50  ;;  %v2746_v46 = vmax.f32 %v9404_v6, %v8723_v57  ;;  %v9407_v0 = vld [vmem:[#allocation57_spill] sm:$0xff]  ;;  %v6786_v43 = vld [vmem:[%s9240_s4 + $0x5d0] sm:$0xff]  }
 0x341   :  { %v2855_v23 = vadd.f32 %v8044_v4, %v2729_v33  ;;  %5933 = vmatprep.subr.bf16.mxu0 %v6717_v22  ;;  %v2957_v17 = vmax.f32 %v2853_v14, 0.0  ;;  %v2732_v33 = vmax.f32 %v9405_v39, %v2517_v53  ;;  %v2747_v48 = vmax.f32 %v9406_v27, %v8729_v1  ;;  %v6723_v22 = vld [vmem:[%s9240_s4 + $0x300] sm:$0xff]  }
 0x342   :  { %v2958_v37 = vmax.f32 %v2854_v34, 0.0  ;;  %v2733_v50 = vmax.f32 %v9407_v0, %v2519_v2  ;;  %v3051_v38 = vpack.c.bf16 %v8754_v54, %v8695_v24  ;;  %v2960_v34 = vmax.f32 %v2856_v11, 0.0  ;;  %5988 = vmatpush3.bf16.msra.mxu1 %v6720_v30  ;;  %v9409_v30 = vld [vmem:[#allocation59_spill] sm:$0xff]  ;;  %v9421_v1 = vld [vmem:[#allocation66_spill] sm:$0xff]  ;;  %v6756_v24 = vld [vmem:[%s9240_s4 + $0x490] sm:$0xff]  }
 0x343   :  { %v2959_v15 = vmax.f32 %v2855_v23, 0.0  ;;  %v2858_v53 = vadd.f32 %v8040_v60, %v2732_v33  ;;  %v2961_v23 = vmax.f32 %v2857_v18, 0.0  ;;  %v2860_v11 = vadd.f32 %v8036_v51, %v9408_v52  ;;  %5989 = vmatprep.subr.bf16.mxu1 %v6722_v9  ;;  %v9412_v33 = vld [vmem:[#allocation60_spill] sm:$0xff]  ;;  %v6757_v54 = vld [vmem:[%s9240_s4 + $0x448] sm:$0xff]   ;;  %v6787_v7 = vld [vmem:[%s9240_s4 + $0x500] sm:$0xff]  }
 0x344   :  { %v8764_v35 = vmax.f32 %v2956_v63, %v2958_v37  ;;  %5934 = vmatpush3.bf16.msra.mxu0 %v6719_v40  ;;  %v6724_v63 = vld [vmem:[%s9240_s4 + $0x390] sm:$0xff]   ;;  %v6725_v40 = vld [vmem:[%s9240_s4 + $0x348] sm:$0xff]   ;;  %v2859_v37 = vadd.f32 %v8044_v4, %v2733_v50  ;;  %v2861_v18 = vadd.f32 %v8038_v3, %v2735_v5  ;;  %v2864_v10 = vadd.f32 %v8036_v51, %v9410_v12 }
 0x345   :  { %v8772_v14 = vmax.f32 %v2957_v17, %v2959_v15  ;;  %5963 = vmatprep.subr.bf16.mxu0 %v6721_v56  ;;  %v2523_v2 = vpop.f32.mrb[100].mxu1  ;;  %v6726_v15 = vld [vmem:[%s9240_s4 + $0x3d8] sm:$0xff]   ;;  %v2962_v39 = vmax.f32 %v2858_v53, 0.0  ;;  %v9411_v9 = vpack.c.bf16 %v8337_v31, %v8297_v41  ;;  %v9414_v5 = vpack.c.bf16 %v8519_v20, %v8460_v58  ;;  %v6727_v31 = vld [vmem:[%s9240_s4 + $0x308] sm:$0xff]   ;;  %v6729_v20 = vld [vmem:[%s9240_s4 + $0x350] sm:$0xff]  }
 0x346   :  { %v2736_v56 = vmax.f32 %v9409_v30, %v2523_v2  ;;  %v2525_v17 = vpop.f32.mrb[101].mxu1  ;;  %v9413_v2 = vmax.f32 %v9395_v61, %v8650_v44  ;;  %v2963_v29 = vmax.f32 %v2859_v37, 0.0  ;;  %5990 = vmatpush3.bf16.msra.mxu1 %v6724_v63  ;;  %v9416_v61 = vld [vmem:[#allocation62_spill] sm:$0xff]  ;;  %v6728_v58 = vld [vmem:[%s9240_s4 + $0x398] sm:$0xff]   ;;  %v2964_v37 = vmax.f32 %v2860_v11, 0.0  ;;  %v6731_v11 = vld [vmem:[%s9240_s4 + $0x310] sm:$0xff]  }
 0x347   :  { %4155 = vmatmul.mubr.bf16.vlgmr.msra.gmra.mrb[112].mxu0 %v9411_v9  ;;  %v2737_v0 = vmax.f32 %v9412_v33, %v2525_v17  ;;  %v2527_v50 = vpop.f32.mrb[102].mxu1  ;;  %v8814_v52 = vmax.f32 %v2960_v34, %v2962_v39  ;;  %5991 = vmatprep.subr.bf16.mxu1 %v6726_v15  ;;  %v6730_v63 = vld [vmem:[%s9240_s4 + $0x3e0] sm:$0xff]   ;;  %v2968_v9 = vmax.f32 %v2864_v10, 0.0 }
 0x348   :  { %v2865_v8 = vadd.f32 %v8038_v3, %v9413_v2  ;;  %5964 = vmatpush3.bf16.msra.mxu0 %v6723_v22  ;;  %4432 = vmatprep.mubr.bf16.mxu0 %v9414_v5  ;;  %v2862_v25 = vadd.f32 %v8040_v60, %v2736_v56  ;;  %v2740_v53 = vmax.f32 %v9415_v49, %v2527_v50  ;;  %v2529_v41 = vpop.f32.mrb[103].mxu1  ;;  %v6732_v10 = vld [vmem:[%s9240_s4 + $0x3a0] sm:$0xff]   ;;  %v9418_v49 = vld [vmem:[#allocation63_spill] sm:$0xff] }
 0x349   :  { %v2863_v44 = vadd.f32 %v8044_v4, %v2737_v0  ;;  %5965 = vmatprep.subr.bf16.mxu0 %v6725_v40  ;;  %v2741_v22 = vmax.f32 %v9416_v61, %v2529_v41  ;;  %v8824_v30 = vmax.f32 %v2961_v23, %v2963_v29  ;;  %v2965_v40 = vmax.f32 %v2861_v18, 0.0  ;;  %v6733_v29 = vld [vmem:[%s9240_s4 + $0x358] sm:$0xff]   ;;  %v9419_v61 = vld [vmem:[#allocation64_spill] sm:$0xff] }
 0x34a   :  { %v2966_v56 = vmax.f32 %v2862_v25, 0.0  ;;  %v2866_v34 = vadd.f32 %v8040_v60, %v2740_v53  ;;  %v3052_v17 = vpack.c.bf16 %v8814_v52, %v8764_v35  ;;  %v2969_v0 = vmax.f32 %v2865_v8, 0.0  ;;  %5992 = vmatpush3.bf16.msra.mxu1 %v6728_v58  ;;  %v6818_v35 = vld [vmem:[%s9240_s4 + $0x610] sm:$0xff]   ;;  %v6819_v52 = vld [vmem:[%s9240_s4 + $0x658] sm:$0xff]  }
 0x34b   :  { %v2967_v12 = vmax.f32 %v2863_v44, 0.0  ;;  %v2867_v39 = vadd.f32 %v8044_v4, %v2741_v22  ;;  %v3053_v15 = vpack.c.bf16 %v8824_v30, %v8772_v14  ;;  %v9417_v5 = vmax.f32 %v9397_v26, %v8700_v21  ;;  %5993 = vmatprep.subr.bf16.mxu1 %v6730_v63  ;;  %v6795_v14 = vld [vmem:[%s9240_s4 + $0x510] sm:$0xff]   ;;  %v6796_v30 = vld [vmem:[%s9240_s4 + $0x5a0] sm:$0xff]  }
 0x34c   :  { %v8833_v33 = vmax.f32 %v2964_v37, %v2966_v56  ;;  %v2970_v23 = vmax.f32 %v2866_v34, 0.0  ;;  %5966 = vmatpush3.bf16.msra.mxu0 %v6727_v31  ;;  %v6734_v31 = vld [vmem:[%s9240_s4 + $0x3e8] sm:$0xff]   ;;  %v2869_v44 = vadd.f32 %v8038_v3, %v2743_v36  ;;  %v2872_v21 = vadd.f32 %v8036_v51, %v2746_v46  ;;  %v9420_v36 = vld [vmem:[#allocation65_spill] sm:$0xff] }
 0x34d   :  { %v8840_v18 = vmax.f32 %v2965_v40, %v2967_v12  ;;  %v2971_v50 = vmax.f32 %v2867_v39, 0.0  ;;  %5967 = vmatprep.subr.bf16.mxu0 %v6729_v20  ;;  %v2533_v2 = vpop.f32.mrb[104].mxu1  ;;  %v2868_v25 = vadd.f32 %v8036_v51, %v9417_v5  ;;  %v2873_v20 = vadd.f32 %v8038_v3, %v2747_v48  ;;  %v6735_v51 = vld [vmem:[%s9240_s4 + $0x318] sm:$0xff]   ;;  %v6736_v3 = vld [vmem:[%s9240_s4 + $0x3a8] sm:$0xff]   ;;  %v6737_v48 = vld [vmem:[%s9240_s4 + $0x360] sm:$0xff]  }
 0x34e   :  { %v8852_v8 = vmax.f32 %v2968_v9, %v2970_v23  ;;  %v2744_v53 = vmax.f32 %v9418_v49, %v2533_v2  ;;  %v2535_v41 = vpop.f32.mrb[105].mxu1  ;;  %5994 = vmatpush3.bf16.msra.mxu1 %v6732_v10  ;;  %v6738_v40 = vld [vmem:[%s9240_s4 + $0x3f0] sm:$0xff]   ;;  %v2973_v12 = vmax.f32 %v2869_v44, 0.0  ;;  %v2976_v23 = vmax.f32 %v2872_v21, 0.0 }
 0x34f   :  { %v8866_v26 = vmax.f32 %v2969_v0, %v2971_v50  ;;  %v2745_v22 = vmax.f32 %v9419_v61, %v2535_v41  ;;  %v2537_v58 = vpop.f32.mrb[106].mxu1  ;;  %v2972_v56 = vmax.f32 %v2868_v25, 0.0  ;;  %5995 = vmatprep.subr.bf16.mxu1 %v6734_v31  ;;  %v6739_v50 = vld [vmem:[%s9240_s4 + $0x320] sm:$0xff]   ;;  %v2977_v10 = vmax.f32 %v2873_v20, 0.0  ;;  %v6742_v25 = vld [vmem:[%s9240_s4 + $0x3f8] sm:$0xff]   ;;  %v6743_v41 = vld [vmem:[%s9240_s4 + $0x328] sm:$0xff]  }
 0x350   :  { %v3054_v28 = vpack.c.bf16 %v8852_v8, %v8833_v33  ;;  %5968 = vmatpush3.bf16.msra.mxu0 %v6731_v11  ;;  %v2870_v13 = vadd.f32 %v8040_v60, %v2744_v53  ;;  %v2748_v57 = vmax.f32 %v9420_v36, %v2537_v58  ;;  %v2539_v6 = vpop.f32.mrb[107].mxu1  ;;  %v6744_v31 = vld [vmem:[%s9240_s4 + $0x3b8] sm:$0xff]   ;;  %v6745_v44 = vld [vmem:[%s9240_s4 + $0x370] sm:$0xff]   ;;  %v6746_v61 = vld [vmem:[%s9240_s4 + $0x4c0] sm:$0xff]   ;;  %v9422_v36 = vpack.c.bf16 %v8566_v59, %v8529_v32 }
 0x351   :  { %v2871_v46 = vadd.f32 %v8044_v4, %v2745_v22  ;;  %5969 = vmatprep.subr.bf16.mxu0 %v6733_v29  ;;  %v2749_v27 = vmax.f32 %v9421_v1, %v2539_v6  ;;  %v3055_v37 = vpack.c.bf16 %v8866_v26, %v8840_v18  ;;  %v6740_v29 = vld [vmem:[%s9240_s4 + $0x3b0] sm:$0xff]   ;;  %v6748_v58 = vld [vmem:[%s9240_s4 + $0x480] sm:$0xff]   ;;  %v6749_v20 = vld [vmem:[%s9240_s4 + $0x378] sm:$0xff]   ;;  %v9424_v1 = vpack.c.bf16 %v8671_v16, %v8619_v19 }
 0x352   :  { %v2974_v34 = vmax.f32 %v2870_v13, 0.0  ;;  %v2874_v63 = vadd.f32 %v8040_v60, %v2748_v57  ;;  %5996 = vmatpush3.bf16.msra.mxu1 %v6736_v3  ;;  %v6747_v22 = vld [vmem:[%s9240_s4 + $0x330] sm:$0xff]   ;;  %v6750_v13 = vld [vmem:[%s9240_s4 + $0x4c8] sm:$0xff]   ;;  %v6751_v57 = vld [vmem:[%s9240_s4 + $0x338] sm:$0xff]  }
 0x353   :  { %v2975_v39 = vmax.f32 %v2871_v46, 0.0  ;;  %v2875_v9 = vadd.f32 %v8044_v4, %v2749_v27  ;;  %v6741_v4 = vld [vmem:[%s9240_s4 + $0x368] sm:$0xff]   ;;  %5997 = vmatprep.subr.bf16.mxu1 %v6738_v40  ;;  %v6754_v32 = vld [vmem:[%s9240_s4 + $0x4d0] sm:$0xff]   ;;  %v6755_v59 = vld [vmem:[%s9240_s4 + $0x400] sm:$0xff]   ;;  %v9423_v46 = vpack.c.bf16 %v8492_v47, %v8449_v55 }
 0x354   :  { %v8895_v11 = vmax.f32 %v2972_v56, %v2974_v34  ;;  %v2978_v0 = vmax.f32 %v2874_v63, 0.0  ;;  %5970 = vmatpush3.bf16.msra.mxu0 %v6735_v51  ;;  %v6752_v6 = vld [vmem:[%s9240_s4 + $0x488] sm:$0xff]   ;;  %v6753_v51 = vld [vmem:[%s9240_s4 + $0x440] sm:$0xff]   ;;  %v6760_v3 = vld [vmem:[%s9240_s4 + $0x498] sm:$0xff]  }
 0x355   :  { %v8900_v60 = vmax.f32 %v2973_v12, %v2975_v39  ;;  %v2979_v2 = vmax.f32 %v2875_v9, 0.0  ;;  %5971 = vmatprep.subr.bf16.mxu0 %v6737_v48  ;;  %v6759_v27 = vld [vmem:[%s9240_s4 + $0x408] sm:$0xff]   ;;  %v6761_v55 = vld [vmem:[%s9240_s4 + $0x450] sm:$0xff]   ;;  %v6762_v47 = vld [vmem:[%s9240_s4 + $0x4e0] sm:$0xff]  }
 0x356   :  { %v8908_v5 = vmax.f32 %v2976_v23, %v2978_v0  ;;  %5998 = vmatpush3.bf16.msra.mxu1 %v6740_v29  ;;  %v6763_v19 = vld [vmem:[%s9240_s4 + $0x410] sm:$0xff]   ;;  %v6764_v16 = vld [vmem:[%s9240_s4 + $0x4a0] sm:$0xff]   ;;  %v6765_v48 = vld [vmem:[%s9240_s4 + $0x458] sm:$0xff]  }
 0x357   :  { %v8913_v49 = vmax.f32 %v2977_v10, %v2979_v2  ;;  %5999 = vmatprep.subr.bf16.mxu1 %v6742_v25  ;;  %v6766_v56 = vld [vmem:[%s9240_s4 + $0x4e8] sm:$0xff]   ;;  %v6767_v34 = vld [vmem:[%s9240_s4 + $0x418] sm:$0xff]   ;;  %v6769_v40 = vld [vmem:[%s9240_s4 + $0x460] sm:$0xff]  }
 0x358   :  { %v3056_v53 = vpack.c.bf16 %v8908_v5, %v8895_v11  ;;  %5972 = vmatpush3.bf16.msra.mxu0 %v6739_v50  ;;  %v6768_v63 = vld [vmem:[%s9240_s4 + $0x4a8] sm:$0xff]   ;;  %v6770_v12 = vld [vmem:[%s9240_s4 + $0x4f0] sm:$0xff]   ;;  %v6771_v39 = vld [vmem:[%s9240_s4 + $0x420] sm:$0xff]  }
 0x359   :  { %5973 = vmatprep.subr.bf16.mxu0 %v6741_v4  ;;  %v3057_v21 = vpack.c.bf16 %v8913_v49, %v8900_v60  ;;  %v6772_v9 = vld [vmem:[%s9240_s4 + $0x4b0] sm:$0xff]   ;;  %v6773_v23 = vld [vmem:[%s9240_s4 + $0x468] sm:$0xff]   ;;  %v6774_v0 = vld [vmem:[%s9240_s4 + $0x4f8] sm:$0xff]  }
 0x35a   :  { %6000 = vmatpush3.bf16.msra.mxu1 %v6744_v31  ;;  %v6775_v50 = vld [vmem:[%s9240_s4 + $0x428] sm:$0xff]   ;;  %v6776_v10 = vld [vmem:[%s9240_s4 + $0x4b8] sm:$0xff]   ;;  %v6777_v2 = vld [vmem:[%s9240_s4 + $0x470] sm:$0xff]  }
 0x35b   :  { %6029 = vmatprep.subr.bf16.mxu1 %v6746_v61  ;;  %v6778_v29 = vld [vmem:[%s9240_s4 + $0x5c0] sm:$0xff]   ;;  %v6779_v4 = vld [vmem:[%s9240_s4 + $0x430] sm:$0xff]   ;;  %v6782_v31 = vld [vmem:[%s9240_s4 + $0x5c8] sm:$0xff]  }
 0x35c   :  { %5974 = vmatpush3.bf16.msra.mxu0 %v6743_v41  ;;  %v6780_v25 = vld [vmem:[%s9240_s4 + $0x580] sm:$0xff]   ;;  %v6781_v41 = vld [vmem:[%s9240_s4 + $0x478] sm:$0xff]   ;;  %v6784_v61 = vld [vmem:[%s9240_s4 + $0x588] sm:$0xff]  }
 0x35d   :  { %5975 = vmatprep.subr.bf16.mxu0 %v6745_v44  ;;  %4572 = vmatmul.mubr.bf16.vlgmr.msra.gmra.mrb[120].mxu1 %v9422_v36  ;;  %v6783_v44 = vld [vmem:[%s9240_s4 + $0x438] sm:$0xff]   ;;  %v6789_v18 = vld [vmem:[%s9240_s4 + $0x548] sm:$0xff]   ;;  %v6821_v60 = vld [vmem:[%s9240_s4 + $0x660] sm:$0xff]  }
 0x35e   :  { %6030 = vmatpush3.bf16.msra.mxu1 %v6748_v58  ;;  %4849 = vmatprep.mubr.bf16.mxu1 %v3051_v38  ;;  %v6758_v38 = vld [vmem:[%s9240_s4 + $0x4d8] sm:$0xff]   ;;  %v6791_v58 = vld [vmem:[%s9240_s4 + $0x508] sm:$0xff]   ;;  %v6822_v49 = vld [vmem:[%s9240_s4 + $0x620] sm:$0xff]  }
 0x35f   :  { %6031 = vmatprep.subr.bf16.mxu1 %v6750_v13  ;;  %v6790_v26 = vld [vmem:[%s9240_s4 + $0x5d8] sm:$0xff]   ;;  %v6798_v13 = vld [vmem:[%s9240_s4 + $0x5e8] sm:$0xff]  }
 0x360   :  { %5976 = vmatpush3.bf16.msra.mxu0 %v6747_v22  ;;  %v6785_v22 = vld [vmem:[%s9240_s4 + $0x540] sm:$0xff]   ;;  %v6799_v36 = vld [vmem:[%s9240_s4 + $0x518] sm:$0xff]   ;;  %v6815_v33 = vld [vmem:[%s9240_s4 + $0x648] sm:$0xff]  }
 0x361   :  { %5977 = vmatprep.subr.bf16.mxu0 %v6749_v20  ;;  %v6792_v20 = vld [vmem:[%s9240_s4 + $0x598] sm:$0xff]   ;;  %v6816_v8 = vld [vmem:[%s9240_s4 + $0x608] sm:$0xff]  }
 0x362   :  { %6032 = vmatpush3.bf16.msra.mxu1 %v6752_v6  ;;  %v6801_v6 = vld [vmem:[%s9240_s4 + $0x560] sm:$0xff]  }
 0x363   :  { %6033 = vmatprep.subr.bf16.mxu1 %v6754_v32  ;;  %v6803_v32 = vld [vmem:[%s9240_s4 + $0x520] sm:$0xff]  }
 0x364   :  { %5978 = vmatpush3.bf16.msra.mxu0 %v6751_v57  ;;  %v6800_v57 = vld [vmem:[%s9240_s4 + $0x5a8] sm:$0xff]  }
 0x365   :  { %6007 = vmatprep.subr.bf16.mxu0 %v6753_v51  ;;  %v6802_v51 = vld [vmem:[%s9240_s4 + $0x5f0] sm:$0xff]  }
 0x366   :  { %6034 = vmatpush3.bf16.msra.mxu1 %v6756_v24  ;;  %v6805_v24 = vld [vmem:[%s9240_s4 + $0x568] sm:$0xff]  }
 0x367   :  { %4433 = vmatmul.mubr.bf16.vlgmr.msra.gmra.mrb[116].mxu0 %v9423_v46  ;;  %6035 = vmatprep.subr.bf16.mxu1 %v6758_v38  ;;  %v6807_v38 = vld [vmem:[%s9240_s4 + $0x528] sm:$0xff]   ;;  %v6808_v46 = vld [vmem:[%s9240_s4 + $0x5b8] sm:$0xff]  }
 0x368   :  { %6008 = vmatpush3.bf16.msra.mxu0 %v6755_v59  ;;  %4710 = vmatprep.mubr.bf16.mxu0 %v9424_v1  ;;  %v6804_v59 = vld [vmem:[%s9240_s4 + $0x5b0] sm:$0xff]  }
 0x369   :  { %6009 = vmatprep.subr.bf16.mxu0 %v6757_v54  ;;  %v6806_v54 = vld [vmem:[%s9240_s4 + $0x5f8] sm:$0xff]   ;;  %v6809_v1 = vld [vmem:[%s9240_s4 + $0x570] sm:$0xff]  }
 0x36a   :  { %6036 = vmatpush3.bf16.msra.mxu1 %v6760_v3  ;;  %v6811_v3 = vld [vmem:[%s9240_s4 + $0x578] sm:$0xff]  }
 0x36b   :  { %6037 = vmatprep.subr.bf16.mxu1 %v6762_v47  ;;  %v6813_v47 = vld [vmem:[%s9240_s4 + $0x640] sm:$0xff]  }
 0x36c   :  { %6010 = vmatpush3.bf16.msra.mxu0 %v6759_v27  ;;  %v6810_v27 = vld [vmem:[%s9240_s4 + $0x530] sm:$0xff]  }
 0x36d   :  { %6011 = vmatprep.subr.bf16.mxu0 %v6761_v55  ;;  %v6812_v55 = vld [vmem:[%s9240_s4 + $0x538] sm:$0xff]  }
 0x36e   :  { %6038 = vmatpush3.bf16.msra.mxu1 %v6764_v16  ;;  %v6824_v16 = vld [vmem:[%s9240_s4 + $0x628] sm:$0xff]  }
 0x36f   :  { %6039 = vmatprep.subr.bf16.mxu1 %v6766_v56  ;;  %v6826_v56 = vld [vmem:[%s9240_s4 + $0x630] sm:$0xff]  }
 0x370   :  { %6012 = vmatpush3.bf16.msra.mxu0 %v6763_v19  ;;  %v6814_v19 = vld [vmem:[%s9240_s4 + $0x600] sm:$0xff]  }
 0x371   :  { %6013 = vmatprep.subr.bf16.mxu0 %v6765_v48  ;;  %v6825_v48 = vld [vmem:[%s9240_s4 + $0x670] sm:$0xff]  }
 0x372   :  { %6040 = vmatpush3.bf16.msra.mxu1 %v6768_v63  ;;  %v6828_v63 = vld [vmem:[%s9240_s4 + $0x638] sm:$0xff]  }
 0x373   :  { %6041 = vmatprep.subr.bf16.mxu1 %v6770_v12 }
 0x374   :  { %6014 = vmatpush3.bf16.msra.mxu0 %v6767_v34  ;;  %v6827_v34 = vld [vmem:[%s9240_s4 + $0x678] sm:$0xff]  }
 0x375   :  { %6015 = vmatprep.subr.bf16.mxu0 %v6769_v40 }
 0x376   :  { %6042 = vmatpush3.bf16.msra.mxu1 %v6772_v9 }
 0x377   :  { %6043 = vmatprep.subr.bf16.mxu1 %v6774_v0 }
 0x378   :  { %6016 = vmatpush3.bf16.msra.mxu0 %v6771_v39 }
 0x379   :  { %6017 = vmatprep.subr.bf16.mxu0 %v6773_v23 }
 0x37a   :  { %6044 = vmatpush3.bf16.msra.mxu1 %v6776_v10 }
 0x37b   :  { %6073 = vmatprep.subr.bf16.mxu1 %v6778_v29 }
 0x37c   :  { %6018 = vmatpush3.bf16.msra.mxu0 %v6775_v50 }
 0x37d   :  { %6019 = vmatprep.subr.bf16.mxu0 %v6777_v2  ;;  %4850 = vmatmul.mubr.bf16.vlgmr.msra.gmra.mrb[124].mxu1 %v3050_v45  ;;  %v6788_v45 = vld [vmem:[%s9240_s4 + $0x590] sm:$0xff]  }
 0x37e   :  { %6074 = vmatpush3.bf16.msra.mxu1 %v6780_v25  ;;  %5127 = vmatprep.mubr.bf16.mxu1 %v3055_v37  ;;  %v9425_v37 = vpack.c.bf16 %v8647_v42, %v8606_v62  ;;  %v6793_v42 = vld [vmem:[%s9240_s4 + $0x550] sm:$0xff]   ;;  %v6794_v62 = vld [vmem:[%s9240_s4 + $0x5e0] sm:$0xff]  }
 0x37f   :  { %6075 = vmatprep.subr.bf16.mxu1 %v6782_v31 }
 0x380   :  { %6020 = vmatpush3.bf16.msra.mxu0 %v6779_v4 }
 0x381   :  { %6021 = vmatprep.subr.bf16.mxu0 %v6781_v41 }
 0x382   :  { %6076 = vmatpush3.bf16.msra.mxu1 %v6784_v61 }
 0x383   :  { %6077 = vmatprep.subr.bf16.mxu1 %v6786_v43 }
 0x384   :  { %6022 = vmatpush3.bf16.msra.mxu0 %v6783_v44 }
 0x385   :  { %6051 = vmatprep.subr.bf16.mxu0 %v6785_v22 }
 0x386   :  { %6078 = vmatpush3.bf16.msra.mxu1 %v6788_v45 }
 0x387   :  { %4711 = vmatmul.mubr.bf16.vlgmr.msra.gmra.mrb[120].mxu0 %v9425_v37  ;;  %6079 = vmatprep.subr.bf16.mxu1 %v6790_v26 }
 0x388   :  { %6052 = vmatpush3.bf16.msra.mxu0 %v6787_v7  ;;  %4988 = vmatprep.mubr.bf16.mxu0 %v3053_v15  ;;  %v6797_v15 = vld [vmem:[%s9240_s4 + $0x558] sm:$0xff]  }
 0x389   :  { %6053 = vmatprep.subr.bf16.mxu0 %v6789_v18 }
 0x38a   :  { %6080 = vmatpush3.bf16.msra.mxu1 %v6792_v20 }
 0x38b   :  { %6081 = vmatprep.subr.bf16.mxu1 %v6794_v62  ;;  %v6846_v62 = vmov 0.0  }
 0x38c   :  { %6054 = vmatpush3.bf16.msra.mxu0 %v6791_v58 }
 0x38d   :  { %6055 = vmatprep.subr.bf16.mxu0 %v6793_v42 }
 0x38e   :  { %6082 = vmatpush3.bf16.msra.mxu1 %v6796_v30 }
 0x38f   :  { %6083 = vmatprep.subr.bf16.mxu1 %v6798_v13 }
 0x390   :  { %6056 = vmatpush3.bf16.msra.mxu0 %v6795_v14  ;;  %v6829_v14 = vld [vmem:[%s9242_s6] sm:$0xff]  }
 0x391   :  { %6057 = vmatprep.subr.bf16.mxu0 %v6797_v15 }
 0x392   :  { %6084 = vmatpush3.bf16.msra.mxu1 %v6800_v57 }
 0x393   :  { %6085 = vmatprep.subr.bf16.mxu1 %v6802_v51 }
 0x394   :  { %6058 = vmatpush3.bf16.msra.mxu0 %v6799_v36 }
 0x395   :  { %6059 = vmatprep.subr.bf16.mxu0 %v6801_v6 }
 0x396   :  { %6086 = vmatpush3.bf16.msra.mxu1 %v6804_v59 }
 0x397   :  { %6087 = vmatprep.subr.bf16.mxu1 %v6806_v54 }
 0x398   :  { %6060 = vmatpush3.bf16.msra.mxu0 %v6803_v32 }
 0x399   :  { %6061 = vmatprep.subr.bf16.mxu0 %v6805_v24 }
 0x39a   :  { %6088 = vmatpush3.bf16.msra.mxu1 %v6808_v46 }
 0x39b   :  { %6122 = vmatprep.subr.bf16.mxu1 %v6846_v62 }
 0x39c   :  { %6062 = vmatpush3.bf16.msra.mxu0 %v6807_v38  ;;  %v6830_v38 = vld [vmem:[%s9242_s6 + $0x8] sm:$0xff]  }
 0x39d   :  { %6063 = vmatprep.subr.bf16.mxu0 %v6809_v1  ;;  %5128 = vmatmul.mubr.bf16.vlgmr.msra.gmra.mrb[128].mxu1 %v3054_v28  ;;  %v6817_v28 = vld [vmem:[%s9240_s4 + $0x650] sm:$0xff]  }
 0x39e   :  { %6123 = vmatpush3.bf16.msra.mxu1 %v6829_v14  ;;  %6130 = vmatprep.mubr.msk.bf16.mxu1 %vm6847_vm2, %v6846_v62 }
 0x39f   :  { %6124 = vmatprep.subr.bf16.mxu1 %v6846_v62 }
 0x3a0   :  { %6064 = vmatpush3.bf16.msra.mxu0 %v6810_v27 }
 0x3a1   :  { %6065 = vmatprep.subr.bf16.mxu0 %v6811_v3 }
 0x3a2   :  { %6125 = vmatpush3.bf16.msra.mxu1 %v6830_v38 }
 0x3a3   :  { %6126 = vmatprep.subr.bf16.mxu1 %v6846_v62 }
 0x3a4   :  { %6066 = vmatpush3.bf16.msra.mxu0 %v6812_v55 }
 0x3a5   :  { %6095 = vmatprep.subr.bf16.mxu0 %v6813_v47  ;;  %v6831_v47 = vld [vmem:[%s9242_s6 + $0x10] sm:$0xff]  }
 0x3a6   :  { %6127 = vmatpush3.bf16.msra.mxu1 %v6831_v47 }
 0x3a7   :  { %4989 = vmatmul.mubr.bf16.vlgmr.msra.gmra.mrb[124].mxu0 %v3052_v17  ;;  %v6820_v17 = vld [vmem:[%s9240_s4 + $0x618] sm:$0xff]   ;;  %6128 = vmatprep.subr.bf16.mxu1 %v6846_v62 }
 0x3a8   :  { %6096 = vmatpush3.bf16.msra.mxu0 %v6814_v19  ;;  %5266 = vmatprep.mubr.bf16.mxu0 %v3057_v21  ;;  %v6823_v21 = vld [vmem:[%s9240_s4 + $0x668] sm:$0xff]  }
 0x3a9   :  { %6097 = vmatprep.subr.bf16.mxu0 %v6815_v33  ;;  %v6832_v33 = vld [vmem:[%s9242_s6 + $0x18] sm:$0xff]  }
 0x3aa   :  { %6129 = vmatpush3.bf16.msra.mxu1 %v6832_v33 }
 0x3ac   :  { %6098 = vmatpush3.bf16.msra.mxu0 %v6816_v8 }
 0x3ad   :  { %6099 = vmatprep.subr.bf16.mxu0 %v6817_v28 }
 0x3b0   :  { %6100 = vmatpush3.bf16.msra.mxu0 %v6818_v35 }
 0x3b1   :  { %6101 = vmatprep.subr.bf16.mxu0 %v6819_v52 }
 0x3b4   :  { %6102 = vmatpush3.bf16.msra.mxu0 %v6820_v17 }
 0x3b5   :  { %6103 = vmatprep.subr.bf16.mxu0 %v6821_v60 }
 0x3b8   :  { %6104 = vmatpush3.bf16.msra.mxu0 %v6822_v49 }
 0x3b9   :  { %6105 = vmatprep.subr.bf16.mxu0 %v6823_v21 }
 0x3bc   :  { %6106 = vmatpush3.bf16.msra.mxu0 %v6824_v16 }
 0x3bd   :  { %6107 = vmatprep.subr.bf16.mxu0 %v6825_v48 }
 0x3c0   :  { %6108 = vmatpush3.bf16.msra.mxu0 %v6826_v56 }
 0x3c1   :  { %6109 = vmatprep.subr.bf16.mxu0 %v6827_v34 }
 0x3c4   :  { %6110 = vmatpush3.bf16.msra.mxu0 %v6828_v63 }
 0x3c7   :  { %5267 = vmatmul.mubr.bf16.vlgmr.msra.gmra.mrb[128].mxu0 %v3056_v53 }
 0x3d0   :  { %v5869_v40 = vpop.f32.mrb[108].mxu1 }
 0x3d1   :  { %v5870_v12 = vpop.f32.mrb[109].mxu1 }
 0x3d2   :  { %v5871_v39 = vadd.f32 %v5870_v12, %v5869_v40  ;;  %v5872_v9 = vpop.f32.mrb[110].mxu1 }
 0x3d3   :  { %v5873_v23 = vpop.f32.mrb[111].mxu1 }
 0x3d4   :  { %v5874_v0 = vadd.f32 %v5873_v23, %v5872_v9 }
 0x3da   :  { %v5847_v50 = vpop.f32.mrb[104].mxu0 }
 0x3db   :  { %v5848_v10 = vpop.f32.mrb[105].mxu0 }
 0x3dc   :  { %v5849_v2 = vadd.f32 %v5848_v10, %v5847_v50  ;;  %v5850_v29 = vpop.f32.mrb[106].mxu0 }
 0x3dd   :  { %v5851_v4 = vpop.f32.mrb[107].mxu0 }
 0x3de   :  { %v3742_v25 = vadd.f32 %v5871_v39, %v5849_v2  ;;  %v5852_v41 = vadd.f32 %v5851_v4, %v5850_v29 }
 0x3e0   :  { %v3745_v31 = vadd.f32 %v5874_v0, %v5852_v41 }
 0x3f0   :  { %v5913_v44 = vpop.f32.mrb[112].mxu1 }
 0x3f1   :  { %v5914_v61 = vpop.f32.mrb[113].mxu1 }
 0x3f2   :  { %v5915_v22 = vadd.f32 %v5914_v61, %v5913_v44  ;;  %v5916_v43 = vpop.f32.mrb[114].mxu1 }
 0x3f3   :  { %v5917_v11 = vpop.f32.mrb[115].mxu1 }
 0x3f4   :  { %v5918_v5 = vadd.f32 %v5917_v11, %v5916_v43 }
 0x3fa   :  { %v5891_v53 = vpop.f32.mrb[108].mxu0 }
 0x3fb   :  { %v5892_v7 = vpop.f32.mrb[109].mxu0 }
 0x3fc   :  { %v5893_v45 = vadd.f32 %v5892_v7, %v5891_v53  ;;  %v5894_v18 = vpop.f32.mrb[110].mxu0 }
 0x3fd   :  { %v5895_v26 = vpop.f32.mrb[111].mxu0 }
 0x3fe   :  { %v3885_v37 = vadd.f32 %v5893_v45, %v3742_v25  ;;  %v5896_v58 = vadd.f32 %v5895_v26, %v5894_v18 }
 0x400   :  { %v3886_v20 = vadd.f32 %v5896_v58, %v3745_v31  ;;  %v4024_v42 = vadd.f32 %v5915_v22, %v3885_v37 }
 0x402   :  { %v4025_v30 = vadd.f32 %v5918_v5, %v3886_v20 }
 0x410   :  { %v5957_v15 = vpop.f32.mrb[116].mxu1 }
 0x411   :  { %v5958_v13 = vpop.f32.mrb[117].mxu1 }
 0x412   :  { %v5959_v36 = vadd.f32 %v5958_v13, %v5957_v15  ;;  %v5960_v57 = vpop.f32.mrb[118].mxu1 }
 0x413   :  { %v5961_v6 = vpop.f32.mrb[119].mxu1 }
 0x414   :  { %v5962_v51 = vadd.f32 %v5961_v6, %v5960_v57 }
 0x41a   :  { %v5935_v32 = vpop.f32.mrb[112].mxu0 }
 0x41b   :  { %v5936_v59 = vpop.f32.mrb[113].mxu0 }
 0x41c   :  { %v5937_v24 = vadd.f32 %v5936_v59, %v5935_v32  ;;  %v5938_v54 = vpop.f32.mrb[114].mxu0  ;;  %v5824_v59 = vld [vmem:[%s9243_s5] ss:$0 sm:$0xff] }
 0x41d   :  { %v5939_v46 = vpop.f32.mrb[115].mxu0 }
 0x41e   :  { %v4163_v1 = vadd.f32 %v5937_v24, %v4024_v42  ;;  %v5940_v27 = vadd.f32 %v5939_v46, %v5938_v54 }
 0x420   :  { %v4164_v3 = vadd.f32 %v5940_v27, %v4025_v30  ;;  %v4302_v55 = vadd.f32 %v5959_v36, %v4163_v1 }
 0x422   :  { %v4303_v19 = vadd.f32 %v5962_v51, %v4164_v3 }
 0x430   :  { %v6001_v8 = vpop.f32.mrb[120].mxu1 }
 0x431   :  { %v6002_v28 = vpop.f32.mrb[121].mxu1 }
 0x432   :  { %v6003_v35 = vadd.f32 %v6002_v28, %v6001_v8  ;;  %v6004_v52 = vpop.f32.mrb[122].mxu1 }
 0x433   :  { %v6005_v17 = vpop.f32.mrb[123].mxu1 }
 0x434   :  { %v6006_v60 = vadd.f32 %v6005_v17, %v6004_v52 }
 0x43a   :  { %v5979_v49 = vpop.f32.mrb[116].mxu0 }
 0x43b   :  { %v5980_v21 = vpop.f32.mrb[117].mxu0 }
 0x43c   :  { %v5981_v16 = vadd.f32 %v5980_v21, %v5979_v49  ;;  %v5982_v48 = vpop.f32.mrb[118].mxu0 }
 0x43d   :  { %v5983_v56 = vpop.f32.mrb[119].mxu0 }
 0x43e   :  { %v4441_v34 = vadd.f32 %v5981_v16, %v4302_v55  ;;  %v5984_v63 = vadd.f32 %v5983_v56, %v5982_v48 }
 0x440   :  { %v4442_v40 = vadd.f32 %v5984_v63, %v4303_v19  ;;  %v4580_v12 = vadd.f32 %v6003_v35, %v4441_v34  ;;  %v5825_v19 = vld [vmem:[%s9244_s7] ss:$0 sm:$0xff] }
 0x442   :  { %v4581_v39 = vadd.f32 %v6006_v60, %v4442_v40 }
 0x450   :  { %v6045_v9 = vpop.f32.mrb[124].mxu1 }
 0x451   :  { %v6046_v23 = vpop.f32.mrb[125].mxu1 }
 0x452   :  { %v6047_v0 = vadd.f32 %v6046_v23, %v6045_v9  ;;  %v6048_v50 = vpop.f32.mrb[126].mxu1 }
 0x453   :  { %v6049_v10 = vpop.f32.mrb[127].mxu1 }
 0x454   :  { %v6050_v2 = vadd.f32 %v6049_v10, %v6048_v50 }
 0x45a   :  { %v6023_v29 = vpop.f32.mrb[120].mxu0 }
 0x45b   :  { %v6024_v4 = vpop.f32.mrb[121].mxu0 }
 0x45c   :  { %v6025_v25 = vadd.f32 %v6024_v4, %v6023_v29  ;;  %v6026_v41 = vpop.f32.mrb[122].mxu0 }
 0x45d   :  { %v6027_v31 = vpop.f32.mrb[123].mxu0 }
 0x45e   :  { %v4719_v44 = vadd.f32 %v6025_v25, %v4580_v12  ;;  %v6028_v61 = vadd.f32 %v6027_v31, %v6026_v41 }
 0x460   :  { %v4720_v22 = vadd.f32 %v6028_v61, %v4581_v39  ;;  %v4858_v43 = vadd.f32 %v6047_v0, %v4719_v44 }
 0x462   :  { %v4859_v11 = vadd.f32 %v6050_v2, %v4720_v22 }
 0x470   :  { %v6089_v5 = vpop.f32.mrb[128].mxu1 }
 0x471   :  { %v6090_v53 = vpop.f32.mrb[129].mxu1 }
 0x472   :  { %v6091_v7 = vadd.f32 %v6090_v53, %v6089_v5  ;;  %v6092_v45 = vpop.f32.mrb[130].mxu1 }
 0x473   :  { %v6093_v18 = vpop.f32.mrb[131].mxu1 }
 0x474   :  { %v6094_v26 = vadd.f32 %v6093_v18, %v6092_v45 }
 0x47a   :  { %v6067_v37 = vpop.f32.mrb[124].mxu0 }
 0x47b   :  { %v6068_v58 = vpop.f32.mrb[125].mxu0 }
 0x47c   :  { %v6069_v20 = vadd.f32 %v6068_v58, %v6067_v37  ;;  %v6070_v42 = vpop.f32.mrb[126].mxu0 }
 0x47d   :  { %v6071_v62 = vpop.f32.mrb[127].mxu0 }
 0x47e   :  { %v4997_v14 = vadd.f32 %v6069_v20, %v4858_v43  ;;  %v6072_v30 = vadd.f32 %v6071_v62, %v6070_v42 }
 0x480   :  { %v4998_v15 = vadd.f32 %v6072_v30, %v4859_v11  ;;  %v5136_v13 = vadd.f32 %v6091_v7, %v4997_v14 }
 0x482   :  { %v5137_v36 = vadd.f32 %v6094_v26, %v4998_v15 }
 0x49a   :  { %v6111_v57 = vpop.f32.mrb[128].mxu0 }
 0x49b   :  { %v6112_v6 = vpop.f32.mrb[129].mxu0 }
 0x49c   :  { %v6113_v51 = vadd.f32 %v6112_v6, %v6111_v57  ;;  %v6114_v32 = vpop.f32.mrb[130].mxu0 }
 0x49d   :  { %v6115_v24 = vpop.f32.mrb[131].mxu0 }
 0x49e   :  { %v5275_v54 = vadd.f32 %v6113_v51, %v5136_v13  ;;  %v6116_v38 = vadd.f32 %v6115_v24, %v6114_v32 }
 0x4a0   :  { %v5284_v46 = vadd.f32 %v5824_v59, %v5275_v54  ;;  %v5276_v1 = vadd.f32 %v6116_v38, %v5137_v36 }
 0x4a2   :  { %v5285_v27 = vadd.f32 %v5824_v59, %v5276_v1  ;;  %v5286_v3 = vmax.f32 %v5284_v46, 0.0 }
 0x4a4   :  { %v5287_v55 = vmax.f32 %v5285_v27, 0.0 }
 0x4a6   :  { %v5288_v47 = vpack.c.bf16 %v5287_v55, %v5286_v3 }
 0x4a8   :  { %6131 = vmatmul.mubr.msk.bf16.vlgmr.msra.gmra.mrb[132].mxu1 %vm5328_vm3, %v5288_v47 }
 0x57b   :  { %v5366_v33 = vpop.f32.mrb[132].mxu1 }
 0x57c   :  { %v5367_v8 = vadd.f32 %v5825_v19, %v5366_v33  ;;  %v6132_v28 = vpop.f32.mrb[133].mxu1 }
 0x57d   :  { %v5369_v35 = vpop.f32.mrb[134].mxu1 }
 0x57e   :  { %5374 = vst.msk [vmem:[%s9245_s8] sm:$0xff] %vm5373_vm4, %v5367_v8  ;;  %v5370_v52 = vadd.f32 %v5825_v19, %v5369_v35  ;;  %v6133_v17 = vpop.f32.mrb[135].mxu1 }
 0x580   :  { %5375 = vst.msk [vmem:[%s9245_s8 + $0x8] sm:$0xff] %vm5373_vm4, %v5370_v52 }

</bundles_post_ra>
